<compile_context>
chip_gen: v6e
topology: v6e:2x2x1
jax: 0.10.0
libtpu: 0.0.40
codegen_flags: <defaults>
</compile_context>

<pallas_src>
import jax
import jax.numpy as jnp
from jax.experimental import pallas as pl
from jax.experimental.pallas import tpu as pltpu


def _conv_block_kernel(x_ref, w1_ref, w2_ref, s1_ref, b1_ref, s2_ref, b2_ref,
                       o_ref, im1_ref, im2_ref):
    """Fused conv->ReLU->BN->conv->ReLU->BN for one image.

    x_ref:  (1, H, W, Cin)   f32 NHWC input tile
    w1_ref: (9*Cin, Cmid)    bf16 im2col weights (kh, kw, cin ordering)
    w2_ref: (9*Cmid, Cout)   bf16 im2col weights
    s*_ref/b*_ref: (1, C)    f32 folded BatchNorm scale/shift
    o_ref:  (1, H*W, Cout)   f32 output
    im1_ref/im2_ref: VMEM im2col scratch (H, W, 9*C) f32
    """
    H, W, Cin = x_ref.shape[1], x_ref.shape[2], x_ref.shape[3]
    Cmid = w1_ref.shape[1]

    def scatter_taps(read_src, cin, im_ref):
        # Build im2col in VMEM: for each of the 9 taps, copy the valid shifted
        # window of the layer input into lanes [t*cin:(t+1)*cin]; the border
        # (implicit zero padding) stays zero from the pre-zeroed scratch.
        im_ref[...] = jnp.zeros_like(im_ref)
        for kh in range(3):
            for kw in range(3):
                dh, dw = kh - 1, kw - 1
                sh0, sh1 = max(0, dh), H + min(0, dh)   # source rows
                sw0, sw1 = max(0, dw), W + min(0, dw)   # source cols
                oh0, oh1 = max(0, -dh), H + min(0, -dh)  # dest rows
                ow0, ow1 = max(0, -dw), W + min(0, -dw)  # dest cols
                t = kh * 3 + kw
                im_ref[oh0:oh1, ow0:ow1, t * cin:(t + 1) * cin] = (
                    read_src(sh0, sh1, sw0, sw1))

    # ---- layer 1: conv(3x3, Cin->Cmid) -> ReLU -> BN affine ----
    scatter_taps(lambda a, b, c, d: x_ref[0, a:b, c:d, :], Cin, im1_ref)
    im1 = im1_ref[...].reshape(H * W, 9 * Cin).astype(jnp.bfloat16)
    acc1 = jnp.dot(im1, w1_ref[...], preferred_element_type=jnp.float32)
    h = jnp.maximum(acc1, 0.0) * s1_ref[...] + b1_ref[...]     # f32 (H*W, Cmid)
    h3 = h.reshape(H, W, Cmid)                                  # stays in VMEM

    # ---- layer 2: conv(3x3, Cmid->Cout) -> ReLU -> BN affine ----
    scatter_taps(lambda a, b, c, d: h3[a:b, c:d, :], Cmid, im2_ref)
    im2 = im2_ref[...].reshape(H * W, 9 * Cmid).astype(jnp.bfloat16)
    acc2 = jnp.dot(im2, w2_ref[...], preferred_element_type=jnp.float32)
    o_ref[0] = jnp.maximum(acc2, 0.0) * s2_ref[...] + b2_ref[...]


def conv_block_forward(x_nchw, params):
    """Full conv_block forward (eval mode). Input/output NCHW like PyTorch."""
    (w1_hwio, s1, b1), (w2_hwio, s2, b2) = params
    N, Cin, H, W = x_nchw.shape
    Cmid = w1_hwio.shape[-1]
    Cout = w2_hwio.shape[-1]

    x = jnp.transpose(x_nchw, (0, 2, 3, 1)).astype(jnp.float32)      # NHWC
    # HWIO -> (9*Cin, Cout) im2col weights, bf16 for the MXU.
    w1 = w1_hwio.reshape(9 * Cin, Cmid).astype(jnp.bfloat16)
    w2 = w2_hwio.reshape(9 * Cmid, Cout).astype(jnp.bfloat16)
    s1r = s1.reshape(1, Cmid).astype(jnp.float32)
    b1r = b1.reshape(1, Cmid).astype(jnp.float32)
    s2r = s2.reshape(1, Cout).astype(jnp.float32)
    b2r = b2.reshape(1, Cout).astype(jnp.float32)

    flops = 2 * N * H * W * 9 * (Cin * Cmid + Cmid * Cout)
    bytes_accessed = (N * H * W * Cin * 4 + 9 * Cin * Cmid * 2
                      + 9 * Cmid * Cout * 2 + 2 * (Cmid + Cout) * 4
                      + N * H * W * Cout * 4)

    out = pl.pallas_call(
        _conv_block_kernel,
        out_shape=jax.ShapeDtypeStruct((N, H * W, Cout), jnp.float32),
        grid=(N,),
        in_specs=[
            pl.BlockSpec((1, H, W, Cin), lambda n: (n, 0, 0, 0)),
            pl.BlockSpec((9 * Cin, Cmid), lambda n: (0, 0)),
            pl.BlockSpec((9 * Cmid, Cout), lambda n: (0, 0)),
            pl.BlockSpec((1, Cmid), lambda n: (0, 0)),
            pl.BlockSpec((1, Cmid), lambda n: (0, 0)),
            pl.BlockSpec((1, Cout), lambda n: (0, 0)),
            pl.BlockSpec((1, Cout), lambda n: (0, 0)),
        ],
        out_specs=pl.BlockSpec((1, H * W, Cout), lambda n: (n, 0, 0)),
        scratch_shapes=[
            pltpu.VMEM((H, W, 9 * Cin), jnp.float32),    # im2col, layer 1
            pltpu.VMEM((H, W, 9 * Cmid), jnp.float32),   # im2col, layer 2
        ],
        compiler_params=pltpu.CompilerParams(
            dimension_semantics=("parallel",)),
        cost_estimate=pl.CostEstimate(
            flops=flops, transcendentals=0, bytes_accessed=bytes_accessed),
    )(x, w1, w2, s1r, b1r, s2r, b2r)

    out = out.reshape(N, H, W, Cout)
    return jnp.transpose(out, (0, 3, 1, 2))                  # NHWC -> NCHW


def make_params(key, n_in, n_mid, n_out):
    """Deterministic parameter init; returns HWIO f32 weights + folded BN."""
    k1, k2, k3, k4, k5, k6 = jax.random.split(key, 6)
    w1_oihw = jax.random.normal(k1, (n_mid, n_in, 3, 3), jnp.float32) * 0.1
    w2_oihw = jax.random.normal(k2, (n_out, n_mid, 3, 3), jnp.float32) * 0.1
    eps = 1e-5
    bn1 = dict(gamma=1.0 + 0.1 * jax.random.normal(k3, (n_mid,), jnp.float32),
               beta=0.1 * jax.random.normal(k4, (n_mid,), jnp.float32),
               mean=jnp.zeros((n_mid,), jnp.float32),
               var=jnp.ones((n_mid,), jnp.float32))
    bn2 = dict(gamma=1.0 + 0.1 * jax.random.normal(k5, (n_out,), jnp.float32),
               beta=0.1 * jax.random.normal(k6, (n_out,), jnp.float32),
               mean=jnp.zeros((n_out,), jnp.float32),
               var=jnp.ones((n_out,), jnp.float32))

    def fold(bn):
        s = bn["gamma"] / jnp.sqrt(bn["var"] + eps)
        return s, bn["beta"] - bn["mean"] * s

    s1, b1 = fold(bn1)
    s2, b2 = fold(bn2)
    w1 = jnp.transpose(w1_oihw, (2, 3, 1, 0))   # OIHW -> HWIO
    w2 = jnp.transpose(w2_oihw, (2, 3, 1, 0))
    return (w1, s1, b1), (w2, s2, b2)


def _reference_forward(x_nchw, params, matmul_dtype=jnp.float32):
    """Pure-JAX reference (eval-mode). matmul_dtype=bf16 mirrors kernel math."""
    (w1, s1, b1), (w2, s2, b2) = params

    def block(x, w, s, b):
        y = jax.lax.conv_general_dilated(
            x.astype(matmul_dtype), w.astype(matmul_dtype),
            window_strides=(1, 1), padding=((1, 1), (1, 1)),
            dimension_numbers=("NHWC", "HWIO", "NHWC"),
            preferred_element_type=jnp.float32)
        y = jnp.maximum(y, 0.0)
        return y * s + b

    x = jnp.transpose(x_nchw, (0, 2, 3, 1)).astype(jnp.float32)
    h = block(x, w1, s1, b1)
    y = block(h, w2, s2, b2)
    return jnp.transpose(y, (0, 3, 1, 2))


if __name__ == "__main__":
    N, n_in, n_mid, n_out, H, W = 2, 4, 32, 8, 16, 16
    key = jax.random.PRNGKey(0)
    kx, kp = jax.random.split(key)
    x = jax.random.normal(kx, (N, n_in, H, W), jnp.float32)
    params = make_params(kp, n_in, n_mid, n_out)

    out = conv_block_forward(x, params)
    out = jax.block_until_ready(out)

    ref_bf16 = _reference_forward(x, params, matmul_dtype=jnp.bfloat16)
    ref_f32 = _reference_forward(x, params, matmul_dtype=jnp.float32)

    assert out.shape == (N, n_out, H, W)
    # Exact-structure check (same bf16 operand rounding, f32 accumulate).
    assert jnp.allclose(out, ref_bf16, atol=2e-3, rtol=2e-3)
    # Loose sanity check against the full-f32 reference.
    assert jnp.allclose(out, ref_f32, atol=1e-1, rtol=1e-1)
    print("KERNEL_OK")
</pallas_src>

<mosaic_0001>
module attributes {stable_mosaic.version = 11 : i64} {
  func.func @_conv_block_kernel(%arg0: i32, %arg1: memref<1x16x16x4xf32, #tpu.memory_space<vmem>>, %arg2: memref<36x32xbf16, #tpu.memory_space<vmem>>, %arg3: memref<288x8xbf16, #tpu.memory_space<vmem>>, %arg4: memref<1x32xf32, #tpu.memory_space<vmem>>, %arg5: memref<1x32xf32, #tpu.memory_space<vmem>>, %arg6: memref<1x8xf32, #tpu.memory_space<vmem>>, %arg7: memref<1x8xf32, #tpu.memory_space<vmem>>, %arg8: memref<1x256x8xf32, #tpu.memory_space<vmem>>, %arg9: memref<16x16x36xf32, #tpu.memory_space<vmem>>, %arg10: memref<16x16x288xf32, #tpu.memory_space<vmem>>) attributes {dimension_semantics = [#tpu.dimension_semantics<parallel>], iteration_bounds = array<i64: 2>, scalar_prefetch = 0 : i64, scratch_operands = 2 : i64, tpu.core_type = #tpu.core_type<tc>, window_params = [{transform_indices = @transform_0, window_bounds = array<i64: 1, 16, 16, 4>}, {pipeline_mode = #tpu.pipeline_mode<synchronous>, transform_indices = @transform_1, window_bounds = array<i64: 36, 32>}, {pipeline_mode = #tpu.pipeline_mode<synchronous>, transform_indices = @transform_2, window_bounds = array<i64: 288, 8>}, {pipeline_mode = #tpu.pipeline_mode<synchronous>, transform_indices = @transform_3, window_bounds = array<i64: 1, 32>}, {pipeline_mode = #tpu.pipeline_mode<synchronous>, transform_indices = @transform_4, window_bounds = array<i64: 1, 32>}, {pipeline_mode = #tpu.pipeline_mode<synchronous>, transform_indices = @transform_5, window_bounds = array<i64: 1, 8>}, {pipeline_mode = #tpu.pipeline_mode<synchronous>, transform_indices = @transform_6, window_bounds = array<i64: 1, 8>}, {transform_indices = @transform_7, window_bounds = array<i64: 1, 256, 8>}]} {
    %cst = arith.constant 0.000000e+00 : f32
    %0 = vector.broadcast %cst : f32 to vector<16x16x36xf32>
    %c0 = arith.constant 0 : index
    %c0_0 = arith.constant 0 : index
    %c0_1 = arith.constant 0 : index
    %1 = vector.load %arg9[%c0, %c0_0, %c0_1] : memref<16x16x36xf32, #tpu.memory_space<vmem>>, vector<16x16x36xf32>
    tpu.vector_store %arg9[%c0, %c0_0, %c0_1], %0 {strides = array<i32>} : memref<16x16x36xf32, #tpu.memory_space<vmem>>, vector<16x16x36xf32>,
    %c0_2 = arith.constant 0 : index
    %c0_3 = arith.constant 0 : index
    %c0_4 = arith.constant 0 : index
    %c0_5 = arith.constant 0 : index
    %2 = vector.load %arg1[%c0_2, %c0_3, %c0_4, %c0_5] : memref<1x16x16x4xf32, #tpu.memory_space<vmem>>, vector<1x15x15x4xf32>
    %3 = vector.shape_cast %2 : vector<1x15x15x4xf32> to vector<15x15x4xf32>
    %c1 = arith.constant 1 : index
    %c1_6 = arith.constant 1 : index
    %c0_7 = arith.constant 0 : index
    %4 = vector.load %arg9[%c1, %c1_6, %c0_7] : memref<16x16x36xf32, #tpu.memory_space<vmem>>, vector<15x15x4xf32>
    tpu.vector_store %arg9[%c1, %c1_6, %c0_7], %3 {strides = array<i32>} : memref<16x16x36xf32, #tpu.memory_space<vmem>>, vector<15x15x4xf32>,
    %c0_8 = arith.constant 0 : index
    %c0_9 = arith.constant 0 : index
    %c0_10 = arith.constant 0 : index
    %c0_11 = arith.constant 0 : index
    %5 = vector.load %arg1[%c0_8, %c0_9, %c0_10, %c0_11] : memref<1x16x16x4xf32, #tpu.memory_space<vmem>>, vector<1x15x16x4xf32>
    %6 = vector.shape_cast %5 : vector<1x15x16x4xf32> to vector<15x16x4xf32>
    %c1_12 = arith.constant 1 : index
    %c0_13 = arith.constant 0 : index
    %c4 = arith.constant 4 : index
    %7 = vector.load %arg9[%c1_12, %c0_13, %c4] : memref<16x16x36xf32, #tpu.memory_space<vmem>>, vector<15x16x4xf32>
    tpu.vector_store %arg9[%c1_12, %c0_13, %c4], %6 {strides = array<i32>} : memref<16x16x36xf32, #tpu.memory_space<vmem>>, vector<15x16x4xf32>,
    %c0_14 = arith.constant 0 : index
    %c0_15 = arith.constant 0 : index
    %c1_16 = arith.constant 1 : index
    %c0_17 = arith.constant 0 : index
    %8 = vector.load %arg1[%c0_14, %c0_15, %c1_16, %c0_17] : memref<1x16x16x4xf32, #tpu.memory_space<vmem>>, vector<1x15x15x4xf32>
    %9 = vector.shape_cast %8 : vector<1x15x15x4xf32> to vector<15x15x4xf32>
    %c1_18 = arith.constant 1 : index
    %c0_19 = arith.constant 0 : index
    %c8 = arith.constant 8 : index
    %10 = vector.load %arg9[%c1_18, %c0_19, %c8] : memref<16x16x36xf32, #tpu.memory_space<vmem>>, vector<15x15x4xf32>
    tpu.vector_store %arg9[%c1_18, %c0_19, %c8], %9 {strides = array<i32>} : memref<16x16x36xf32, #tpu.memory_space<vmem>>, vector<15x15x4xf32>,
    %c0_20 = arith.constant 0 : index
    %c0_21 = arith.constant 0 : index
    %c0_22 = arith.constant 0 : index
    %c0_23 = arith.constant 0 : index
    %11 = vector.load %arg1[%c0_20, %c0_21, %c0_22, %c0_23] : memref<1x16x16x4xf32, #tpu.memory_space<vmem>>, vector<1x16x15x4xf32>
    %12 = vector.shape_cast %11 : vector<1x16x15x4xf32> to vector<16x15x4xf32>
    %c0_24 = arith.constant 0 : index
    %c1_25 = arith.constant 1 : index
    %c12 = arith.constant 12 : index
    %13 = vector.load %arg9[%c0_24, %c1_25, %c12] : memref<16x16x36xf32, #tpu.memory_space<vmem>>, vector<16x15x4xf32>
    tpu.vector_store %arg9[%c0_24, %c1_25, %c12], %12 {strides = array<i32>} : memref<16x16x36xf32, #tpu.memory_space<vmem>>, vector<16x15x4xf32>,
    %c0_26 = arith.constant 0 : index
    %c0_27 = arith.constant 0 : index
    %c0_28 = arith.constant 0 : index
    %c0_29 = arith.constant 0 : index
    %14 = vector.load %arg1[%c0_26, %c0_27, %c0_28, %c0_29] : memref<1x16x16x4xf32, #tpu.memory_space<vmem>>, vector<1x16x16x4xf32>
    %15 = vector.shape_cast %14 : vector<1x16x16x4xf32> to vector<16x16x4xf32>
    %c0_30 = arith.constant 0 : index
    %c0_31 = arith.constant 0 : index
    %c16 = arith.constant 16 : index
    %16 = vector.load %arg9[%c0_30, %c0_31, %c16] : memref<16x16x36xf32, #tpu.memory_space<vmem>>, vector<16x16x4xf32>
    tpu.vector_store %arg9[%c0_30, %c0_31, %c16], %15 {strides = array<i32>} : memref<16x16x36xf32, #tpu.memory_space<vmem>>, vector<16x16x4xf32>,
    %c0_32 = arith.constant 0 : index
    %c0_33 = arith.constant 0 : index
    %c1_34 = arith.constant 1 : index
    %c0_35 = arith.constant 0 : index
    %17 = vector.load %arg1[%c0_32, %c0_33, %c1_34, %c0_35] : memref<1x16x16x4xf32, #tpu.memory_space<vmem>>, vector<1x16x15x4xf32>
    %18 = vector.shape_cast %17 : vector<1x16x15x4xf32> to vector<16x15x4xf32>
    %c0_36 = arith.constant 0 : index
    %c0_37 = arith.constant 0 : index
    %c20 = arith.constant 20 : index
    %19 = vector.load %arg9[%c0_36, %c0_37, %c20] : memref<16x16x36xf32, #tpu.memory_space<vmem>>, vector<16x15x4xf32>
    tpu.vector_store %arg9[%c0_36, %c0_37, %c20], %18 {strides = array<i32>} : memref<16x16x36xf32, #tpu.memory_space<vmem>>, vector<16x15x4xf32>,
    %c0_38 = arith.constant 0 : index
    %c1_39 = arith.constant 1 : index
    %c0_40 = arith.constant 0 : index
    %c0_41 = arith.constant 0 : index
    %20 = vector.load %arg1[%c0_38, %c1_39, %c0_40, %c0_41] : memref<1x16x16x4xf32, #tpu.memory_space<vmem>>, vector<1x15x15x4xf32>
    %21 = vector.shape_cast %20 : vector<1x15x15x4xf32> to vector<15x15x4xf32>
    %c0_42 = arith.constant 0 : index
    %c1_43 = arith.constant 1 : index
    %c24 = arith.constant 24 : index
    %22 = vector.load %arg9[%c0_42, %c1_43, %c24] : memref<16x16x36xf32, #tpu.memory_space<vmem>>, vector<15x15x4xf32>
    tpu.vector_store %arg9[%c0_42, %c1_43, %c24], %21 {strides = array<i32>} : memref<16x16x36xf32, #tpu.memory_space<vmem>>, vector<15x15x4xf32>,
    %c0_44 = arith.constant 0 : index
    %c1_45 = arith.constant 1 : index
    %c0_46 = arith.constant 0 : index
    %c0_47 = arith.constant 0 : index
    %23 = vector.load %arg1[%c0_44, %c1_45, %c0_46, %c0_47] : memref<1x16x16x4xf32, #tpu.memory_space<vmem>>, vector<1x15x16x4xf32>
    %24 = vector.shape_cast %23 : vector<1x15x16x4xf32> to vector<15x16x4xf32>
    %c0_48 = arith.constant 0 : index
    %c0_49 = arith.constant 0 : index
    %c28 = arith.constant 28 : index
    %25 = vector.load %arg9[%c0_48, %c0_49, %c28] : memref<16x16x36xf32, #tpu.memory_space<vmem>>, vector<15x16x4xf32>
    tpu.vector_store %arg9[%c0_48, %c0_49, %c28], %24 {strides = array<i32>} : memref<16x16x36xf32, #tpu.memory_space<vmem>>, vector<15x16x4xf32>,
    %c0_50 = arith.constant 0 : index
    %c1_51 = arith.constant 1 : index
    %c1_52 = arith.constant 1 : index
    %c0_53 = arith.constant 0 : index
    %26 = vector.load %arg1[%c0_50, %c1_51, %c1_52, %c0_53] : memref<1x16x16x4xf32, #tpu.memory_space<vmem>>, vector<1x15x15x4xf32>
    %27 = vector.shape_cast %26 : vector<1x15x15x4xf32> to vector<15x15x4xf32>
    %c0_54 = arith.constant 0 : index
    %c0_55 = arith.constant 0 : index
    %c32 = arith.constant 32 : index
    %28 = vector.load %arg9[%c0_54, %c0_55, %c32] : memref<16x16x36xf32, #tpu.memory_space<vmem>>, vector<15x15x4xf32>
    tpu.vector_store %arg9[%c0_54, %c0_55, %c32], %27 {strides = array<i32>} : memref<16x16x36xf32, #tpu.memory_space<vmem>>, vector<15x15x4xf32>,
    %c0_56 = arith.constant 0 : index
    %c0_57 = arith.constant 0 : index
    %c0_58 = arith.constant 0 : index
    %29 = vector.load %arg9[%c0_56, %c0_57, %c0_58] : memref<16x16x36xf32, #tpu.memory_space<vmem>>, vector<16x16x36xf32>
    %30 = vector.shape_cast %29 : vector<16x16x36xf32> to vector<256x36xf32>
    %31 = arith.truncf %30 : vector<256x36xf32> to vector<256x36xbf16>
    %c0_59 = arith.constant 0 : index
    %c0_60 = arith.constant 0 : index
    %32 = vector.load %arg2[%c0_59, %c0_60] : memref<36x32xbf16, #tpu.memory_space<vmem>>, vector<36x32xbf16>
    %cst_61 = arith.constant dense<0.000000e+00> : vector<256x32xf32>
    %33 = tpu.matmul %31, %32, %cst_61 {dimension_numbers = #tpu.dot_dimension_numbers<[1], [0], [0], [1], [0, 0, 1, 1], [], []>} : vector<256x36xbf16>, vector<36x32xbf16>, vector<256x32xf32> -> vector<256x32xf32>
    %cst_62 = arith.constant 0.000000e+00 : f32
    %34 = vector.broadcast %cst_62 : f32 to vector<256x32xf32>
    %35 = arith.maximumf %33, %34 : vector<256x32xf32>
    %c0_63 = arith.constant 0 : index
    %c0_64 = arith.constant 0 : index
    %36 = vector.load %arg4[%c0_63, %c0_64] : memref<1x32xf32, #tpu.memory_space<vmem>>, vector<1x32xf32>
    %37 = vector.broadcast %36 : vector<1x32xf32> to vector<256x32xf32>
    %38 = arith.mulf %35, %37 : vector<256x32xf32>
    %c0_65 = arith.constant 0 : index
    %c0_66 = arith.constant 0 : index
    %39 = vector.load %arg5[%c0_65, %c0_66] : memref<1x32xf32, #tpu.memory_space<vmem>>, vector<1x32xf32>
    %40 = vector.broadcast %39 : vector<1x32xf32> to vector<256x32xf32>
    %41 = arith.addf %38, %40 : vector<256x32xf32>
    %42 = vector.shape_cast %41 : vector<256x32xf32> to vector<16x16x32xf32>
    %cst_67 = arith.constant 0.000000e+00 : f32
    %43 = vector.broadcast %cst_67 : f32 to vector<16x16x288xf32>
    %c0_68 = arith.constant 0 : index
    %c0_69 = arith.constant 0 : index
    %c0_70 = arith.constant 0 : index
    %44 = vector.load %arg10[%c0_68, %c0_69, %c0_70] : memref<16x16x288xf32, #tpu.memory_space<vmem>>, vector<16x16x288xf32>
    tpu.vector_store %arg10[%c0_68, %c0_69, %c0_70], %43 {strides = array<i32>} : memref<16x16x288xf32, #tpu.memory_space<vmem>>, vector<16x16x288xf32>,
    %45 = vector.extract_strided_slice %42 {offsets = [0, 0, 0], sizes = [15, 15, 32], strides = [1, 1, 1]} : vector<16x16x32xf32> to vector<15x15x32xf32>
    %c1_71 = arith.constant 1 : index
    %c1_72 = arith.constant 1 : index
    %c0_73 = arith.constant 0 : index
    %46 = vector.load %arg10[%c1_71, %c1_72, %c0_73] : memref<16x16x288xf32, #tpu.memory_space<vmem>>, vector<15x15x32xf32>
    tpu.vector_store %arg10[%c1_71, %c1_72, %c0_73], %45 {strides = array<i32>} : memref<16x16x288xf32, #tpu.memory_space<vmem>>, vector<15x15x32xf32>,
    %47 = vector.extract_strided_slice %42 {offsets = [0, 0, 0], sizes = [15, 16, 32], strides = [1, 1, 1]} : vector<16x16x32xf32> to vector<15x16x32xf32>
    %c1_74 = arith.constant 1 : index
    %c0_75 = arith.constant 0 : index
    %c32_76 = arith.constant 32 : index
    %48 = vector.load %arg10[%c1_74, %c0_75, %c32_76] : memref<16x16x288xf32, #tpu.memory_space<vmem>>, vector<15x16x32xf32>
    tpu.vector_store %arg10[%c1_74, %c0_75, %c32_76], %47 {strides = array<i32>} : memref<16x16x288xf32, #tpu.memory_space<vmem>>, vector<15x16x32xf32>,
    %49 = vector.extract_strided_slice %42 {offsets = [0, 1, 0], sizes = [15, 15, 32], strides = [1, 1, 1]} : vector<16x16x32xf32> to vector<15x15x32xf32>
    %c1_77 = arith.constant 1 : index
    %c0_78 = arith.constant 0 : index
    %c64 = arith.constant 64 : index
    %50 = vector.load %arg10[%c1_77, %c0_78, %c64] : memref<16x16x288xf32, #tpu.memory_space<vmem>>, vector<15x15x32xf32>
    tpu.vector_store %arg10[%c1_77, %c0_78, %c64], %49 {strides = array<i32>} : memref<16x16x288xf32, #tpu.memory_space<vmem>>, vector<15x15x32xf32>,
    %51 = vector.extract_strided_slice %42 {offsets = [0, 0, 0], sizes = [16, 15, 32], strides = [1, 1, 1]} : vector<16x16x32xf32> to vector<16x15x32xf32>
    %c0_79 = arith.constant 0 : index
    %c1_80 = arith.constant 1 : index
    %c96 = arith.constant 96 : index
    %52 = vector.load %arg10[%c0_79, %c1_80, %c96] : memref<16x16x288xf32, #tpu.memory_space<vmem>>, vector<16x15x32xf32>
    tpu.vector_store %arg10[%c0_79, %c1_80, %c96], %51 {strides = array<i32>} : memref<16x16x288xf32, #tpu.memory_space<vmem>>, vector<16x15x32xf32>,
    %c0_81 = arith.constant 0 : index
    %c0_82 = arith.constant 0 : index
    %c128 = arith.constant 128 : index
    %53 = vector.load %arg10[%c0_81, %c0_82, %c128] : memref<16x16x288xf32, #tpu.memory_space<vmem>>, vector<16x16x32xf32>
    tpu.vector_store %arg10[%c0_81, %c0_82, %c128], %42 {strides = array<i32>} : memref<16x16x288xf32, #tpu.memory_space<vmem>>, vector<16x16x32xf32>,
    %54 = vector.extract_strided_slice %42 {offsets = [0, 1, 0], sizes = [16, 15, 32], strides = [1, 1, 1]} : vector<16x16x32xf32> to vector<16x15x32xf32>
    %c0_83 = arith.constant 0 : index
    %c0_84 = arith.constant 0 : index
    %c160 = arith.constant 160 : index
    %55 = vector.load %arg10[%c0_83, %c0_84, %c160] : memref<16x16x288xf32, #tpu.memory_space<vmem>>, vector<16x15x32xf32>
    tpu.vector_store %arg10[%c0_83, %c0_84, %c160], %54 {strides = array<i32>} : memref<16x16x288xf32, #tpu.memory_space<vmem>>, vector<16x15x32xf32>,
    %56 = vector.extract_strided_slice %42 {offsets = [1, 0, 0], sizes = [15, 15, 32], strides = [1, 1, 1]} : vector<16x16x32xf32> to vector<15x15x32xf32>
    %c0_85 = arith.constant 0 : index
    %c1_86 = arith.constant 1 : index
    %c192 = arith.constant 192 : index
    %57 = vector.load %arg10[%c0_85, %c1_86, %c192] : memref<16x16x288xf32, #tpu.memory_space<vmem>>, vector<15x15x32xf32>
    tpu.vector_store %arg10[%c0_85, %c1_86, %c192], %56 {strides = array<i32>} : memref<16x16x288xf32, #tpu.memory_space<vmem>>, vector<15x15x32xf32>,
    %58 = vector.extract_strided_slice %42 {offsets = [1, 0, 0], sizes = [15, 16, 32], strides = [1, 1, 1]} : vector<16x16x32xf32> to vector<15x16x32xf32>
    %c0_87 = arith.constant 0 : index
    %c0_88 = arith.constant 0 : index
    %c224 = arith.constant 224 : index
    %59 = vector.load %arg10[%c0_87, %c0_88, %c224] : memref<16x16x288xf32, #tpu.memory_space<vmem>>, vector<15x16x32xf32>
    tpu.vector_store %arg10[%c0_87, %c0_88, %c224], %58 {strides = array<i32>} : memref<16x16x288xf32, #tpu.memory_space<vmem>>, vector<15x16x32xf32>,
    %60 = vector.extract_strided_slice %42 {offsets = [1, 1, 0], sizes = [15, 15, 32], strides = [1, 1, 1]} : vector<16x16x32xf32> to vector<15x15x32xf32>
    %c0_89 = arith.constant 0 : index
    %c0_90 = arith.constant 0 : index
    %c256 = arith.constant 256 : index
    %61 = vector.load %arg10[%c0_89, %c0_90, %c256] : memref<16x16x288xf32, #tpu.memory_space<vmem>>, vector<15x15x32xf32>
    tpu.vector_store %arg10[%c0_89, %c0_90, %c256], %60 {strides = array<i32>} : memref<16x16x288xf32, #tpu.memory_space<vmem>>, vector<15x15x32xf32>,
    %c0_91 = arith.constant 0 : index
    %c0_92 = arith.constant 0 : index
    %c0_93 = arith.constant 0 : index
    %62 = vector.load %arg10[%c0_91, %c0_92, %c0_93] : memref<16x16x288xf32, #tpu.memory_space<vmem>>, vector<16x16x288xf32>
    %63 = vector.shape_cast %62 : vector<16x16x288xf32> to vector<256x288xf32>
    %64 = arith.truncf %63 : vector<256x288xf32> to vector<256x288xbf16>
    %c0_94 = arith.constant 0 : index
    %c0_95 = arith.constant 0 : index
    %65 = vector.load %arg3[%c0_94, %c0_95] : memref<288x8xbf16, #tpu.memory_space<vmem>>, vector<288x8xbf16>
    %cst_96 = arith.constant dense<0.000000e+00> : vector<256x8xf32>
    %66 = tpu.matmul %64, %65, %cst_96 {dimension_numbers = #tpu.dot_dimension_numbers<[1], [0], [0], [1], [0, 0, 1, 1], [], []>} : vector<256x288xbf16>, vector<288x8xbf16>, vector<256x8xf32> -> vector<256x8xf32>
    %cst_97 = arith.constant 0.000000e+00 : f32
    %67 = vector.broadcast %cst_97 : f32 to vector<256x8xf32>
    %68 = arith.maximumf %66, %67 : vector<256x8xf32>
    %c0_98 = arith.constant 0 : index
    %c0_99 = arith.constant 0 : index
    %69 = vector.load %arg6[%c0_98, %c0_99] : memref<1x8xf32, #tpu.memory_space<vmem>>, vector<1x8xf32>
    %70 = vector.broadcast %69 : vector<1x8xf32> to vector<256x8xf32>
    %71 = arith.mulf %68, %70 : vector<256x8xf32>
    %c0_100 = arith.constant 0 : index
    %c0_101 = arith.constant 0 : index
    %72 = vector.load %arg7[%c0_100, %c0_101] : memref<1x8xf32, #tpu.memory_space<vmem>>, vector<1x8xf32>
    %73 = vector.broadcast %72 : vector<1x8xf32> to vector<256x8xf32>
    %74 = arith.addf %71, %73 : vector<256x8xf32>
    %c0_102 = arith.constant 0 : index
    %c0_103 = arith.constant 0 : index
    %c0_104 = arith.constant 0 : index
    %75 = vector.load %arg8[%c0_102, %c0_103, %c0_104] : memref<1x256x8xf32, #tpu.memory_space<vmem>>, vector<1x256x8xf32>
    %76 = vector.shape_cast %75 : vector<1x256x8xf32> to vector<256x8xf32>
    %77 = vector.shape_cast %74 : vector<256x8xf32> to vector<1x256x8xf32>
    tpu.vector_store %arg8[%c0_102, %c0_103, %c0_104], %77 {strides = array<i32>} : memref<1x256x8xf32, #tpu.memory_space<vmem>>, vector<1x256x8xf32>,
    return
  }
  func.func @transform_0(%arg0: i32) -> (i32, i32, i32, i32) {
    %c0_i32 = arith.constant 0 : i32
    %c0_i32_0 = arith.constant 0 : i32
    %c0_i32_1 = arith.constant 0 : i32
    %c0_i32_2 = arith.constant 0 : i32
    return %arg0, %c0_i32, %c0_i32_0, %c0_i32_1 : i32, i32, i32, i32
  }
  func.func @transform_1(%arg0: i32) -> (i32, i32) {
    %c0_i32 = arith.constant 0 : i32
    %c0_i32_0 = arith.constant 0 : i32
    %c0_i32_1 = arith.constant 0 : i32
    return %c0_i32, %c0_i32_0 : i32, i32
  }
  func.func @transform_2(%arg0: i32) -> (i32, i32) {
    %c0_i32 = arith.constant 0 : i32
    %c0_i32_0 = arith.constant 0 : i32
    %c0_i32_1 = arith.constant 0 : i32
    return %c0_i32, %c0_i32_0 : i32, i32
  }
  func.func @transform_3(%arg0: i32) -> (i32, i32) {
    %c0_i32 = arith.constant 0 : i32
    %c0_i32_0 = arith.constant 0 : i32
    %c0_i32_1 = arith.constant 0 : i32
    return %c0_i32, %c0_i32_0 : i32, i32
  }
  func.func @transform_4(%arg0: i32) -> (i32, i32) {
    %c0_i32 = arith.constant 0 : i32
    %c0_i32_0 = arith.constant 0 : i32
    %c0_i32_1 = arith.constant 0 : i32
    return %c0_i32, %c0_i32_0 : i32, i32
  }
  func.func @transform_5(%arg0: i32) -> (i32, i32) {
    %c0_i32 = arith.constant 0 : i32
    %c0_i32_0 = arith.constant 0 : i32
    %c0_i32_1 = arith.constant 0 : i32
    return %c0_i32, %c0_i32_0 : i32, i32
  }
  func.func @transform_6(%arg0: i32) -> (i32, i32) {
    %c0_i32 = arith.constant 0 : i32
    %c0_i32_0 = arith.constant 0 : i32
    %c0_i32_1 = arith.constant 0 : i32
    return %c0_i32, %c0_i32_0 : i32, i32
  }
  func.func @transform_7(%arg0: i32) -> (i32, i32, i32) {
    %c0_i32 = arith.constant 0 : i32
    %c0_i32_0 = arith.constant 0 : i32
    %c0_i32_1 = arith.constant 0 : i32
    return %arg0, %c0_i32, %c0_i32_0 : i32, i32, i32
  }
}

</mosaic_0001>

<bundles_post_ra>
// kernel: tpu_custom_call.1
= control target key start
LH: loop header
LB: loop body
LE: loop exit
PB: predicated region body
PF: predicated region fallthrough
CT: control target
= control target key end

     0   :  { %s4740_s24 = smov 0   ;;  %s7214_s0 = inlined_call_operand.vmem [shape: f32[2,16,16,4], index: 0, kind: input, shape index: {}]   ;;  %s7215_s1 = inlined_call_operand.vmem [shape: bf16[36,32], index: 1, kind: input, shape index: {}]   ;;  %s7216_s2 = inlined_call_operand.vmem [shape: bf16[288,8], index: 2, kind: input, shape index: {}]   ;;  %s7217_s3 = inlined_call_operand.vmem [shape: f32[1,32], index: 3, kind: input, shape index: {}]   ;;  %s7218_s4 = inlined_call_operand.vmem [shape: f32[1,32], index: 4, kind: input, shape index: {}]   ;;  %s7219_s5 = inlined_call_operand.vmem [shape: f32[1,8], index: 5, kind: input, shape index: {}]   ;;  %s7220_s6 = inlined_call_operand.vmem [shape: f32[1,8], index: 6, kind: input, shape index: {}]   ;;  %s7221_s7 = inlined_call_operand.vmem [shape: f32[2,256,8], index: 7, kind: output, shape index: {}]  }
   0x1 LB: > { %s4238_s25 = sadd.s32 4294967295, %s4687_s24   ;;  %p4242_p0 = scmp.ge.s32.totalorder %s4687_s24, 1  ;;  %s4687_s24 = sphi %s4740_s24, %s17_s24  }
   0x2   : > { %p237_p1 = scmp.lt.s32.totalorder %s4687_s24, 3 }
   0x4   : > { %p238_p2 = pnand %p4242_p0, %p237_p1 }
   0x5   : > { %p4750_p3 = scmp.lt.s32.totalorder (!%p238_p2), %s4238_s25, 1  ;;  %s4690_s8 = smov (!%p238_p2), 4  }
   0x6   : > { %241 = sbr.rel (%p238_p2) target bundleno = 1296 (0x510), region = 48  ;;  %s4691_s9 = smov (!%p238_p2), 8  }
   0x7   : > { %s4692_s10 = smov (!%p238_p2), 12   ;;  %s4693_s11 = smov (!%p238_p2), 16  }
   0x8   : > { %s4694_s12 = smov (!%p238_p2), 20   ;;  %s4695_s13 = smov (!%p238_p2), 24  }
   0x9   : > { %s4696_s18 = smov (!%p238_p2), 28   ;;  %s4697_s21 = smov (!%p238_p2), 32  }
   0xa   : > { %s4699_s16 = smov (!%p238_p2), 96  }
   0xb   : > { %vm280_vm0 = vcmask 293888   ;;  %v4689_v0 = vmov 0.0   ;;  %s7224_s25 = smov (!%p4750_p3, %s4238_s25), 1  ;;  %vm344_vm1 = vcmask 31744   ;;  %vm346_vm2 = vcmask 30720  }
   0xc   : > { %285 = vst.msk [vmem:[#allocation2 + $0x20] sm:$0xff] %vm280_vm0, %v4689_v0  ;;  %286 = vst.msk [vmem:[#allocation2 + $0x28] sm:$0xff] %vm280_vm0, %v4689_v0  ;;  %s4396_s27 = sshll.u32 %s7224_s25, 8  ;;  %vm526_vm3 = vcmask 64544   ;;  %vm709_vm4 = vcmask 96320   ;;  %vm707_vm5 = vcmask 97344  }
   0xd   : > { %281 = vst.msk [vmem:[#allocation2] sm:$0xff] %vm280_vm0, %v4689_v0  ;;  %282 = vst.msk [vmem:[#allocation2 + $0x8] sm:$0xff] %vm280_vm0, %v4689_v0  ;;  %s4894_s30 = scalar_lea.vmem %s7214_s0, %s4396_s27  ;;  %vm1982_vm6 = vcmask 1041408   ;;  %vm901_vm7 = vcmask 129120   ;;  %vm899_vm8 = vcmask 130144   ;;  %vm1093_vm9 = vcmask 162944   ;;  %s7065_s15 = scalar_lea.vmem %s7221_s7, %s4396_s27 }
   0xe   : > { %283 = vst.msk [vmem:[#allocation2 + $0x10] sm:$0xff] %vm280_vm0, %v4689_v0  ;;  %284 = vst.msk [vmem:[#allocation2 + $0x18] sm:$0xff] %vm280_vm0, %v4689_v0  ;;  %v4897_v1 = vld [vmem:[%s4894_s30 + $0x10] sm:$0xff]  ;;  %v4900_v2 = vld [vmem:[%s4894_s30] sm:$0xff]  ;;  %vm1288_vm10 = vcmask 194720   ;;  %vm1286_vm11 = vcmask 195744  }
   0xf   : > { %287 = vst.msk [vmem:[#allocation2 + $0x30] sm:$0xff] %vm280_vm0, %v4689_v0  ;;  %288 = vst.msk [vmem:[#allocation2 + $0x38] sm:$0xff] %vm280_vm0, %v4689_v0  ;;  %440 = vrot.lane.b32.xlu1 %v4897_v1, %s4690_s8  ;;  %436 = vrot.lane.b32.xlu0 %v4900_v2, %s4690_s8  ;;  %v4907_v3 = vld [vmem:[%s4894_s30 + $0x18] sm:$0xff]  ;;  %v4914_v4 = vld [vmem:[%s4894_s30 + $0x8] sm:$0xff]  ;;  %vm1473_vm12 = vcmask 227520   ;;  %vm1471_vm13 = vcmask 228544  }
  0x10   : > { %289 = vst.msk [vmem:[#allocation2 + $0x40] sm:$0xff] %vm280_vm0, %v4689_v0  ;;  %290 = vst.msk [vmem:[#allocation2 + $0x48] sm:$0xff] %vm280_vm0, %v4689_v0  ;;  %v4917_v5 = vld [vmem:[%s4894_s30 + $0x20] sm:$0xff]  ;;  %v4920_v6 = vld [vmem:[%s4894_s30 + $0x30] sm:$0xff]  ;;  %vm1653_vm14 = vcmask 261344   ;;  %vm1836_vm15 = vcmask 293120  }
  0x11   : > { %291 = vst.msk [vmem:[#allocation2 + $0x50] sm:$0xff] %vm280_vm0, %v4689_v0  ;;  %292 = vst.msk [vmem:[#allocation2 + $0x58] sm:$0xff] %vm280_vm0, %v4689_v0  ;;  %v4923_v7 = vld [vmem:[%s4894_s30 + $0x40] sm:$0xff]  ;;  %v4930_v8 = vld [vmem:[%s4894_s30 + $0x50] sm:$0xff] }
  0x12   : > { %293 = vst.msk [vmem:[#allocation2 + $0x60] sm:$0xff] %vm280_vm0, %v4689_v0  ;;  %294 = vst.msk [vmem:[#allocation2 + $0x68] sm:$0xff] %vm280_vm0, %v4689_v0  ;;  %v4933_v9 = vld [vmem:[%s4894_s30 + $0x60] sm:$0xff]  ;;  %v4942_v10 = vld [vmem:[%s4894_s30 + $0x70] sm:$0xff] }
  0x13   : > { %295 = vst.msk [vmem:[#allocation2 + $0x70] sm:$0xff] %vm280_vm0, %v4689_v0  ;;  %296 = vst.msk [vmem:[#allocation2 + $0x78] sm:$0xff] %vm280_vm0, %v4689_v0  ;;  %442 = vrot.lane.b32.xlu1 %v4907_v3, %s4690_s8  ;;  %438 = vrot.lane.b32.xlu0 %v4914_v4, %s4690_s8  ;;  %v4949_v11 = vld [vmem:[%s4894_s30 + $0x28] sm:$0xff]  ;;  %v4952_v12 = vld [vmem:[%s4894_s30 + $0x80] sm:$0xff] }
  0x14   : > { %297 = vst.msk [vmem:[#allocation2 + $0x80] sm:$0xff] %vm280_vm0, %v4689_v0  ;;  %298 = vst.msk [vmem:[#allocation2 + $0x88] sm:$0xff] %vm280_vm0, %v4689_v0  ;;  %v4957_v13 = vld [vmem:[%s4894_s30 + $0x90] sm:$0xff]  ;;  %v4960_v14 = vld [vmem:[%s4894_s30 + $0xa0] sm:$0xff] }
  0x15   : > { %299 = vst.msk [vmem:[#allocation2 + $0x90] sm:$0xff] %vm280_vm0, %v4689_v0  ;;  %300 = vst.msk [vmem:[#allocation2 + $0x98] sm:$0xff] %vm280_vm0, %v4689_v0  ;;  %v4965_v15 = vld [vmem:[%s4894_s30 + $0xb0] sm:$0xff]  ;;  %v4976_v16 = vld [vmem:[%s4894_s30 + $0xc0] sm:$0xff] }
  0x16   : > { %301 = vst.msk [vmem:[#allocation2 + $0xa0] sm:$0xff] %vm280_vm0, %v4689_v0  ;;  %302 = vst.msk [vmem:[#allocation2 + $0xa8] sm:$0xff] %vm280_vm0, %v4689_v0  ;;  %v4981_v17 = vld [vmem:[%s4894_s30 + $0x38] sm:$0xff]  ;;  %v4984_v18 = vld [vmem:[%s4894_s30 + $0xd0] sm:$0xff] }
  0x17   : > { %303 = vst.msk [vmem:[#allocation2 + $0xb0] sm:$0xff] %vm280_vm0, %v4689_v0  ;;  %304 = vst.msk [vmem:[#allocation2 + $0xb8] sm:$0xff] %vm280_vm0, %v4689_v0  ;;  %446 = vrot.lane.b32.xlu1 %v4949_v11, %s4690_s8  ;;  %444 = vrot.lane.b32.xlu0 %v4917_v5, %s4690_s8  ;;  %v4987_v19 = vld [vmem:[%s4894_s30 + $0xe0] sm:$0xff]  ;;  %v385_v20 = vld [vmem:[%s4894_s30 + $0x48] sm:$0xff] }
  0x18   : > { %305 = vst.msk [vmem:[#allocation2 + $0xc0] sm:$0xff] %vm280_vm0, %v4689_v0  ;;  %306 = vst.msk [vmem:[#allocation2 + $0xc8] sm:$0xff] %vm280_vm0, %v4689_v0  ;;  %v387_v21 = vld [vmem:[%s4894_s30 + $0x58] sm:$0xff]  ;;  %v389_v22 = vld [vmem:[%s4894_s30 + $0x68] sm:$0xff] }
  0x19   : > { %307 = vst.msk [vmem:[#allocation2 + $0xd0] sm:$0xff] %vm280_vm0, %v4689_v0  ;;  %308 = vst.msk [vmem:[#allocation2 + $0xd8] sm:$0xff] %vm280_vm0, %v4689_v0  ;;  %v316_v23 = vld [vmem:[%s4894_s30 + $0x18] sm:$0x7f]  ;;  %v314_v24 = vld [vmem:[%s4894_s30 + $0x8] sm:$0x7f] }
  0x1a   : > { %309 = vst.msk [vmem:[#allocation2 + $0xe0] sm:$0xff] %vm280_vm0, %v4689_v0  ;;  %310 = vst.msk [vmem:[#allocation2 + $0xe8] sm:$0xff] %vm280_vm0, %v4689_v0  ;;  %v318_v25 = vld [vmem:[%s4894_s30 + $0x28] sm:$0x7f]  ;;  %v320_v26 = vld [vmem:[%s4894_s30 + $0x38] sm:$0x7f] }
  0x1b   : > { %311 = vst.msk [vmem:[#allocation2 + $0xf0] sm:$0xff] %vm280_vm0, %v4689_v0  ;;  %312 = vst.msk [vmem:[#allocation2 + $0xf8] sm:$0xff] %vm280_vm0, %v4689_v0  ;;  %450 = vrot.lane.b32.xlu1 %v4981_v17, %s4690_s8  ;;  %448 = vrot.lane.b32.xlu0 %v4920_v6, %s4690_s8  ;;  %v322_v27 = vld [vmem:[%s4894_s30 + $0x48] sm:$0x7f]  ;;  %v324_v28 = vld [vmem:[%s4894_s30 + $0x58] sm:$0x7f] }
  0x1c   : > { %2257 = vst [vmem:[#allocation3] sm:$0xff] %v4689_v0  ;;  %2258 = vst [vmem:[#allocation3 + $0x8] sm:$0xff] %v4689_v0  ;;  %v391_v29 = vld [vmem:[%s4894_s30 + $0x78] sm:$0xff]  ;;  %v326_v30 = vld [vmem:[%s4894_s30 + $0x68] sm:$0x7f] }
  0x1d   : > { %2261 = vst [vmem:[#allocation3 + $0x18] sm:$0xff] %v4689_v0  ;;  %2262 = vst [vmem:[#allocation3 + $0x20] sm:$0xff] %v4689_v0  ;;  %v328_v31 = vld [vmem:[%s4894_s30 + $0x78] sm:$0x7f]  ;;  %v330_v32 = vld [vmem:[%s4894_s30 + $0x88] sm:$0x7f] }
  0x1e   : > { %2264 = vst [vmem:[#allocation3 + $0x30] sm:$0xff] %v4689_v0  ;;  %2265 = vst [vmem:[#allocation3 + $0x38] sm:$0xff] %v4689_v0  ;;  %v332_v33 = vld [vmem:[%s4894_s30 + $0x98] sm:$0x7f]  ;;  %v334_v34 = vld [vmem:[%s4894_s30 + $0xa8] sm:$0x7f] }
  0x1f   : > { %2267 = vst [vmem:[#allocation3 + $0x48] sm:$0xff] %v4689_v0  ;;  %2268 = vst [vmem:[#allocation3 + $0x50] sm:$0xff] %v4689_v0  ;;  %454 = vrot.lane.b32.xlu1 %v385_v20, %s4690_s8  ;;  %452 = vrot.lane.b32.xlu0 %v4923_v7, %s4690_s8  ;;  %v393_v35 = vld [vmem:[%s4894_s30 + $0x88] sm:$0xff]  ;;  %v336_v36 = vld [vmem:[%s4894_s30 + $0xb8] sm:$0x7f] }
  0x20   : > { %2270 = vst [vmem:[#allocation3 + $0x60] sm:$0xff] %v4689_v0  ;;  %2271 = vst [vmem:[#allocation3 + $0x68] sm:$0xff] %v4689_v0  ;;  %v395_v37 = vld [vmem:[%s4894_s30 + $0x98] sm:$0xff]  ;;  %v338_v38 = vld [vmem:[%s4894_s30 + $0xc8] sm:$0x7f] }
  0x21   : > { %2273 = vst [vmem:[#allocation3 + $0x78] sm:$0xff] %v4689_v0  ;;  %2274 = vst [vmem:[#allocation3 + $0x80] sm:$0xff] %v4689_v0  ;;  %v397_v39 = vld [vmem:[%s4894_s30 + $0xa8] sm:$0xff]  ;;  %v340_v40 = vld [vmem:[%s4894_s30 + $0xd8] sm:$0x7f] }
  0x22   : > { %2276 = vst [vmem:[#allocation3 + $0x90] sm:$0xff] %v4689_v0  ;;  %2277 = vst [vmem:[#allocation3 + $0x98] sm:$0xff] %v4689_v0  ;;  %v399_v41 = vld [vmem:[%s4894_s30 + $0xb8] sm:$0xff]  ;;  %v342_v42 = vld [vmem:[%s4894_s30 + $0xe8] sm:$0x7f] }
  0x23   : > { %2279 = vst [vmem:[#allocation3 + $0xa8] sm:$0xff] %v4689_v0  ;;  %2280 = vst [vmem:[#allocation3 + $0xb0] sm:$0xff] %v4689_v0  ;;  %458 = vrot.lane.b32.xlu1 %v387_v21, %s4690_s8  ;;  %456 = vrot.lane.b32.xlu0 %v4930_v8, %s4690_s8  ;;  %v401_v43 = vld [vmem:[%s4894_s30 + $0xc8] sm:$0xff]  ;;  %v403_v44 = vld [vmem:[%s4894_s30 + $0xd8] sm:$0xff] }
  0x24   : > { %2282 = vst [vmem:[#allocation3 + $0xc0] sm:$0xff] %v4689_v0  ;;  %2283 = vst [vmem:[#allocation3 + $0xc8] sm:$0xff] %v4689_v0  ;;  %v405_v45 = vld [vmem:[%s4894_s30 + $0xe8] sm:$0xff]  ;;  %v560_v48 = vld [vmem:[%s4894_s30 + $0x19] sm:$0x7f] }
  0x25   : > { %2285 = vst [vmem:[#allocation3 + $0xd8] sm:$0xff] %v4689_v0  ;;  %2286 = vst [vmem:[#allocation3 + $0xe0] sm:$0xff] %v4689_v0  ;;  %v558_v46 = vld [vmem:[%s4894_s30 + $0x9] sm:$0x7f]  ;;  %v5075_v47 = vld [vmem:[%s4894_s30 + $0x1] sm:$0xff] }
  0x26   : > { %2288 = vst [vmem:[#allocation3 + $0xf0] sm:$0xff] %v4689_v0  ;;  %2289 = vst [vmem:[#allocation3 + $0xf8] sm:$0xff] %v4689_v0  ;;  %v5082_v49 = vld [vmem:[%s4894_s30 + $0x11] sm:$0xff]  ;;  %v562_v50 = vld [vmem:[%s4894_s30 + $0x29] sm:$0x7f] }
  0x27   : > { %2291 = vst [vmem:[#allocation3 + $0x108] sm:$0xff] %v4689_v0  ;;  %2292 = vst [vmem:[#allocation3 + $0x110] sm:$0xff] %v4689_v0  ;;  %462 = vrot.lane.b32.xlu1 %v389_v22, %s4690_s8  ;;  %460 = vrot.lane.b32.xlu0 %v4933_v9, %s4690_s8  ;;  %v5089_v51 = vld [vmem:[%s4894_s30 + $0x21] sm:$0xff]  ;;  %v564_v52 = vld [vmem:[%s4894_s30 + $0x39] sm:$0x7f] }
  0x28   : > { %2294 = vst [vmem:[#allocation3 + $0x120] sm:$0xff] %v4689_v0  ;;  %2295 = vst [vmem:[#allocation3 + $0x128] sm:$0xff] %v4689_v0  ;;  %v5096_v53 = vld [vmem:[%s4894_s30 + $0x31] sm:$0xff]  ;;  %v566_v54 = vld [vmem:[%s4894_s30 + $0x49] sm:$0x7f] }
  0x29   : > { %2297 = vst [vmem:[#allocation3 + $0x138] sm:$0xff] %v4689_v0  ;;  %2298 = vst [vmem:[#allocation3 + $0x140] sm:$0xff] %v4689_v0  ;;  %v5103_v55 = vld [vmem:[%s4894_s30 + $0x41] sm:$0xff]  ;;  %v568_v56 = vld [vmem:[%s4894_s30 + $0x59] sm:$0x7f] }
  0x2a   : > { %2300 = vst [vmem:[#allocation3 + $0x150] sm:$0xff] %v4689_v0  ;;  %2301 = vst [vmem:[#allocation3 + $0x158] sm:$0xff] %v4689_v0  ;;  %v567_v57 = vld [vmem:[%s4894_s30 + $0x51] sm:$0xff]  ;;  %v570_v58 = vld [vmem:[%s4894_s30 + $0x69] sm:$0x7f] }
  0x2b   : > { %2303 = vst [vmem:[#allocation3 + $0x168] sm:$0xff] %v4689_v0  ;;  %2304 = vst [vmem:[#allocation3 + $0x170] sm:$0xff] %v4689_v0  ;;  %466 = vrot.lane.b32.xlu1 %v391_v29, %s4690_s8  ;;  %464 = vrot.lane.b32.xlu0 %v4942_v10, %s4690_s8  ;;  %v569_v59 = vld [vmem:[%s4894_s30 + $0x61] sm:$0xff]  ;;  %v572_v60 = vld [vmem:[%s4894_s30 + $0x79] sm:$0x7f] }
  0x2c   : > { %2306 = vst [vmem:[#allocation3 + $0x180] sm:$0xff] %v4689_v0  ;;  %2307 = vst [vmem:[#allocation3 + $0x188] sm:$0xff] %v4689_v0  ;;  %v571_v61 = vld [vmem:[%s4894_s30 + $0x71] sm:$0xff]  ;;  %v574_v62 = vld [vmem:[%s4894_s30 + $0x89] sm:$0x7f] }
  0x2d   : > { %2309 = vst [vmem:[#allocation3 + $0x198] sm:$0xff] %v4689_v0  ;;  %2310 = vst [vmem:[#allocation3 + $0x1a0] sm:$0xff] %v4689_v0  ;;  %v573_v63 = vld [vmem:[%s4894_s30 + $0x81] sm:$0xff]  ;;  %v575_v20 = vld [vmem:[%s4894_s30 + $0x91] sm:$0xff] }
  0x2e   : > { %2312 = vst [vmem:[#allocation3 + $0x1b0] sm:$0xff] %v4689_v0  ;;  %2313 = vst [vmem:[#allocation3 + $0x1b8] sm:$0xff] %v4689_v0  ;;  %v578_v21 = vld [vmem:[%s4894_s30 + $0xa9] sm:$0x7f]  ;;  %v577_v22 = vld [vmem:[%s4894_s30 + $0xa1] sm:$0xff] }
  0x2f   : > { %2315 = vst [vmem:[#allocation3 + $0x1c8] sm:$0xff] %v4689_v0  ;;  %2316 = vst [vmem:[#allocation3 + $0x1d0] sm:$0xff] %v4689_v0  ;;  %470 = vrot.lane.b32.xlu1 %v393_v35, %s4690_s8  ;;  %468 = vrot.lane.b32.xlu0 %v4952_v12, %s4690_s8  ;;  %v586_v29 = vld [vmem:[%s4894_s30 + $0xe9] sm:$0x7f] }
  0x30   : > { %2318 = vst [vmem:[#allocation3 + $0x1e0] sm:$0xff] %v4689_v0  ;;  %2319 = vst [vmem:[#allocation3 + $0x1e8] sm:$0xff] %v4689_v0 }
  0x31   : > { %2321 = vst [vmem:[#allocation3 + $0x1f8] sm:$0xff] %v4689_v0  ;;  %2322 = vst [vmem:[#allocation3 + $0x200] sm:$0xff] %v4689_v0 }
  0x32   : > { %2324 = vst [vmem:[#allocation3 + $0x210] sm:$0xff] %v4689_v0  ;;  %2325 = vst [vmem:[#allocation3 + $0x218] sm:$0xff] %v4689_v0 }
  0x33   : > { %2327 = vst [vmem:[#allocation3 + $0x228] sm:$0xff] %v4689_v0  ;;  %2328 = vst [vmem:[#allocation3 + $0x230] sm:$0xff] %v4689_v0  ;;  %474 = vrot.lane.b32.xlu1 %v395_v37, %s4690_s8  ;;  %472 = vrot.lane.b32.xlu0 %v4957_v13, %s4690_s8 }
  0x34   : > { %2330 = vst [vmem:[#allocation3 + $0x240] sm:$0xff] %v4689_v0  ;;  %2331 = vst [vmem:[#allocation3 + $0x248] sm:$0xff] %v4689_v0 }
  0x35   : > { %2333 = vst [vmem:[#allocation3 + $0x258] sm:$0xff] %v4689_v0  ;;  %2334 = vst [vmem:[#allocation3 + $0x260] sm:$0xff] %v4689_v0 }
  0x36   : > { %2336 = vst [vmem:[#allocation3 + $0x270] sm:$0xff] %v4689_v0  ;;  %2337 = vst [vmem:[#allocation3 + $0x278] sm:$0xff] %v4689_v0 }
  0x37   : > { %2339 = vst [vmem:[#allocation3 + $0x288] sm:$0xff] %v4689_v0  ;;  %2340 = vst [vmem:[#allocation3 + $0x290] sm:$0xff] %v4689_v0  ;;  %478 = vrot.lane.b32.xlu1 %v397_v39, %s4690_s8  ;;  %476 = vrot.lane.b32.xlu0 %v4960_v14, %s4690_s8  ;;  %v744_v39 = vld [vmem:[%s4894_s30 + $0x28] sm:$0x7f] }
  0x38   : > { %2342 = vst [vmem:[#allocation3 + $0x2a0] sm:$0xff] %v4689_v0  ;;  %2343 = vst [vmem:[#allocation3 + $0x2a8] sm:$0xff] %v4689_v0 }
  0x39   : > { %2345 = vst [vmem:[#allocation3 + $0x2b8] sm:$0xff] %v4689_v0  ;;  %2346 = vst [vmem:[#allocation3 + $0x2c0] sm:$0xff] %v4689_v0 }
  0x3a   : > { %2348 = vst [vmem:[#allocation3 + $0x2d0] sm:$0xff] %v4689_v0  ;;  %2349 = vst [vmem:[#allocation3 + $0x2d8] sm:$0xff] %v4689_v0 }
  0x3b   : > { %2351 = vst [vmem:[#allocation3 + $0x2e8] sm:$0xff] %v4689_v0  ;;  %2352 = vst [vmem:[#allocation3 + $0x2f0] sm:$0xff] %v4689_v0  ;;  %482 = vrot.lane.b32.xlu1 %v399_v41, %s4690_s8  ;;  %480 = vrot.lane.b32.xlu0 %v4965_v15, %s4690_s8  ;;  %v576_v0 = vld [vmem:[%s4894_s30 + $0x99] sm:$0x7f] }
  0x3c   : > { %348 = vst.msk [vmem:[#allocation2 + $0x21] sm:$0xff] %vm344_vm1, %v4897_v1  ;;  %345 = vst.msk [vmem:[#allocation2 + $0x11] sm:$0xff] %vm344_vm1, %v4900_v2 }
  0x3d   : > { %350 = vst.msk [vmem:[#allocation2 + $0x31] sm:$0xff] %vm344_vm1, %v4917_v5  ;;  %352 = vst.msk [vmem:[#allocation2 + $0x41] sm:$0xff] %vm344_vm1, %v4920_v6 }
  0x3e   : > { %354 = vst.msk [vmem:[#allocation2 + $0x51] sm:$0xff] %vm344_vm1, %v4923_v7  ;;  %356 = vst.msk [vmem:[#allocation2 + $0x61] sm:$0xff] %vm344_vm1, %v4930_v8 }
  0x3f   : > { %358 = vst.msk [vmem:[#allocation2 + $0x71] sm:$0xff] %vm344_vm1, %v4933_v9  ;;  %360 = vst.msk [vmem:[#allocation2 + $0x81] sm:$0xff] %vm344_vm1, %v4942_v10  ;;  %486 = vrot.lane.b32.xlu1 %v401_v43, %s4690_s8  ;;  %484 = vrot.lane.b32.xlu0 %v4976_v16, %s4690_s8 }
  0x40   : > { %362 = vst.msk [vmem:[#allocation2 + $0x91] sm:$0xff] %vm344_vm1, %v4952_v12  ;;  %364 = vst.msk [vmem:[#allocation2 + $0xa1] sm:$0xff] %vm344_vm1, %v4957_v13 }
  0x41   : > { %366 = vst.msk [vmem:[#allocation2 + $0xb1] sm:$0xff] %vm344_vm1, %v4960_v14  ;;  %368 = vst.msk [vmem:[#allocation2 + $0xc1] sm:$0xff] %vm344_vm1, %v4965_v15 }
  0x42   : > { %370 = vst.msk [vmem:[#allocation2 + $0xd1] sm:$0xff] %vm344_vm1, %v4976_v16  ;;  %372 = vst.msk [vmem:[#allocation2 + $0xe1] sm:$0xff] %vm344_vm1, %v4984_v18 }
  0x43   : > { %374 = vst.msk [vmem:[#allocation2 + $0xf1] sm:$0xff] %vm344_vm1, %v4987_v19  ;;  %490 = vrot.lane.b32.xlu1 %v403_v44, %s4690_s8  ;;  %488 = vrot.lane.b32.xlu0 %v4984_v18, %s4690_s8  ;;  %vm1834_vm1 = vcmask 294144  }
  0x44   : > { %349 = vst.msk [vmem:[#allocation2 + $0x29] sm:$0x7f] %vm346_vm2, %v316_v23  ;;  %347 = vst.msk [vmem:[#allocation2 + $0x19] sm:$0x7f] %vm346_vm2, %v314_v24  ;;  %v580_v23 = vld [vmem:[%s4894_s30 + $0xb9] sm:$0x7f] }
  0x45   : > { %351 = vst.msk [vmem:[#allocation2 + $0x39] sm:$0x7f] %vm346_vm2, %v318_v25  ;;  %353 = vst.msk [vmem:[#allocation2 + $0x49] sm:$0x7f] %vm346_vm2, %v320_v26  ;;  %v579_v24 = vld [vmem:[%s4894_s30 + $0xb1] sm:$0xff]  ;;  %v581_v26 = vld [vmem:[%s4894_s30 + $0xc1] sm:$0xff] }
  0x46   : > { %355 = vst.msk [vmem:[#allocation2 + $0x59] sm:$0x7f] %vm346_vm2, %v322_v27  ;;  %357 = vst.msk [vmem:[#allocation2 + $0x69] sm:$0x7f] %vm346_vm2, %v324_v28  ;;  %v582_v25 = vld [vmem:[%s4894_s30 + $0xc9] sm:$0x7f] }
  0x47   : > { %359 = vst.msk [vmem:[#allocation2 + $0x79] sm:$0x7f] %vm346_vm2, %v326_v30  ;;  %361 = vst.msk [vmem:[#allocation2 + $0x89] sm:$0x7f] %vm346_vm2, %v328_v31  ;;  %494 = vrot.lane.b32.xlu1 %v405_v45, %s4690_s8  ;;  %492 = vrot.lane.b32.xlu0 %v4987_v19, %s4690_s8  ;;  %v584_v27 = vld [vmem:[%s4894_s30 + $0xd9] sm:$0x7f] }
  0x48   : > { %363 = vst.msk [vmem:[#allocation2 + $0x99] sm:$0x7f] %vm346_vm2, %v330_v32  ;;  %365 = vst.msk [vmem:[#allocation2 + $0xa9] sm:$0x7f] %vm346_vm2, %v332_v33  ;;  %v583_v28 = vld [vmem:[%s4894_s30 + $0xd1] sm:$0xff]  ;;  %v585_v30 = vld [vmem:[%s4894_s30 + $0xe1] sm:$0xff] }
  0x49   : > { %367 = vst.msk [vmem:[#allocation2 + $0xb9] sm:$0x7f] %vm346_vm2, %v334_v34  ;;  %369 = vst.msk [vmem:[#allocation2 + $0xc9] sm:$0x7f] %vm346_vm2, %v336_v36  ;;  %v740_v33 = vld [vmem:[%s4894_s30 + $0x8] sm:$0x7f] }
  0x4a   : > { %371 = vst.msk [vmem:[#allocation2 + $0xd9] sm:$0x7f] %vm346_vm2, %v338_v38  ;;  %373 = vst.msk [vmem:[#allocation2 + $0xe9] sm:$0x7f] %vm346_vm2, %v340_v40  ;;  %v742_v36 = vld [vmem:[%s4894_s30 + $0x18] sm:$0x7f] }
  0x4b   : > { %375 = vst.msk [vmem:[#allocation2 + $0xf9] sm:$0x7f] %vm346_vm2, %v342_v42  ;;  %619 = vrot.lane.b32.xlu1 %v558_v46, %s4691_s9  ;;  %617 = vrot.lane.b32.xlu0 %v5075_v47, %s4691_s9  ;;  %v746_v42 = vld [vmem:[%s4894_s30 + $0x38] sm:$0x7f]  ;;  %v748_v45 = vld [vmem:[%s4894_s30 + $0x48] sm:$0x7f] }
  0x4c   : > { %vm2259_vm2 = vcmask 261120  }
  0x4f   : > { %623 = vrot.lane.b32.xlu1 %v560_v48, %s4691_s9  ;;  %621 = vrot.lane.b32.xlu0 %v5082_v49, %s4691_s9 }
  0x53   : > { %627 = vrot.lane.b32.xlu1 %v562_v50, %s4691_s9  ;;  %625 = vrot.lane.b32.xlu0 %v5089_v51, %s4691_s9  ;;  %v750_v50 = vld [vmem:[%s4894_s30 + $0x58] sm:$0x7f] }
  0x57   : > { %631 = vrot.lane.b32.xlu1 %v564_v52, %s4691_s9  ;;  %629 = vrot.lane.b32.xlu0 %v5096_v53, %s4691_s9 }
  0x5b   : > { %635 = vrot.lane.b32.xlu1 %v566_v54, %s4691_s9  ;;  %633 = vrot.lane.b32.xlu0 %v5103_v55, %s4691_s9 }
  0x5f   : > { %639 = vrot.lane.b32.xlu1 %v568_v56, %s4691_s9  ;;  %637 = vrot.lane.b32.xlu0 %v567_v57, %s4691_s9  ;;  %v752_v56 = vld [vmem:[%s4894_s30 + $0x68] sm:$0x7f] }
  0x63   : > { %643 = vrot.lane.b32.xlu1 %v570_v58, %s4691_s9  ;;  %641 = vrot.lane.b32.xlu0 %v569_v59, %s4691_s9 }
  0x67   : > { %647 = vrot.lane.b32.xlu1 %v572_v60, %s4691_s9  ;;  %645 = vrot.lane.b32.xlu0 %v571_v61, %s4691_s9 }
  0x6b   : > { %651 = vrot.lane.b32.xlu1 %v574_v62, %s4691_s9  ;;  %649 = vrot.lane.b32.xlu0 %v573_v63, %s4691_s9 }
  0x6f   : > { %655 = vrot.lane.b32.xlu1 %v576_v0, %s4691_s9  ;;  %653 = vrot.lane.b32.xlu0 %v575_v20, %s4691_s9 }
  0x73   : > { %659 = vrot.lane.b32.xlu1 %v578_v21, %s4691_s9  ;;  %657 = vrot.lane.b32.xlu0 %v577_v22, %s4691_s9 }
  0x77   : > { %663 = vrot.lane.b32.xlu1 %v580_v23, %s4691_s9  ;;  %661 = vrot.lane.b32.xlu0 %v579_v24, %s4691_s9 }
  0x7b   : > { %667 = vrot.lane.b32.xlu1 %v582_v25, %s4691_s9  ;;  %665 = vrot.lane.b32.xlu0 %v581_v26, %s4691_s9 }
  0x7f   : > { %671 = vrot.lane.b32.xlu1 %v584_v27, %s4691_s9  ;;  %669 = vrot.lane.b32.xlu0 %v583_v28, %s4691_s9 }
  0x81   : > { %v441_v31 = vpop.permute.xlu1 %440  ;;  %v437_v32 = vpop.permute.xlu0 %436 }
  0x82   : > { %529 = vst.msk [vmem:[#allocation2 + $0x20] sm:$0xff] %vm526_vm3, %v441_v31  ;;  %527 = vst.msk [vmem:[#allocation2 + $0x10] sm:$0xff] %vm526_vm3, %v437_v32 }
  0x83   : > { %675 = vrot.lane.b32.xlu1 %v586_v29, %s4691_s9  ;;  %673 = vrot.lane.b32.xlu0 %v585_v30, %s4691_s9 }
  0x85   : > { %v443_v34 = vpop.permute.xlu1 %442  ;;  %v439_v35 = vpop.permute.xlu0 %438 }
  0x86   : > { %530 = vst.msk [vmem:[#allocation2 + $0x28] sm:$0xff] %vm526_vm3, %v443_v34  ;;  %528 = vst.msk [vmem:[#allocation2 + $0x18] sm:$0xff] %vm526_vm3, %v439_v35  ;;  %v4248_v35 = vld [vmem:[%s4894_s30 + $0x18] sm:$0x7f] }
  0x87   : > { %805 = vrot.lane.b32.xlu1 %v740_v33, %s4692_s10  ;;  %803 = vrot.lane.b32.xlu0 %v4900_v2, %s4692_s10 }
  0x89   : > { %v447_v37 = vpop.permute.xlu1 %446  ;;  %v445_v38 = vpop.permute.xlu0 %444 }
  0x8a   : > { %532 = vst.msk [vmem:[#allocation2 + $0x38] sm:$0xff] %vm526_vm3, %v447_v37  ;;  %531 = vst.msk [vmem:[#allocation2 + $0x30] sm:$0xff] %vm526_vm3, %v445_v38 }
  0x8b   : > { %809 = vrot.lane.b32.xlu1 %v742_v36, %s4692_s10  ;;  %807 = vrot.lane.b32.xlu0 %v4897_v1, %s4692_s10 }
  0x8d   : > { %v451_v40 = vpop.permute.xlu1 %450  ;;  %v449_v41 = vpop.permute.xlu0 %448 }
  0x8e   : > { %534 = vst.msk [vmem:[#allocation2 + $0x48] sm:$0xff] %vm526_vm3, %v451_v40  ;;  %533 = vst.msk [vmem:[#allocation2 + $0x40] sm:$0xff] %vm526_vm3, %v449_v41  ;;  %v4657_v40 = vld [vmem:[%s7215_s1 + $0x10] ss:$0 sps:$4 sm:$0x33]  }
  0x8f   : > { %813 = vrot.lane.b32.xlu1 %v744_v39, %s4692_s10  ;;  %811 = vrot.lane.b32.xlu0 %v4917_v5, %s4692_s10  ;;  %v1984_v41 = vsel %vm1982_vm6, %v4657_v40, 0 }
  0x90   : > { %4637 = vmatprep.subr.msk.bf16.mxu0 %vm1982_vm6, %v4657_v40  ;;  %vm2384_vm6 = vcmask 1040384  }
  0x91   : > { %v455_v43 = vpop.permute.xlu1 %454  ;;  %v453_v44 = vpop.permute.xlu0 %452  ;;  %4548 = vmatpush3.bf16.msra.mxu0 %v1984_v41 }
  0x92   : > { %536 = vst.msk [vmem:[#allocation2 + $0x58] sm:$0xff] %vm526_vm3, %v455_v43  ;;  %535 = vst.msk [vmem:[#allocation2 + $0x50] sm:$0xff] %vm526_vm3, %v453_v44  ;;  %v4658_v44 = vld [vmem:[%s7215_s1 + $0x8] sm:$0xff]  }
  0x93   : > { %817 = vrot.lane.b32.xlu1 %v746_v42, %s4692_s10  ;;  %815 = vrot.lane.b32.xlu0 %v4920_v6, %s4692_s10 }
  0x94   : > { %4549 = vmatprep.subr.bf16.mxu0 %v4658_v44 }
  0x95   : > { %v459_v46 = vpop.permute.xlu1 %458  ;;  %v457_v48 = vpop.permute.xlu0 %456  ;;  %4550 = vmatpush3.bf16.msra.mxu0 %v4658_v44 }
  0x96   : > { %538 = vst.msk [vmem:[#allocation2 + $0x68] sm:$0xff] %vm526_vm3, %v459_v46  ;;  %537 = vst.msk [vmem:[#allocation2 + $0x60] sm:$0xff] %vm526_vm3, %v457_v48  ;;  %v4659_v48 = vld [vmem:[%s7215_s1] sm:$0xff]  }
  0x97   : > { %821 = vrot.lane.b32.xlu1 %v748_v45, %s4692_s10  ;;  %819 = vrot.lane.b32.xlu0 %v4923_v7, %s4692_s10  ;;  %v754_v7 = vld [vmem:[%s4894_s30 + $0x78] sm:$0x7f] }
  0x98   : > { %4551 = vmatprep.subr.bf16.mxu0 %v4659_v48 }
  0x99   : > { %v463_v52 = vpop.permute.xlu1 %462  ;;  %v461_v54 = vpop.permute.xlu0 %460  ;;  %4552 = vmatpush3.bf16.msra.mxu0 %v4659_v48 }
  0x9a   : > { %540 = vst.msk [vmem:[#allocation2 + $0x78] sm:$0xff] %vm526_vm3, %v463_v52  ;;  %539 = vst.msk [vmem:[#allocation2 + $0x70] sm:$0xff] %vm526_vm3, %v461_v54  ;;  %v4310_v52 = vld [vmem:[%s4894_s30 + $0x29] sm:$0x7f] }
  0x9b   : > { %825 = vrot.lane.b32.xlu1 %v750_v50, %s4692_s10  ;;  %823 = vrot.lane.b32.xlu0 %v4930_v8, %s4692_s10  ;;  %v756_v8 = vld [vmem:[%s4894_s30 + $0x88] sm:$0x7f] }
  0x9d   : > { %v467_v57 = vpop.permute.xlu1 %466  ;;  %v465_v58 = vpop.permute.xlu0 %464 }
  0x9e   : > { %542 = vst.msk [vmem:[#allocation2 + $0x88] sm:$0xff] %vm526_vm3, %v467_v57  ;;  %541 = vst.msk [vmem:[#allocation2 + $0x80] sm:$0xff] %vm526_vm3, %v465_v58 }
  0x9f   : > { %829 = vrot.lane.b32.xlu1 %v752_v56, %s4692_s10  ;;  %827 = vrot.lane.b32.xlu0 %v4933_v9, %s4692_s10  ;;  %v758_v9 = vld [vmem:[%s4894_s30 + $0x98] sm:$0x7f] }
  0xa1   : > { %v471_v59 = vpop.permute.xlu1 %470  ;;  %v469_v60 = vpop.permute.xlu0 %468 }
  0xa2   : > { %544 = vst.msk [vmem:[#allocation2 + $0x98] sm:$0xff] %vm526_vm3, %v471_v59  ;;  %543 = vst.msk [vmem:[#allocation2 + $0x90] sm:$0xff] %vm526_vm3, %v469_v60  ;;  %v1131_v59 = vld [vmem:[%s4894_s30 + $0x29] sm:$0x7f] }
  0xa3   : > { %833 = vrot.lane.b32.xlu1 %v754_v7, %s4692_s10  ;;  %831 = vrot.lane.b32.xlu0 %v4942_v10, %s4692_s10  ;;  %v760_v10 = vld [vmem:[%s4894_s30 + $0xa8] sm:$0x7f] }
  0xa5   : > { %v475_v61 = vpop.permute.xlu1 %474  ;;  %v473_v62 = vpop.permute.xlu0 %472 }
  0xa6   : > { %546 = vst.msk [vmem:[#allocation2 + $0xa8] sm:$0xff] %vm526_vm3, %v475_v61  ;;  %545 = vst.msk [vmem:[#allocation2 + $0xa0] sm:$0xff] %vm526_vm3, %v473_v62  ;;  %v4251_v61 = vld [vmem:[%s4894_s30 + $0x30] sm:$0xff] }
  0xa7   : > { %837 = vrot.lane.b32.xlu1 %v756_v8, %s4692_s10  ;;  %835 = vrot.lane.b32.xlu0 %v4952_v12, %s4692_s10  ;;  %v762_v12 = vld [vmem:[%s4894_s30 + $0xb8] sm:$0x7f] }
  0xa9   : > { %v479_v63 = vpop.permute.xlu1 %478  ;;  %v477_v0 = vpop.permute.xlu0 %476 }
  0xaa   : > { %548 = vst.msk [vmem:[#allocation2 + $0xb8] sm:$0xff] %vm526_vm3, %v479_v63  ;;  %547 = vst.msk [vmem:[#allocation2 + $0xb0] sm:$0xff] %vm526_vm3, %v477_v0  ;;  %v4253_v63 = vld [vmem:[%s4894_s30 + $0x40] sm:$0xff] }
  0xab   : > { %841 = vrot.lane.b32.xlu1 %v758_v9, %s4692_s10  ;;  %839 = vrot.lane.b32.xlu0 %v4957_v13, %s4692_s10  ;;  %v764_v13 = vld [vmem:[%s4894_s30 + $0xc8] sm:$0x7f] }
  0xac   : > { %v4254_v9 = vld [vmem:[%s4894_s30 + $0x48] sm:$0x7f] }
  0xad   : > { %v483_v20 = vpop.permute.xlu1 %482  ;;  %v481_v21 = vpop.permute.xlu0 %480 }
  0xae   : > { %550 = vst.msk [vmem:[#allocation2 + $0xc8] sm:$0xff] %vm526_vm3, %v483_v20  ;;  %549 = vst.msk [vmem:[#allocation2 + $0xc0] sm:$0xff] %vm526_vm3, %v481_v21  ;;  %v4282_v20 = vld [vmem:[%s4894_s30 + $0x38] sm:$0xff] }
  0xaf   : > { %845 = vrot.lane.b32.xlu1 %v760_v10, %s4692_s10  ;;  %843 = vrot.lane.b32.xlu0 %v4960_v14, %s4692_s10  ;;  %v766_v14 = vld [vmem:[%s4894_s30 + $0xd8] sm:$0x7f] }
  0xb1   : > { %v487_v22 = vpop.permute.xlu1 %486  ;;  %v485_v23 = vpop.permute.xlu0 %484 }
  0xb2   : > { %552 = vst.msk [vmem:[#allocation2 + $0xd8] sm:$0xff] %vm526_vm3, %v487_v22  ;;  %551 = vst.msk [vmem:[#allocation2 + $0xd0] sm:$0xff] %vm526_vm3, %v485_v23  ;;  %v4284_v22 = vld [vmem:[%s4894_s30 + $0x48] sm:$0xff] }
  0xb3   : > { %849 = vrot.lane.b32.xlu1 %v762_v12, %s4692_s10  ;;  %847 = vrot.lane.b32.xlu0 %v4965_v15, %s4692_s10  ;;  %v768_v15 = vld [vmem:[%s4894_s30 + $0xe8] sm:$0x7f] }
  0xb5   : > { %v491_v24 = vpop.permute.xlu1 %490  ;;  %v489_v25 = vpop.permute.xlu0 %488 }
  0xb6   : > { %554 = vst.msk [vmem:[#allocation2 + $0xe8] sm:$0xff] %vm526_vm3, %v491_v24  ;;  %553 = vst.msk [vmem:[#allocation2 + $0xe0] sm:$0xff] %vm526_vm3, %v489_v25  ;;  %v4312_v24 = vld [vmem:[%s4894_s30 + $0x39] sm:$0x7f] }
  0xb7   : > { %853 = vrot.lane.b32.xlu1 %v764_v13, %s4692_s10  ;;  %851 = vrot.lane.b32.xlu0 %v4976_v16, %s4692_s10 }
  0xb9   : > { %v495_v26 = vpop.permute.xlu1 %494  ;;  %v493_v27 = vpop.permute.xlu0 %492 }
  0xba   : > { %556 = vst.msk [vmem:[#allocation2 + $0xf8] sm:$0xff] %vm526_vm3, %v495_v26  ;;  %555 = vst.msk [vmem:[#allocation2 + $0xf0] sm:$0xff] %vm526_vm3, %v493_v27  ;;  %v4314_v26 = vld [vmem:[%s4894_s30 + $0x49] sm:$0x7f]  ;;  %vm2461_vm3 = vcmask 261121  }
  0xbb   : > { %857 = vrot.lane.b32.xlu1 %v766_v14, %s4692_s10  ;;  %855 = vrot.lane.b32.xlu0 %v4984_v18, %s4692_s10 }
  0xbd   : > { %v620_v28 = vpop.permute.xlu1 %619  ;;  %v618_v29 = vpop.permute.xlu0 %617 }
  0xbe   : > { %710 = vst.msk [vmem:[#allocation2 + $0x18] sm:$0x7f] %vm709_vm4, %v620_v28 }
  0xbf   : > { %708 = vst.msk [vmem:[#allocation2 + $0x10] sm:$0xff] %vm707_vm5, %v618_v29  ;;  %861 = vrot.lane.b32.xlu1 %v768_v15, %s4692_s10  ;;  %859 = vrot.lane.b32.xlu0 %v4987_v19, %s4692_s10  ;;  %v1127_v19 = vld [vmem:[%s4894_s30 + $0x9] sm:$0x7f] }
  0xc1   : > { %v624_v16 = vpop.permute.xlu1 %623  ;;  %v622_v30 = vpop.permute.xlu0 %621 }
  0xc2   : > { %712 = vst.msk [vmem:[#allocation2 + $0x28] sm:$0x7f] %vm709_vm4, %v624_v16  ;;  %v943_v16 = vld [vmem:[%s4894_s30 + $0x50] sm:$0xff] }
  0xc3   : > { %711 = vst.msk [vmem:[#allocation2 + $0x20] sm:$0xff] %vm707_vm5, %v622_v30  ;;  %999 = vrot.lane.b32.xlu1 %v4914_v4, %s4693_s11  ;;  %997 = vrot.lane.b32.xlu0 %v4900_v2, %s4693_s11  ;;  %v1129_v2 = vld [vmem:[%s4894_s30 + $0x19] sm:$0x7f] }
  0xc5   : > { %v628_v18 = vpop.permute.xlu1 %627  ;;  %v626_v31 = vpop.permute.xlu0 %625 }
  0xc6   : > { %714 = vst.msk [vmem:[#allocation2 + $0x38] sm:$0x7f] %vm709_vm4, %v628_v18 }
  0xc7   : > { %713 = vst.msk [vmem:[#allocation2 + $0x30] sm:$0xff] %vm707_vm5, %v626_v31  ;;  %1003 = vrot.lane.b32.xlu1 %v4907_v3, %s4693_s11  ;;  %1001 = vrot.lane.b32.xlu0 %v4897_v1, %s4693_s11  ;;  %v1134_v31 = vld [vmem:[%s4894_s30 + $0x41] sm:$0xff] }
  0xc9   : > { %v632_v32 = vpop.permute.xlu1 %631  ;;  %v630_v4 = vpop.permute.xlu0 %629 }
  0xca   : > { %716 = vst.msk [vmem:[#allocation2 + $0x48] sm:$0x7f] %vm709_vm4, %v632_v32 }
  0xcb   : > { %715 = vst.msk [vmem:[#allocation2 + $0x40] sm:$0xff] %vm707_vm5, %v630_v4  ;;  %1192 = vrot.lane.b32.xlu1 %v1127_v19, %s4694_s12  ;;  %1190 = vrot.lane.b32.xlu0 %v5075_v47, %s4694_s12  ;;  %v4250_v47 = vld [vmem:[%s4894_s30 + $0x28] sm:$0x7f]  ;;  %v1137_v4 = vld [vmem:[%s4894_s30 + $0x59] sm:$0x7f] }
  0xcd   : > { %v636_v33 = vpop.permute.xlu1 %635  ;;  %v634_v34 = vpop.permute.xlu0 %633 }
  0xce   : > { %718 = vst.msk [vmem:[#allocation2 + $0x58] sm:$0x7f] %vm709_vm4, %v636_v33 }
  0xcf   : > { %717 = vst.msk [vmem:[#allocation2 + $0x50] sm:$0xff] %vm707_vm5, %v634_v34  ;;  %1196 = vrot.lane.b32.xlu1 %v1129_v2, %s4694_s12  ;;  %1194 = vrot.lane.b32.xlu0 %v5082_v49, %s4694_s12  ;;  %v1136_v2 = vld [vmem:[%s4894_s30 + $0x51] sm:$0xff] }
  0xd1   : > { %v640_v36 = vpop.permute.xlu1 %639  ;;  %v638_v37 = vpop.permute.xlu0 %637 }
  0xd2   : > { %720 = vst.msk [vmem:[#allocation2 + $0x68] sm:$0x7f] %vm709_vm4, %v640_v36 }
  0xd3   : > { %719 = vst.msk [vmem:[#allocation2 + $0x60] sm:$0xff] %vm707_vm5, %v638_v37  ;;  %1383 = vrot.lane.b32.xlu1 %v4248_v35, %s4695_s13  ;;  %1381 = vrot.lane.b32.xlu0 %v4897_v1, %s4695_s13  ;;  %v4256_v35 = vld [vmem:[%s4894_s30 + $0x58] sm:$0x7f] }
  0xd5   : > { %v644_v38 = vpop.permute.xlu1 %643  ;;  %v642_v39 = vpop.permute.xlu0 %641 }
  0xd6   : > { %722 = vst.msk [vmem:[#allocation2 + $0x78] sm:$0x7f] %vm709_vm4, %v644_v38  ;;  %v4257_v38 = vld [vmem:[%s4894_s30 + $0x60] sm:$0xff] }
  0xd7   : > { %721 = vst.msk [vmem:[#allocation2 + $0x70] sm:$0xff] %vm707_vm5, %v642_v39  ;;  %1387 = vrot.lane.b32.xlu1 %v4250_v47, %s4695_s13  ;;  %1385 = vrot.lane.b32.xlu0 %v4917_v5, %s4695_s13  ;;  %v4258_v47 = vld [vmem:[%s4894_s30 + $0x68] sm:$0x7f] }
  0xd9   : > { %v648_v42 = vpop.permute.xlu1 %647  ;;  %v646_v43 = vpop.permute.xlu0 %645 }
  0xda   : > { %724 = vst.msk [vmem:[#allocation2 + $0x88] sm:$0x7f] %vm709_vm4, %v648_v42 }
  0xdb   : > { %723 = vst.msk [vmem:[#allocation2 + $0x80] sm:$0xff] %vm707_vm5, %v646_v43  ;;  %1565 = vrot.lane.b32.xlu1 %v4907_v3, %s4696_s18  ;;  %1563 = vrot.lane.b32.xlu0 %v4897_v1, %s4696_s18  ;;  %v4308_v1 = vld [vmem:[%s4894_s30 + $0x19] sm:$0x7f]  ;;  %v4288_v43 = vld [vmem:[%s4894_s30 + $0x68] sm:$0xff] }
  0xdd   : > { %v652_v45 = vpop.permute.xlu1 %651  ;;  %v650_v46 = vpop.permute.xlu0 %649 }
  0xde   : > { %726 = vst.msk [vmem:[#allocation2 + $0x98] sm:$0x7f] %vm709_vm4, %v652_v45 }
  0xdf   : > { %725 = vst.msk [vmem:[#allocation2 + $0x90] sm:$0xff] %vm707_vm5, %v650_v46  ;;  %1569 = vrot.lane.b32.xlu1 %v4949_v11, %s4696_s18  ;;  %1567 = vrot.lane.b32.xlu0 %v4917_v5, %s4696_s18  ;;  %v4316_v46 = vld [vmem:[%s4894_s30 + $0x59] sm:$0x7f] }
  0xe1   : > { %v656_v3 = vpop.permute.xlu1 %655  ;;  %v654_v50 = vpop.permute.xlu0 %653 }
  0xe2   : > { %728 = vst.msk [vmem:[#allocation2 + $0xa8] sm:$0x7f] %vm709_vm4, %v656_v3  ;;  %v4318_v3 = vld [vmem:[%s4894_s30 + $0x69] sm:$0x7f] }
  0xe3   : > { %727 = vst.msk [vmem:[#allocation2 + $0xa0] sm:$0xff] %vm707_vm5, %v654_v50  ;;  %1746 = vrot.lane.b32.xlu1 %v4308_v1, %s4697_s21  ;;  %1744 = vrot.lane.b32.xlu0 %v5082_v49, %s4697_s21  ;;  %v4317_v50 = vld [vmem:[%s4894_s30 + $0x61] sm:$0xff] }
  0xe5   : > { %v660_v54 = vpop.permute.xlu1 %659  ;;  %v658_v56 = vpop.permute.xlu0 %657 }
  0xe6   : > { %730 = vst.msk [vmem:[#allocation2 + $0xb8] sm:$0x7f] %vm709_vm4, %v660_v54 }
  0xe7   : > { %729 = vst.msk [vmem:[#allocation2 + $0xb0] sm:$0xff] %vm707_vm5, %v658_v56  ;;  %1750 = vrot.lane.b32.xlu1 %v4310_v52, %s4697_s21  ;;  %1748 = vrot.lane.b32.xlu0 %v5089_v51, %s4697_s21 }
  0xe9   : > { %v664_v57 = vpop.permute.xlu1 %663  ;;  %v662_v58 = vpop.permute.xlu0 %661 }
  0xea   : > { %732 = vst.msk [vmem:[#allocation2 + $0xc8] sm:$0x7f] %vm709_vm4, %v664_v57 }
  0xeb   : > { %731 = vst.msk [vmem:[#allocation2 + $0xc0] sm:$0xff] %vm707_vm5, %v662_v58  ;;  %1007 = vrot.lane.b32.xlu1 %v4949_v11, %s4693_s11  ;;  %1005 = vrot.lane.b32.xlu0 %v4917_v5, %s4693_s11  ;;  %v1133_v5 = vld [vmem:[%s4894_s30 + $0x39] sm:$0x7f] }
  0xec   : > { %v948_v58 = vld [vmem:[%s4894_s30 + $0x78] sm:$0xff] }
  0xed   : > { %v668_v49 = vpop.permute.xlu1 %667  ;;  %v666_v7 = vpop.permute.xlu0 %665 }
  0xee   : > { %734 = vst.msk [vmem:[#allocation2 + $0xd8] sm:$0x7f] %vm709_vm4, %v668_v49  ;;  %v947_v49 = vld [vmem:[%s4894_s30 + $0x70] sm:$0xff] }
  0xef   : > { %733 = vst.msk [vmem:[#allocation2 + $0xd0] sm:$0xff] %vm707_vm5, %v666_v7  ;;  %1011 = vrot.lane.b32.xlu1 %v4981_v17, %s4693_s11  ;;  %1009 = vrot.lane.b32.xlu0 %v4920_v6, %s4693_s11  ;;  %v4252_v6 = vld [vmem:[%s4894_s30 + $0x38] sm:$0x7f] }
  0xf1   : > { %v672_v60 = vpop.permute.xlu1 %671  ;;  %v670_v11 = vpop.permute.xlu0 %669 }
  0xf2   : > { %736 = vst.msk [vmem:[#allocation2 + $0xe8] sm:$0x7f] %vm709_vm4, %v672_v60  ;;  %v1139_v60 = vld [vmem:[%s4894_s30 + $0x69] sm:$0x7f] }
  0xf3   : > { %735 = vst.msk [vmem:[#allocation2 + $0xe0] sm:$0xff] %vm707_vm5, %v670_v11  ;;  %1200 = vrot.lane.b32.xlu1 %v1131_v59, %s4694_s12  ;;  %1198 = vrot.lane.b32.xlu0 %v5089_v51, %s4694_s12 }
  0xf5   : > { %v676_v8 = vpop.permute.xlu1 %675  ;;  %v674_v17 = vpop.permute.xlu0 %673 }
  0xf6   : > { %738 = vst.msk [vmem:[#allocation2 + $0xf8] sm:$0x7f] %vm709_vm4, %v676_v8  ;;  %v1141_v8 = vld [vmem:[%s4894_s30 + $0x79] sm:$0x7f]  ;;  %vm3352_vm4 = vcmask 260096  }
  0xf7   : > { %737 = vst.msk [vmem:[#allocation2 + $0xf0] sm:$0xff] %vm707_vm5, %v674_v17  ;;  %1204 = vrot.lane.b32.xlu1 %v1133_v5, %s4694_s12  ;;  %1202 = vrot.lane.b32.xlu0 %v5096_v53, %s4694_s12  ;;  %v1140_v17 = vld [vmem:[%s4894_s30 + $0x71] sm:$0xff]  ;;  %vm2613_vm5 = vcmask 1046528  }
  0xf9   : > { %v806_v51 = vpop.permute.xlu1 %805  ;;  %v804_v62 = vpop.permute.xlu0 %803 }
  0xfa   : > { %902 = vst.msk [vmem:[#allocation2 + $0x9] sm:$0x7f] %vm901_vm7, %v806_v51  ;;  %v4260_v51 = vld [vmem:[%s4894_s30 + $0x78] sm:$0x7f] }
  0xfb   : > { %900 = vst.msk [vmem:[#allocation2 + $0x1] sm:$0xff] %vm899_vm8, %v804_v62  ;;  %1391 = vrot.lane.b32.xlu1 %v4252_v6, %s4695_s13  ;;  %1389 = vrot.lane.b32.xlu0 %v4251_v61, %s4695_s13 }
  0xfd   : > { %v810_v0 = vpop.permute.xlu1 %809  ;;  %v808_v10 = vpop.permute.xlu0 %807 }
  0xfe   : > { %904 = vst.msk [vmem:[#allocation2 + $0x19] sm:$0x7f] %vm901_vm7, %v810_v0  ;;  %v4261_v0 = vld [vmem:[%s4894_s30 + $0x80] sm:$0xff] }
  0xff   : > { %903 = vst.msk [vmem:[#allocation2 + $0x11] sm:$0xff] %vm899_vm8, %v808_v10  ;;  %1395 = vrot.lane.b32.xlu1 %v4254_v9, %s4695_s13  ;;  %1393 = vrot.lane.b32.xlu0 %v4253_v63, %s4695_s13 }
 0x101   : > { %v814_v21 = vpop.permute.xlu1 %813  ;;  %v812_v12 = vpop.permute.xlu0 %811 }
 0x102   : > { %906 = vst.msk [vmem:[#allocation2 + $0x29] sm:$0x7f] %vm901_vm7, %v814_v21 }
 0x103   : > { %905 = vst.msk [vmem:[#allocation2 + $0x21] sm:$0xff] %vm899_vm8, %v812_v12  ;;  %1573 = vrot.lane.b32.xlu1 %v4282_v20, %s4696_s18  ;;  %1571 = vrot.lane.b32.xlu0 %v4251_v61, %s4696_s18 }
 0x105   : > { %v818_v23 = vpop.permute.xlu1 %817  ;;  %v816_v13 = vpop.permute.xlu0 %815 }
 0x106   : > { %908 = vst.msk [vmem:[#allocation2 + $0x39] sm:$0x7f] %vm901_vm7, %v818_v23 }
 0x107   : > { %907 = vst.msk [vmem:[#allocation2 + $0x31] sm:$0xff] %vm899_vm8, %v816_v13  ;;  %1577 = vrot.lane.b32.xlu1 %v4284_v22, %s4696_s18  ;;  %1575 = vrot.lane.b32.xlu0 %v4253_v63, %s4696_s18 }
 0x109   : > { %v822_v25 = vpop.permute.xlu1 %821  ;;  %v820_v14 = vpop.permute.xlu0 %819 }
 0x10a   : > { %910 = vst.msk [vmem:[#allocation2 + $0x49] sm:$0x7f] %vm901_vm7, %v822_v25 }
 0x10b   : > { %909 = vst.msk [vmem:[#allocation2 + $0x41] sm:$0xff] %vm899_vm8, %v820_v14  ;;  %1754 = vrot.lane.b32.xlu1 %v4312_v24, %s4697_s21  ;;  %1752 = vrot.lane.b32.xlu0 %v5096_v53, %s4697_s21  ;;  %v944_v53 = vld [vmem:[%s4894_s30 + $0x58] sm:$0xff] }
 0x10c   : > { %v4320_v24 = vld [vmem:[%s4894_s30 + $0x79] sm:$0x7f] }
 0x10d   : > { %v826_v27 = vpop.permute.xlu1 %825  ;;  %v824_v15 = vpop.permute.xlu0 %823 }
 0x10e   : > { %912 = vst.msk [vmem:[#allocation2 + $0x59] sm:$0x7f] %vm901_vm7, %v826_v27  ;;  %v4321_v27 = vld [vmem:[%s4894_s30 + $0x81] sm:$0xff] }
 0x10f   : > { %911 = vst.msk [vmem:[#allocation2 + $0x51] sm:$0xff] %vm899_vm8, %v824_v15  ;;  %1758 = vrot.lane.b32.xlu1 %v4314_v26, %s4697_s21  ;;  %1756 = vrot.lane.b32.xlu0 %v5103_v55, %s4697_s21  ;;  %v1135_v55 = vld [vmem:[%s4894_s30 + $0x49] sm:$0x7f] }
 0x110   : > { %v4322_v26 = vld [vmem:[%s4894_s30 + $0x89] sm:$0x7f] }
 0x111   : > { %v830_v28 = vpop.permute.xlu1 %829  ;;  %v828_v29 = vpop.permute.xlu0 %827 }
 0x112   : > { %914 = vst.msk [vmem:[#allocation2 + $0x69] sm:$0x7f] %vm901_vm7, %v830_v28 }
 0x113   : > { %913 = vst.msk [vmem:[#allocation2 + $0x61] sm:$0xff] %vm899_vm8, %v828_v29  ;;  %1015 = vrot.lane.b32.xlu1 %v4284_v22, %s4693_s11  ;;  %1013 = vrot.lane.b32.xlu0 %v4253_v63, %s4693_s11  ;;  %v4262_v63 = vld [vmem:[%s4894_s30 + $0x88] sm:$0x7f] }
 0x114   : > { %v4292_v22 = vld [vmem:[%s4894_s30 + $0x88] sm:$0xff] }
 0x115   : > { %v834_v30 = vpop.permute.xlu1 %833  ;;  %v832_v18 = vpop.permute.xlu0 %831 }
 0x116   : > { %916 = vst.msk [vmem:[#allocation2 + $0x79] sm:$0x7f] %vm901_vm7, %v834_v30 }
 0x117   : > { %915 = vst.msk [vmem:[#allocation2 + $0x71] sm:$0xff] %vm899_vm8, %v832_v18  ;;  %1019 = vrot.lane.b32.xlu1 %v944_v53, %s4693_s11  ;;  %1017 = vrot.lane.b32.xlu0 %v943_v16, %s4693_s11 }
 0x119   : > { %v838_v19 = vpop.permute.xlu1 %837  ;;  %v836_v32 = vpop.permute.xlu0 %835 }
 0x11a   : > { %918 = vst.msk [vmem:[#allocation2 + $0x89] sm:$0x7f] %vm901_vm7, %v838_v19 }
 0x11b   : > { %917 = vst.msk [vmem:[#allocation2 + $0x81] sm:$0xff] %vm899_vm8, %v836_v32  ;;  %1208 = vrot.lane.b32.xlu1 %v1135_v55, %s4694_s12  ;;  %1206 = vrot.lane.b32.xlu0 %v1134_v31, %s4694_s12  ;;  %v952_v32 = vld [vmem:[%s4894_s30 + $0x98] sm:$0xff] }
 0x11d   : > { %v842_v33 = vpop.permute.xlu1 %841  ;;  %v840_v34 = vpop.permute.xlu0 %839 }
 0x11e   : > { %920 = vst.msk [vmem:[#allocation2 + $0x99] sm:$0x7f] %vm901_vm7, %v842_v33 }
 0x11f   : > { %919 = vst.msk [vmem:[#allocation2 + $0x91] sm:$0xff] %vm899_vm8, %v840_v34  ;;  %1212 = vrot.lane.b32.xlu1 %v1137_v4, %s4694_s12  ;;  %1210 = vrot.lane.b32.xlu0 %v1136_v2, %s4694_s12  ;;  %v951_v4 = vld [vmem:[%s4894_s30 + $0x90] sm:$0xff]  ;;  %v1143_v34 = vld [vmem:[%s4894_s30 + $0x89] sm:$0x7f] }
 0x121   : > { %v846_v36 = vpop.permute.xlu1 %845  ;;  %v844_v37 = vpop.permute.xlu0 %843 }
 0x122   : > { %922 = vst.msk [vmem:[#allocation2 + $0xa9] sm:$0x7f] %vm901_vm7, %v846_v36 }
 0x123   : > { %921 = vst.msk [vmem:[#allocation2 + $0xa1] sm:$0xff] %vm899_vm8, %v844_v37  ;;  %1399 = vrot.lane.b32.xlu1 %v4256_v35, %s4695_s13  ;;  %1397 = vrot.lane.b32.xlu0 %v943_v16, %s4695_s13  ;;  %v1145_v37 = vld [vmem:[%s4894_s30 + $0x99] sm:$0x7f] }
 0x125   : > { %v850_v39 = vpop.permute.xlu1 %849  ;;  %v848_v40 = vpop.permute.xlu0 %847 }
 0x126   : > { %924 = vst.msk [vmem:[#allocation2 + $0xb9] sm:$0x7f] %vm901_vm7, %v850_v39 }
 0x127   : > { %923 = vst.msk [vmem:[#allocation2 + $0xb1] sm:$0xff] %vm899_vm8, %v848_v40  ;;  %1403 = vrot.lane.b32.xlu1 %v4258_v47, %s4695_s13  ;;  %1401 = vrot.lane.b32.xlu0 %v4257_v38, %s4695_s13  ;;  %v1144_v47 = vld [vmem:[%s4894_s30 + $0x91] sm:$0xff] }
 0x128   : > { %v4264_v40 = vld [vmem:[%s4894_s30 + $0x98] sm:$0x7f] }
 0x129   : > { %v854_v41 = vpop.permute.xlu1 %853  ;;  %v852_v42 = vpop.permute.xlu0 %851 }
 0x12a   : > { %926 = vst.msk [vmem:[#allocation2 + $0xc9] sm:$0x7f] %vm901_vm7, %v854_v41 }
 0x12b   : > { %925 = vst.msk [vmem:[#allocation2 + $0xc1] sm:$0xff] %vm899_vm8, %v852_v42  ;;  %1581 = vrot.lane.b32.xlu1 %v944_v53, %s4696_s18  ;;  %1579 = vrot.lane.b32.xlu0 %v943_v16, %s4696_s18 }
 0x12d   : > { %v858_v44 = vpop.permute.xlu1 %857  ;;  %v856_v45 = vpop.permute.xlu0 %855 }
 0x12e   : > { %928 = vst.msk [vmem:[#allocation2 + $0xd9] sm:$0x7f] %vm901_vm7, %v858_v44  ;;  %v4265_v44 = vld [vmem:[%s4894_s30 + $0xa0] sm:$0xff] }
 0x12f   : > { %927 = vst.msk [vmem:[#allocation2 + $0xd1] sm:$0xff] %vm899_vm8, %v856_v45  ;;  %1585 = vrot.lane.b32.xlu1 %v4288_v43, %s4696_s18  ;;  %1583 = vrot.lane.b32.xlu0 %v4257_v38, %s4696_s18 }
 0x131   : > { %v862_v48 = vpop.permute.xlu1 %861  ;;  %v860_v1 = vpop.permute.xlu0 %859 }
 0x132   : > { %930 = vst.msk [vmem:[#allocation2 + $0xe9] sm:$0x7f] %vm901_vm7, %v862_v48 }
 0x133   : > { %929 = vst.msk [vmem:[#allocation2 + $0xe1] sm:$0xff] %vm899_vm8, %v860_v1  ;;  %1762 = vrot.lane.b32.xlu1 %v4316_v46, %s4697_s21  ;;  %1760 = vrot.lane.b32.xlu0 %v1136_v2, %s4697_s21 }
 0x135   : > { %v1000_v52 = vpop.permute.xlu1 %999  ;;  %v998_v54 = vpop.permute.xlu0 %997 }
 0x136   : > { %1095 = vst.msk [vmem:[#allocation2 + $0x8] sm:$0xff] %vm1093_vm9, %v1000_v52  ;;  %1094 = vst.msk [vmem:[#allocation2] sm:$0xff] %vm1093_vm9, %v998_v54  ;;  %v4324_v54 = vld [vmem:[%s4894_s30 + $0x99] sm:$0x7f] }
 0x137   : > { %1766 = vrot.lane.b32.xlu1 %v4318_v3, %s4697_s21  ;;  %1764 = vrot.lane.b32.xlu0 %v4317_v50, %s4697_s21  ;;  %v4296_v3 = vld [vmem:[%s4894_s30 + $0xa8] sm:$0xff] }
 0x139   : > { %v1004_v56 = vpop.permute.xlu1 %1003  ;;  %v1002_v57 = vpop.permute.xlu0 %1001 }
 0x13a   : > { %1097 = vst.msk [vmem:[#allocation2 + $0x18] sm:$0xff] %vm1093_vm9, %v1004_v56  ;;  %1096 = vst.msk [vmem:[#allocation2 + $0x10] sm:$0xff] %vm1093_vm9, %v1002_v57 }
 0x13b   : > { %1023 = vrot.lane.b32.xlu1 %v4288_v43, %s4693_s11  ;;  %1021 = vrot.lane.b32.xlu0 %v4257_v38, %s4693_s11  ;;  %v4266_v43 = vld [vmem:[%s4894_s30 + $0xa8] sm:$0x7f] }
 0x13d   : > { %v1193_v7 = vpop.permute.xlu1 %1192  ;;  %v1191_v59 = vpop.permute.xlu0 %1190 }
 0x13e   : > { %1289 = vst.msk [vmem:[#allocation2 + $0x8] sm:$0x7f] %vm1288_vm10, %v1193_v7 }
 0x13f   : > { %1287 = vst.msk [vmem:[#allocation2] sm:$0xff] %vm1286_vm11, %v1191_v59  ;;  %1027 = vrot.lane.b32.xlu1 %v948_v58, %s4693_s11  ;;  %1025 = vrot.lane.b32.xlu0 %v947_v49, %s4693_s11 }
 0x141   : > { %v1197_v11 = vpop.permute.xlu1 %1196  ;;  %v1195_v5 = vpop.permute.xlu0 %1194 }
 0x142   : > { %1291 = vst.msk [vmem:[#allocation2 + $0x18] sm:$0x7f] %vm1288_vm10, %v1197_v11 }
 0x143   : > { %1290 = vst.msk [vmem:[#allocation2 + $0x10] sm:$0xff] %vm1286_vm11, %v1195_v5  ;;  %1216 = vrot.lane.b32.xlu1 %v1139_v60, %s4694_s12  ;;  %1214 = vrot.lane.b32.xlu0 %v4317_v50, %s4694_s12 }
 0x145   : > { %v1384_v6 = vpop.permute.xlu1 %1383  ;;  %v1382_v61 = vpop.permute.xlu0 %1381 }
 0x146   : > { %1474 = vst.msk [vmem:[#allocation2 + $0x9] sm:$0x7f] %vm1473_vm12, %v1384_v6 }
 0x147   : > { %1472 = vst.msk [vmem:[#allocation2 + $0x1] sm:$0xff] %vm1471_vm13, %v1382_v61  ;;  %1220 = vrot.lane.b32.xlu1 %v1141_v8, %s4694_s12  ;;  %1218 = vrot.lane.b32.xlu0 %v1140_v17, %s4694_s12 }
 0x149   : > { %v1388_v62 = vpop.permute.xlu1 %1387  ;;  %v1386_v9 = vpop.permute.xlu0 %1385 }
 0x14a   : > { %1476 = vst.msk [vmem:[#allocation2 + $0x19] sm:$0x7f] %vm1473_vm12, %v1388_v62  ;;  %v956_v62 = vld [vmem:[%s4894_s30 + $0xb8] sm:$0xff] }
 0x14b   : > { %1475 = vst.msk [vmem:[#allocation2 + $0x11] sm:$0xff] %vm1471_vm13, %v1386_v9  ;;  %1407 = vrot.lane.b32.xlu1 %v4260_v51, %s4695_s13  ;;  %1405 = vrot.lane.b32.xlu0 %v947_v49, %s4695_s13  ;;  %v955_v9 = vld [vmem:[%s4894_s30 + $0xb0] sm:$0xff] }
 0x14d   : > { %v1566_v10 = vpop.permute.xlu1 %1565  ;;  %v1564_v20 = vpop.permute.xlu0 %1563 }
 0x14e   : > { %1655 = vst.msk [vmem:[#allocation2 + $0x8] sm:$0xff] %vm1653_vm14, %v1566_v10  ;;  %1654 = vst.msk [vmem:[#allocation2] sm:$0xff] %vm1653_vm14, %v1564_v20  ;;  %v1147_v10 = vld [vmem:[%s4894_s30 + $0xa9] sm:$0x7f] }
 0x14f   : > { %1411 = vrot.lane.b32.xlu1 %v4262_v63, %s4695_s13  ;;  %1409 = vrot.lane.b32.xlu0 %v4261_v0, %s4695_s13 }
 0x151   : > { %v1570_v21 = vpop.permute.xlu1 %1569  ;;  %v1568_v12 = vpop.permute.xlu0 %1567 }
 0x152   : > { %1657 = vst.msk [vmem:[#allocation2 + $0x18] sm:$0xff] %vm1653_vm14, %v1570_v21  ;;  %1656 = vst.msk [vmem:[#allocation2 + $0x10] sm:$0xff] %vm1653_vm14, %v1568_v12  ;;  %v1149_v12 = vld [vmem:[%s4894_s30 + $0xb9] sm:$0x7f] }
 0x153   : > { %1589 = vrot.lane.b32.xlu1 %v948_v58, %s4696_s18  ;;  %1587 = vrot.lane.b32.xlu0 %v947_v49, %s4696_s18  ;;  %v4326_v58 = vld [vmem:[%s4894_s30 + $0xa9] sm:$0x7f]  ;;  %v4325_v49 = vld [vmem:[%s4894_s30 + $0xa1] sm:$0xff] }
 0x155   : > { %v1747_v23 = vpop.permute.xlu1 %1746  ;;  %v1745_v13 = vpop.permute.xlu0 %1744 }
 0x156   : > { %1837 = vst.msk [vmem:[#allocation2 + $0x8] sm:$0x7f] %vm1836_vm15, %v1747_v23 }
 0x157   : > { %1835 = vst.msk [vmem:[#allocation2] sm:$0xff] %vm1834_vm1, %v1745_v13  ;;  %1593 = vrot.lane.b32.xlu1 %v4292_v22, %s4696_s18  ;;  %1591 = vrot.lane.b32.xlu0 %v4261_v0, %s4696_s18 }
 0x159   : > { %v1751_v25 = vpop.permute.xlu1 %1750  ;;  %v1749_v14 = vpop.permute.xlu0 %1748 }
 0x15a   : > { %1839 = vst.msk [vmem:[#allocation2 + $0x18] sm:$0x7f] %vm1836_vm15, %v1751_v25 }
 0x15b   : > { %1838 = vst.msk [vmem:[#allocation2 + $0x10] sm:$0xff] %vm1834_vm1, %v1749_v14  ;;  %1770 = vrot.lane.b32.xlu1 %v4320_v24, %s4697_s21  ;;  %1768 = vrot.lane.b32.xlu0 %v1140_v17, %s4697_s21  ;;  %v4268_v24 = vld [vmem:[%s4894_s30 + $0xb8] sm:$0x7f] }
 0x15d   : > { %v1008_v15 = vpop.permute.xlu1 %1007  ;;  %v1006_v28 = vpop.permute.xlu0 %1005  ;;  %v1867_v53 = vld [vmem:[#allocation2 + $0x8] sm:$0xff] }
 0x15e   : > { %v1866_v29 = vld [vmem:[#allocation2] sm:$0xff]  ;;  %1099 = vst.msk [vmem:[#allocation2 + $0x28] sm:$0xff] %vm1093_vm9, %v1008_v15  ;;  %1098 = vst.msk [vmem:[#allocation2 + $0x20] sm:$0xff] %vm1093_vm9, %v1006_v28 }
 0x15f   : > { %v1898_v16 = vpack.c.bf16 %v1867_v53, %v1866_v29  ;;  %1774 = vrot.lane.b32.xlu1 %v4322_v26, %s4697_s21  ;;  %1772 = vrot.lane.b32.xlu0 %v4321_v27, %s4697_s21  ;;  %v4270_v26 = vld [vmem:[%s4894_s30 + $0xc8] sm:$0x7f] }
 0x161   : > { %4553 = vmatprep.mubr.msk.bf16.mxu0 %vm280_vm0, %v1898_v16  ;;  %v1012_v30 = vpop.permute.xlu1 %1011  ;;  %v1010_v18 = vpop.permute.xlu0 %1009  ;;  %v1869_v31 = vld [vmem:[#allocation2 + $0x18] sm:$0xff]  ;;  %v5568_v16 = vld [vmem:[%s4894_s30 + $0xc8] sm:$0xff] }
 0x162   : > { %v1868_v55 = vld [vmem:[#allocation2 + $0x10] sm:$0xff]  ;;  %1101 = vst.msk [vmem:[#allocation2 + $0x38] sm:$0xff] %vm1093_vm9, %v1012_v30  ;;  %1100 = vst.msk [vmem:[#allocation2 + $0x30] sm:$0xff] %vm1093_vm9, %v1010_v18 }
 0x163   : > { %v1899_v19 = vpack.c.bf16 %v1869_v31, %v1868_v55  ;;  %1031 = vrot.lane.b32.xlu1 %v4292_v22, %s4693_s11  ;;  %1029 = vrot.lane.b32.xlu0 %v4261_v0, %s4693_s11  ;;  %v1148_v22 = vld [vmem:[%s4894_s30 + $0xb1] sm:$0xff]  ;;  %v4328_v55 = vld [vmem:[%s4894_s30 + $0xb9] sm:$0x7f] }
 0x165   : > { %4554 = vmatmul.mubr.msk.bf16.vlgmr.msra.gmra.mxu0 %vm280_vm0, %v1899_v19  ;;  %v1201_v2 = vpop.permute.xlu1 %1200  ;;  %v1199_v33 = vpop.permute.xlu0 %1198 }
 0x166   : > { %1293 = vst.msk [vmem:[#allocation2 + $0x28] sm:$0x7f] %vm1288_vm10, %v1201_v2  ;;  %v4329_v2 = vld [vmem:[%s4894_s30 + $0xc1] sm:$0xff] }
 0x167   : > { %1292 = vst.msk [vmem:[#allocation2 + $0x20] sm:$0xff] %vm1286_vm11, %v1199_v33  ;;  %1035 = vrot.lane.b32.xlu1 %v952_v32, %s4693_s11  ;;  %1033 = vrot.lane.b32.xlu0 %v951_v4, %s4693_s11 }
 0x169   : > { %v1205_v35 = vpop.permute.xlu1 %1204  ;;  %v1203_v36 = vpop.permute.xlu0 %1202 }
 0x16a   : > { %1295 = vst.msk [vmem:[#allocation2 + $0x38] sm:$0x7f] %vm1288_vm10, %v1205_v35 }
 0x16b   : > { %1294 = vst.msk [vmem:[#allocation2 + $0x30] sm:$0xff] %vm1286_vm11, %v1203_v36  ;;  %1224 = vrot.lane.b32.xlu1 %v1143_v34, %s4694_s12  ;;  %1222 = vrot.lane.b32.xlu0 %v4321_v27, %s4694_s12  ;;  %v5556_v27 = vld [vmem:[%s4894_s30 + $0xc0] sm:$0xff] }
 0x16d   : > { %v1392_v38 = vpop.permute.xlu1 %1391  ;;  %v1390_v39 = vpop.permute.xlu0 %1389 }
 0x16e   : > { %1478 = vst.msk [vmem:[#allocation2 + $0x29] sm:$0x7f] %vm1473_vm12, %v1392_v38 }
 0x16f   : > { %1477 = vst.msk [vmem:[#allocation2 + $0x21] sm:$0xff] %vm1471_vm13, %v1390_v39  ;;  %1228 = vrot.lane.b32.xlu1 %v1145_v37, %s4694_s12  ;;  %1226 = vrot.lane.b32.xlu0 %v1144_v47, %s4694_s12 }
 0x171   : > { %v1396_v41 = vpop.permute.xlu1 %1395  ;;  %v1394_v42 = vpop.permute.xlu0 %1393 }
 0x172   : > { %1480 = vst.msk [vmem:[#allocation2 + $0x39] sm:$0x7f] %vm1473_vm12, %v1396_v41 }
 0x173   : > { %1479 = vst.msk [vmem:[#allocation2 + $0x31] sm:$0xff] %vm1471_vm13, %v1394_v42  ;;  %1415 = vrot.lane.b32.xlu1 %v4264_v40, %s4695_s13  ;;  %1413 = vrot.lane.b32.xlu0 %v951_v4, %s4695_s13  ;;  %v960_v42 = vld [vmem:[%s4894_s30 + $0xd8] sm:$0xff] }
 0x175   : > { %v1574_v45 = vpop.permute.xlu1 %1573  ;;  %v1572_v46 = vpop.permute.xlu0 %1571 }
 0x176   : > { %1659 = vst.msk [vmem:[#allocation2 + $0x28] sm:$0xff] %vm1653_vm14, %v1574_v45  ;;  %1658 = vst.msk [vmem:[#allocation2 + $0x20] sm:$0xff] %vm1653_vm14, %v1572_v46  ;;  %v1151_v46 = vld [vmem:[%s4894_s30 + $0xc9] sm:$0x7f] }
 0x177   : > { %1419 = vrot.lane.b32.xlu1 %v4266_v43, %s4695_s13  ;;  %1417 = vrot.lane.b32.xlu0 %v4265_v44, %s4695_s13  ;;  %v959_v43 = vld [vmem:[%s4894_s30 + $0xd0] sm:$0xff] }
 0x179   : > { %v1578_v48 = vpop.permute.xlu1 %1577  ;;  %v1576_v1 = vpop.permute.xlu0 %1575 }
 0x17a   : > { %1661 = vst.msk [vmem:[#allocation2 + $0x38] sm:$0xff] %vm1653_vm14, %v1578_v48  ;;  %1660 = vst.msk [vmem:[#allocation2 + $0x30] sm:$0xff] %vm1653_vm14, %v1576_v1 }
 0x17b   : > { %1597 = vrot.lane.b32.xlu1 %v952_v32, %s4696_s18  ;;  %1595 = vrot.lane.b32.xlu0 %v951_v4, %s4696_s18  ;;  %v4678_v32 = vld [vmem:[#allocation3] sm:$0xff]  ;;  %v4330_v4 = vld [vmem:[%s4894_s30 + $0xc9] sm:$0x7f] }
 0x17c   : > { %2263 = vst.msk [vmem:[#allocation3 + $0x28] sm:$0xff] %vm2259_vm2, %v4678_v32  ;;  %2260 = vst.msk [vmem:[#allocation3 + $0x10] sm:$0xff] %vm2259_vm2, %v4678_v32 }
 0x17d   : > { %v1755_v50 = vpop.permute.xlu1 %1754  ;;  %v1753_v52 = vpop.permute.xlu0 %1752  ;;  %2266 = vst.msk [vmem:[#allocation3 + $0x40] sm:$0xff] %vm2259_vm2, %v4678_v32  ;;  %2269 = vst.msk [vmem:[#allocation3 + $0x58] sm:$0xff] %vm2259_vm2, %v4678_v32 }
 0x17e   : > { %1841 = vst.msk [vmem:[#allocation2 + $0x28] sm:$0x7f] %vm1836_vm15, %v1755_v50  ;;  %v1152_v50 = vld [vmem:[%s4894_s30 + $0xd1] sm:$0xff] }
 0x17f   : > { %1840 = vst.msk [vmem:[#allocation2 + $0x20] sm:$0xff] %vm1834_vm1, %v1753_v52  ;;  %1601 = vrot.lane.b32.xlu1 %v4296_v3, %s4696_s18  ;;  %1599 = vrot.lane.b32.xlu0 %v4265_v44, %s4696_s18 }
 0x180   : > { %2272 = vst.msk [vmem:[#allocation3 + $0x70] sm:$0xff] %vm2259_vm2, %v4678_v32  ;;  %2275 = vst.msk [vmem:[#allocation3 + $0x88] sm:$0xff] %vm2259_vm2, %v4678_v32 }
 0x181   : > { %v1759_v56 = vpop.permute.xlu1 %1758  ;;  %v1757_v57 = vpop.permute.xlu0 %1756  ;;  %2278 = vst.msk [vmem:[#allocation3 + $0xa0] sm:$0xff] %vm2259_vm2, %v4678_v32  ;;  %2281 = vst.msk [vmem:[#allocation3 + $0xb8] sm:$0xff] %vm2259_vm2, %v4678_v32 }
 0x182   : > { %1843 = vst.msk [vmem:[#allocation2 + $0x38] sm:$0x7f] %vm1836_vm15, %v1759_v56  ;;  %v4272_v56 = vld [vmem:[%s4894_s30 + $0xd8] sm:$0x7f] }
 0x183   : > { %1842 = vst.msk [vmem:[#allocation2 + $0x30] sm:$0xff] %vm1834_vm1, %v1757_v57  ;;  %1778 = vrot.lane.b32.xlu1 %v4324_v54, %s4697_s21  ;;  %1776 = vrot.lane.b32.xlu0 %v1144_v47, %s4697_s21 }
 0x184   : > { %2284 = vst.msk [vmem:[#allocation3 + $0xd0] sm:$0xff] %vm2259_vm2, %v4678_v32  ;;  %2287 = vst.msk [vmem:[#allocation3 + $0xe8] sm:$0xff] %vm2259_vm2, %v4678_v32 }
 0x185   : > { %v1016_v7 = vpop.permute.xlu1 %1015  ;;  %v1014_v59 = vpop.permute.xlu0 %1013  ;;  %v1871_v11 = vld [vmem:[#allocation2 + $0x28] sm:$0xff]  ;;  %2290 = vst.msk [vmem:[#allocation3 + $0x100] sm:$0xff] %vm2259_vm2, %v4678_v32  ;;  %2293 = vst.msk [vmem:[#allocation3 + $0x118] sm:$0xff] %vm2259_vm2, %v4678_v32 }
 0x186   : > { %v1870_v60 = vld [vmem:[#allocation2 + $0x20] sm:$0xff]  ;;  %1103 = vst.msk [vmem:[#allocation2 + $0x48] sm:$0xff] %vm1093_vm9, %v1016_v7  ;;  %1102 = vst.msk [vmem:[#allocation2 + $0x40] sm:$0xff] %vm1093_vm9, %v1014_v59 }
 0x187   : > { %v1900_v5 = vpack.c.bf16 %v1871_v11, %v1870_v60  ;;  %1782 = vrot.lane.b32.xlu1 %v4326_v58, %s4697_s21  ;;  %1780 = vrot.lane.b32.xlu0 %v4325_v49, %s4697_s21  ;;  %2296 = vst.msk [vmem:[#allocation3 + $0x130] sm:$0xff] %vm2259_vm2, %v4678_v32  ;;  %2299 = vst.msk [vmem:[#allocation3 + $0x148] sm:$0xff] %vm2259_vm2, %v4678_v32  ;;  %v4273_v7 = vld [vmem:[%s4894_s30 + $0xe0] sm:$0xff] }
 0x188   : > { %2302 = vst.msk [vmem:[#allocation3 + $0x160] sm:$0xff] %vm2259_vm2, %v4678_v32  ;;  %2305 = vst.msk [vmem:[#allocation3 + $0x178] sm:$0xff] %vm2259_vm2, %v4678_v32 }
 0x189   : > { %4557 = vmatprep.mubr.msk.bf16.mxu0 %vm280_vm0, %v1900_v5  ;;  %v1020_v8 = vpop.permute.xlu1 %1019  ;;  %v1018_v17 = vpop.permute.xlu0 %1017  ;;  %v1873_v61 = vld [vmem:[#allocation2 + $0x38] sm:$0xff]  ;;  %2308 = vst.msk [vmem:[#allocation3 + $0x190] sm:$0xff] %vm2259_vm2, %v4678_v32  ;;  %2311 = vst.msk [vmem:[#allocation3 + $0x1a8] sm:$0xff] %vm2259_vm2, %v4678_v32 }
 0x18a   : > { %v1872_v6 = vld [vmem:[#allocation2 + $0x30] sm:$0xff]  ;;  %1105 = vst.msk [vmem:[#allocation2 + $0x58] sm:$0xff] %vm1093_vm9, %v1020_v8  ;;  %1104 = vst.msk [vmem:[#allocation2 + $0x50] sm:$0xff] %vm1093_vm9, %v1018_v17  ;;  %v4304_v8 = vld [vmem:[%s4894_s30 + $0xe8] sm:$0xff] }
 0x18b   : > { %v1901_v51 = vpack.c.bf16 %v1873_v61, %v1872_v6  ;;  %1039 = vrot.lane.b32.xlu1 %v4296_v3, %s4693_s11  ;;  %1037 = vrot.lane.b32.xlu0 %v4265_v44, %s4693_s11  ;;  %2314 = vst.msk [vmem:[#allocation3 + $0x1c0] sm:$0xff] %vm2259_vm2, %v4678_v32  ;;  %2317 = vst.msk [vmem:[#allocation3 + $0x1d8] sm:$0xff] %vm2259_vm2, %v4678_v32  ;;  %v1153_v3 = vld [vmem:[%s4894_s30 + $0xd9] sm:$0x7f] }
 0x18c   : > { %2320 = vst.msk [vmem:[#allocation3 + $0x1f0] sm:$0xff] %vm2259_vm2, %v4678_v32  ;;  %2323 = vst.msk [vmem:[#allocation3 + $0x208] sm:$0xff] %vm2259_vm2, %v4678_v32  ;;  %v4332_v61 = vld [vmem:[%s4894_s30 + $0xd9] sm:$0x7f] }
 0x18d   : > { %4558 = vmatmul.mubr.msk.bf16.gmra.mxu0 %vm280_vm0, %v1901_v51  ;;  %v1209_v63 = vpop.permute.xlu1 %1208  ;;  %v1207_v0 = vpop.permute.xlu0 %1206  ;;  %2326 = vst.msk [vmem:[#allocation3 + $0x220] sm:$0xff] %vm2259_vm2, %v4678_v32  ;;  %2329 = vst.msk [vmem:[#allocation3 + $0x238] sm:$0xff] %vm2259_vm2, %v4678_v32 }
 0x18e   : > { %1297 = vst.msk [vmem:[#allocation2 + $0x48] sm:$0x7f] %vm1288_vm10, %v1209_v63  ;;  %v4333_v63 = vld [vmem:[%s4894_s30 + $0xe1] sm:$0xff] }
 0x18f   : > { %1296 = vst.msk [vmem:[#allocation2 + $0x40] sm:$0xff] %vm1286_vm11, %v1207_v0  ;;  %1043 = vrot.lane.b32.xlu1 %v956_v62, %s4693_s11  ;;  %1041 = vrot.lane.b32.xlu0 %v955_v9, %s4693_s11 }
 0x190   : > { %2332 = vst.msk [vmem:[#allocation3 + $0x250] sm:$0xff] %vm2259_vm2, %v4678_v32  ;;  %2335 = vst.msk [vmem:[#allocation3 + $0x268] sm:$0xff] %vm2259_vm2, %v4678_v32 }
 0x191   : > { %v1213_v20 = vpop.permute.xlu1 %1212  ;;  %v1211_v21 = vpop.permute.xlu0 %1210  ;;  %2338 = vst.msk [vmem:[#allocation3 + $0x280] sm:$0xff] %vm2259_vm2, %v4678_v32  ;;  %2341 = vst.msk [vmem:[#allocation3 + $0x298] sm:$0xff] %vm2259_vm2, %v4678_v32 }
 0x192   : > { %1299 = vst.msk [vmem:[#allocation2 + $0x58] sm:$0x7f] %vm1288_vm10, %v1213_v20 }
 0x193   : > { %1298 = vst.msk [vmem:[#allocation2 + $0x50] sm:$0xff] %vm1286_vm11, %v1211_v21  ;;  %1232 = vrot.lane.b32.xlu1 %v1147_v10, %s4694_s12  ;;  %1230 = vrot.lane.b32.xlu0 %v4325_v49, %s4694_s12  ;;  %v4274_v49 = vld [vmem:[%s4894_s30 + $0xe8] sm:$0x7f] }
 0x194   : > { %2344 = vst.msk [vmem:[#allocation3 + $0x2b0] sm:$0xff] %vm2259_vm2, %v4678_v32  ;;  %2347 = vst.msk [vmem:[#allocation3 + $0x2c8] sm:$0xff] %vm2259_vm2, %v4678_v32 }
 0x195   : > { %v1400_v23 = vpop.permute.xlu1 %1399  ;;  %v1398_v13 = vpop.permute.xlu0 %1397  ;;  %2350 = vst.msk [vmem:[#allocation3 + $0x2e0] sm:$0xff] %vm2259_vm2, %v4678_v32  ;;  %2353 = vst.msk [vmem:[#allocation3 + $0x2f8] sm:$0xff] %vm2259_vm2, %v4678_v32 }
 0x196   : > { %1482 = vst.msk [vmem:[#allocation2 + $0x49] sm:$0x7f] %vm1473_vm12, %v1400_v23 }
 0x197   : > { %1481 = vst.msk [vmem:[#allocation2 + $0x41] sm:$0xff] %vm1471_vm13, %v1398_v13  ;;  %1236 = vrot.lane.b32.xlu1 %v1149_v12, %s4694_s12  ;;  %1234 = vrot.lane.b32.xlu0 %v1148_v22, %s4694_s12 }
 0x199   : > { %v1404_v25 = vpop.permute.xlu1 %1403  ;;  %v1402_v14 = vpop.permute.xlu0 %1401 }
 0x19a   : > { %1484 = vst.msk [vmem:[#allocation2 + $0x59] sm:$0x7f] %vm1473_vm12, %v1404_v25 }
 0x19b   : > { %1483 = vst.msk [vmem:[#allocation2 + $0x51] sm:$0xff] %vm1471_vm13, %v1402_v14  ;;  %1423 = vrot.lane.b32.xlu1 %v4268_v24, %s4695_s13  ;;  %1421 = vrot.lane.b32.xlu0 %v955_v9, %s4695_s13  ;;  %v1155_v14 = vld [vmem:[%s4894_s30 + $0xe9] sm:$0x7f] }
 0x19d   : > { %v1582_v15 = vpop.permute.xlu1 %1581  ;;  %v1580_v28 = vpop.permute.xlu0 %1579 }
 0x19e   : > { %1663 = vst.msk [vmem:[#allocation2 + $0x48] sm:$0xff] %vm1653_vm14, %v1582_v15  ;;  %1662 = vst.msk [vmem:[#allocation2 + $0x40] sm:$0xff] %vm1653_vm14, %v1580_v28  ;;  %v4276_v15 = vld [vmem:[%s4894_s30 + $0xf8] sm:$0x7f]  ;;  %v4275_v28 = vld [vmem:[%s4894_s30 + $0xf0] sm:$0xff] }
 0x19f   : > { %1427 = vrot.lane.b32.xlu1 %v4270_v26, %s4695_s13  ;;  %1425 = vrot.lane.b32.xlu0 %v5556_v27, %s4695_s13 }
 0x1a1   : > { %v1586_v29 = vpop.permute.xlu1 %1585  ;;  %v1584_v53 = vpop.permute.xlu0 %1583 }
 0x1a2   : > { %1665 = vst.msk [vmem:[#allocation2 + $0x58] sm:$0xff] %vm1653_vm14, %v1586_v29  ;;  %1664 = vst.msk [vmem:[#allocation2 + $0x50] sm:$0xff] %vm1653_vm14, %v1584_v53 }
 0x1a3   : > { %1605 = vrot.lane.b32.xlu1 %v956_v62, %s4696_s18  ;;  %1603 = vrot.lane.b32.xlu0 %v955_v9, %s4696_s18  ;;  %v4334_v9 = vld [vmem:[%s4894_s30 + $0xe9] sm:$0x7f] }
 0x1a5   : > { %v1763_v30 = vpop.permute.xlu1 %1762  ;;  %v1761_v18 = vpop.permute.xlu0 %1760 }
 0x1a6   : > { %1845 = vst.msk [vmem:[#allocation2 + $0x48] sm:$0x7f] %vm1836_vm15, %v1763_v30 }
 0x1a7   : > { %1844 = vst.msk [vmem:[#allocation2 + $0x40] sm:$0xff] %vm1834_vm1, %v1761_v18  ;;  %1609 = vrot.lane.b32.xlu1 %v5568_v16, %s4696_s18  ;;  %1607 = vrot.lane.b32.xlu0 %v5556_v27, %s4696_s18 }
 0x1a9   : > { %v1767_v31 = vpop.permute.xlu1 %1766  ;;  %v1765_v19 = vpop.permute.xlu0 %1764 }
 0x1aa   : > { %1847 = vst.msk [vmem:[#allocation2 + $0x58] sm:$0x7f] %vm1836_vm15, %v1767_v31 }
 0x1ab   : > { %1846 = vst.msk [vmem:[#allocation2 + $0x50] sm:$0xff] %vm1834_vm1, %v1765_v19  ;;  %1786 = vrot.lane.b32.xlu1 %v4328_v55, %s4697_s21  ;;  %1784 = vrot.lane.b32.xlu0 %v1148_v22, %s4697_s21  ;;  %v4306_v55 = vld [vmem:[%s4894_s30 + $0xf8] sm:$0xff] }
 0x1ad   : > { %v1024_v33 = vpop.permute.xlu1 %1023  ;;  %v1022_v34 = vpop.permute.xlu0 %1021  ;;  %v1875_v36 = vld [vmem:[#allocation2 + $0x48] sm:$0xff] }
 0x1ae   : > { %v1874_v35 = vld [vmem:[#allocation2 + $0x40] sm:$0xff]  ;;  %1107 = vst.msk [vmem:[#allocation2 + $0x68] sm:$0xff] %vm1093_vm9, %v1024_v33  ;;  %1106 = vst.msk [vmem:[#allocation2 + $0x60] sm:$0xff] %vm1093_vm9, %v1022_v34  ;;  %v4335_v33 = vld [vmem:[%s4894_s30 + $0xf1] sm:$0xff] }
 0x1af   : > { %v1902_v37 = vpack.c.bf16 %v1875_v36, %v1874_v35  ;;  %1790 = vrot.lane.b32.xlu1 %v4330_v4, %s4697_s21  ;;  %1788 = vrot.lane.b32.xlu0 %v4329_v2, %s4697_s21  ;;  %v1157_v36 = vld [vmem:[%s4894_s30 + $0xf9] sm:$0x7f] }
 0x1b1   : > { %4561 = vmatprep.mubr.msk.bf16.mxu0 %vm280_vm0, %v1902_v37  ;;  %v1028_v47 = vpop.permute.xlu1 %1027  ;;  %v1026_v38 = vpop.permute.xlu0 %1025  ;;  %v1877_v40 = vld [vmem:[#allocation2 + $0x58] sm:$0xff] }
 0x1b2   : > { %v1876_v39 = vld [vmem:[#allocation2 + $0x50] sm:$0xff]  ;;  %1109 = vst.msk [vmem:[#allocation2 + $0x78] sm:$0xff] %vm1093_vm9, %v1028_v47  ;;  %1108 = vst.msk [vmem:[#allocation2 + $0x70] sm:$0xff] %vm1093_vm9, %v1026_v38 }
 0x1b3   : > { %v1903_v41 = vpack.c.bf16 %v1877_v40, %v1876_v39  ;;  %1047 = vrot.lane.b32.xlu1 %v5568_v16, %s4693_s11  ;;  %1045 = vrot.lane.b32.xlu0 %v5556_v27, %s4693_s11  ;;  %v770_v16 = vld [vmem:[%s4894_s30 + $0xf8] sm:$0x7f] }
 0x1b5   : > { %4562 = vmatmul.mubr.msk.bf16.gmra.mxu0 %vm280_vm0, %v1903_v41  ;;  %v1217_v44 = vpop.permute.xlu1 %1216  ;;  %v1215_v45 = vpop.permute.xlu0 %1214 }
 0x1b6   : > { %1301 = vst.msk [vmem:[#allocation2 + $0x68] sm:$0x7f] %vm1288_vm10, %v1217_v44 }
 0x1b7   : > { %1300 = vst.msk [vmem:[#allocation2 + $0x60] sm:$0xff] %vm1286_vm11, %v1215_v45  ;;  %1051 = vrot.lane.b32.xlu1 %v960_v42, %s4693_s11  ;;  %1049 = vrot.lane.b32.xlu0 %v959_v43, %s4693_s11 }
 0x1b9   : > { %v1221_v48 = vpop.permute.xlu1 %1220  ;;  %v1219_v1 = vpop.permute.xlu0 %1218 }
 0x1ba   : > { %1303 = vst.msk [vmem:[#allocation2 + $0x78] sm:$0x7f] %vm1288_vm10, %v1221_v48 }
 0x1bb   : > { %1302 = vst.msk [vmem:[#allocation2 + $0x70] sm:$0xff] %vm1286_vm11, %v1219_v1  ;;  %1240 = vrot.lane.b32.xlu1 %v1151_v46, %s4694_s12  ;;  %1238 = vrot.lane.b32.xlu0 %v4329_v2, %s4694_s12  ;;  %v4336_v2 = vld [vmem:[%s4894_s30 + $0xf9] sm:$0x7f]  ;;  %s4698_s30 = smov 64  }
 0x1bd   : > { %v1408_v52 = vpop.permute.xlu1 %1407  ;;  %v1406_v54 = vpop.permute.xlu0 %1405 }
 0x1be   : > { %1486 = vst.msk [vmem:[#allocation2 + $0x69] sm:$0x7f] %vm1473_vm12, %v1408_v52 }
 0x1bf   : > { %1485 = vst.msk [vmem:[#allocation2 + $0x61] sm:$0xff] %vm1471_vm13, %v1406_v54  ;;  %1244 = vrot.lane.b32.xlu1 %v1153_v3, %s4694_s12  ;;  %1242 = vrot.lane.b32.xlu0 %v1152_v50, %s4694_s12 }
 0x1c1   : > { %v1412_v57 = vpop.permute.xlu1 %1411  ;;  %v1410_v58 = vpop.permute.xlu0 %1409 }
 0x1c2   : > { %1488 = vst.msk [vmem:[#allocation2 + $0x79] sm:$0x7f] %vm1473_vm12, %v1412_v57 }
 0x1c3   : > { %1487 = vst.msk [vmem:[#allocation2 + $0x71] sm:$0xff] %vm1471_vm13, %v1410_v58  ;;  %1431 = vrot.lane.b32.xlu1 %v4272_v56, %s4695_s13  ;;  %1429 = vrot.lane.b32.xlu0 %v959_v43, %s4695_s13 }
 0x1c5   : > { %v1590_v59 = vpop.permute.xlu1 %1589  ;;  %v1588_v60 = vpop.permute.xlu0 %1587 }
 0x1c6   : > { %1667 = vst.msk [vmem:[#allocation2 + $0x68] sm:$0xff] %vm1653_vm14, %v1590_v59  ;;  %1666 = vst.msk [vmem:[#allocation2 + $0x60] sm:$0xff] %vm1653_vm14, %v1588_v60 }
 0x1c7   : > { %1435 = vrot.lane.b32.xlu1 %v4274_v49, %s4695_s13  ;;  %1433 = vrot.lane.b32.xlu0 %v4273_v7, %s4695_s13 }
 0x1c9   : > { %v1594_v11 = vpop.permute.xlu1 %1593  ;;  %v1592_v5 = vpop.permute.xlu0 %1591 }
 0x1ca   : > { %1669 = vst.msk [vmem:[#allocation2 + $0x78] sm:$0xff] %vm1653_vm14, %v1594_v11  ;;  %1668 = vst.msk [vmem:[#allocation2 + $0x70] sm:$0xff] %vm1653_vm14, %v1592_v5 }
 0x1cb   : > { %1613 = vrot.lane.b32.xlu1 %v960_v42, %s4696_s18  ;;  %1611 = vrot.lane.b32.xlu0 %v959_v43, %s4696_s18 }
 0x1cd   : > { %v1771_v17 = vpop.permute.xlu1 %1770  ;;  %v1769_v6 = vpop.permute.xlu0 %1768 }
 0x1ce   : > { %1849 = vst.msk [vmem:[#allocation2 + $0x68] sm:$0x7f] %vm1836_vm15, %v1771_v17 }
 0x1cf   : > { %1848 = vst.msk [vmem:[#allocation2 + $0x60] sm:$0xff] %vm1834_vm1, %v1769_v6  ;;  %1617 = vrot.lane.b32.xlu1 %v4304_v8, %s4696_s18  ;;  %1615 = vrot.lane.b32.xlu0 %v4273_v7, %s4696_s18 }
 0x1d1   : > { %v1775_v51 = vpop.permute.xlu1 %1774  ;;  %v1773_v62 = vpop.permute.xlu0 %1772 }
 0x1d2   : > { %1851 = vst.msk [vmem:[#allocation2 + $0x78] sm:$0x7f] %vm1836_vm15, %v1775_v51 }
 0x1d3   : > { %1850 = vst.msk [vmem:[#allocation2 + $0x70] sm:$0xff] %vm1834_vm1, %v1773_v62  ;;  %1794 = vrot.lane.b32.xlu1 %v4332_v61, %s4697_s21  ;;  %1792 = vrot.lane.b32.xlu0 %v1152_v50, %s4697_s21  ;;  %v5744_v62 = vld [vmem:[%s7217_s3] ss:$0 sm:$0xff] }
 0x1d5   : > { %v1879_v10 = vld [vmem:[#allocation2 + $0x68] sm:$0xff]  ;;  %v1032_v20 = vpop.permute.xlu1 %1031  ;;  %v1030_v21 = vpop.permute.xlu0 %1029 }
 0x1d6   : > { %v1878_v0 = vld [vmem:[#allocation2 + $0x60] sm:$0xff]  ;;  %1111 = vst.msk [vmem:[#allocation2 + $0x88] sm:$0xff] %vm1093_vm9, %v1032_v20  ;;  %1110 = vst.msk [vmem:[#allocation2 + $0x80] sm:$0xff] %vm1093_vm9, %v1030_v21 }
 0x1d7   : > { %v1904_v12 = vpack.c.bf16 %v1879_v10, %v1878_v0  ;;  %1798 = vrot.lane.b32.xlu1 %v4334_v9, %s4697_s21  ;;  %1796 = vrot.lane.b32.xlu0 %v4333_v63, %s4697_s21  ;;  %v5749_v21 = vld [vmem:[%s7218_s4] ss:$0 sm:$0xff] }
 0x1d9   : > { %4565 = vmatprep.mubr.msk.bf16.mxu0 %vm280_vm0, %v1904_v12  ;;  %v1881_v23 = vld [vmem:[#allocation2 + $0x78] sm:$0xff]  ;;  %v1036_v13 = vpop.permute.xlu1 %1035  ;;  %v1034_v24 = vpop.permute.xlu0 %1033 }
 0x1da   : > { %v1880_v22 = vld [vmem:[#allocation2 + $0x70] sm:$0xff]  ;;  %1113 = vst.msk [vmem:[#allocation2 + $0x98] sm:$0xff] %vm1093_vm9, %v1036_v13  ;;  %1112 = vst.msk [vmem:[#allocation2 + $0x90] sm:$0xff] %vm1093_vm9, %v1034_v24 }
 0x1db   : > { %v1905_v25 = vpack.c.bf16 %v1881_v23, %v1880_v22  ;;  %1055 = vrot.lane.b32.xlu1 %v4304_v8, %s4693_s11  ;;  %1053 = vrot.lane.b32.xlu0 %v4273_v7, %s4693_s11 }
 0x1dd   : > { %4566 = vmatmul.mubr.msk.bf16.gmra.mxu0 %vm280_vm0, %v1905_v25  ;;  %v1225_v26 = vpop.permute.xlu1 %1224  ;;  %v1223_v27 = vpop.permute.xlu0 %1222 }
 0x1de   : > { %1305 = vst.msk [vmem:[#allocation2 + $0x88] sm:$0x7f] %vm1288_vm10, %v1225_v26 }
 0x1df   : > { %1304 = vst.msk [vmem:[#allocation2 + $0x80] sm:$0xff] %vm1286_vm11, %v1223_v27  ;;  %1248 = vrot.lane.b32.xlu1 %v1155_v14, %s4694_s12  ;;  %1246 = vrot.lane.b32.xlu0 %v4333_v63, %s4694_s12 }
 0x1e1   : > { %v1229_v29 = vpop.permute.xlu1 %1228  ;;  %v1227_v53 = vpop.permute.xlu0 %1226 }
 0x1e2   : > { %1307 = vst.msk [vmem:[#allocation2 + $0x98] sm:$0x7f] %vm1288_vm10, %v1229_v29 }
 0x1e3   : > { %1306 = vst.msk [vmem:[#allocation2 + $0x90] sm:$0xff] %vm1286_vm11, %v1227_v53  ;;  %1439 = vrot.lane.b32.xlu1 %v4276_v15, %s4695_s13  ;;  %1437 = vrot.lane.b32.xlu0 %v4275_v28, %s4695_s13 }
 0x1e5   : > { %v1416_v30 = vpop.permute.xlu1 %1415  ;;  %v1414_v18 = vpop.permute.xlu0 %1413 }
 0x1e6   : > { %1490 = vst.msk [vmem:[#allocation2 + $0x89] sm:$0x7f] %vm1473_vm12, %v1416_v30 }
 0x1e7   : > { %1489 = vst.msk [vmem:[#allocation2 + $0x81] sm:$0xff] %vm1471_vm13, %v1414_v18  ;;  %865 = vrot.lane.b32.xlu1 %v770_v16, %s4692_s10  ;;  %863 = vrot.lane.b32.xlu0 %v4275_v28, %s4692_s10 }
 0x1e9   : > { %v1420_v31 = vpop.permute.xlu1 %1419  ;;  %v1418_v19 = vpop.permute.xlu0 %1417 }
 0x1ea   : > { %1492 = vst.msk [vmem:[#allocation2 + $0x99] sm:$0x7f] %vm1473_vm12, %v1420_v31 }
 0x1eb   : > { %1491 = vst.msk [vmem:[#allocation2 + $0x91] sm:$0xff] %vm1471_vm13, %v1418_v19  ;;  %1621 = vrot.lane.b32.xlu1 %v4306_v55, %s4696_s18  ;;  %1619 = vrot.lane.b32.xlu0 %v4275_v28, %s4696_s18 }
 0x1ed   : > { %v1598_v32 = vpop.permute.xlu1 %1597  ;;  %v1596_v4 = vpop.permute.xlu0 %1595 }
 0x1ee   : > { %1671 = vst.msk [vmem:[#allocation2 + $0x88] sm:$0xff] %vm1653_vm14, %v1598_v32  ;;  %1670 = vst.msk [vmem:[#allocation2 + $0x80] sm:$0xff] %vm1653_vm14, %v1596_v4 }
 0x1ef   : > { %1059 = vrot.lane.b32.xlu1 %v4306_v55, %s4693_s11  ;;  %1057 = vrot.lane.b32.xlu0 %v4275_v28, %s4693_s11 }
 0x1f1   : > { %v1602_v34 = vpop.permute.xlu1 %1601  ;;  %v1600_v35 = vpop.permute.xlu0 %1599 }
 0x1f2   : > { %1673 = vst.msk [vmem:[#allocation2 + $0x98] sm:$0xff] %vm1653_vm14, %v1602_v34  ;;  %1672 = vst.msk [vmem:[#allocation2 + $0x90] sm:$0xff] %vm1653_vm14, %v1600_v35 }
 0x1f3   : > { %1802 = vrot.lane.b32.xlu1 %v4336_v2, %s4697_s21  ;;  %1800 = vrot.lane.b32.xlu0 %v4335_v33, %s4697_s21 }
 0x1f5   : > { %v1779_v37 = vpop.permute.xlu1 %1778  ;;  %v1777_v47 = vpop.permute.xlu0 %1776 }
 0x1f6   : > { %1853 = vst.msk [vmem:[#allocation2 + $0x88] sm:$0x7f] %vm1836_vm15, %v1779_v37 }
 0x1f7   : > { %1852 = vst.msk [vmem:[#allocation2 + $0x80] sm:$0xff] %vm1834_vm1, %v1777_v47  ;;  %1252 = vrot.lane.b32.xlu1 %v1157_v36, %s4694_s12  ;;  %1250 = vrot.lane.b32.xlu0 %v4335_v33, %s4694_s12 }
 0x1f9   : > { %v1783_v38 = vpop.permute.xlu1 %1782  ;;  %v1781_v39 = vpop.permute.xlu0 %1780 }
 0x1fa   : > { %1855 = vst.msk [vmem:[#allocation2 + $0x98] sm:$0x7f] %vm1836_vm15, %v1783_v38 }
 0x1fb   : > { %1854 = vst.msk [vmem:[#allocation2 + $0x90] sm:$0xff] %vm1834_vm1, %v1781_v39 }
 0x1fd   : > { %v1883_v41 = vld [vmem:[#allocation2 + $0x88] sm:$0xff]  ;;  %v1040_v42 = vpop.permute.xlu1 %1039  ;;  %v1038_v43 = vpop.permute.xlu0 %1037 }
 0x1fe   : > { %v1882_v40 = vld [vmem:[#allocation2 + $0x80] sm:$0xff]  ;;  %1115 = vst.msk [vmem:[#allocation2 + $0xa8] sm:$0xff] %vm1093_vm9, %v1040_v42  ;;  %1114 = vst.msk [vmem:[#allocation2 + $0xa0] sm:$0xff] %vm1093_vm9, %v1038_v43 }
 0x1ff   : > { %v1906_v44 = vpack.c.bf16 %v1883_v41, %v1882_v40 }
 0x201   : > { %4569 = vmatprep.mubr.msk.bf16.mxu0 %vm280_vm0, %v1906_v44  ;;  %v1885_v46 = vld [vmem:[#allocation2 + $0x98] sm:$0xff]  ;;  %v1044_v48 = vpop.permute.xlu1 %1043  ;;  %v1042_v1 = vpop.permute.xlu0 %1041 }
 0x202   : > { %v1884_v45 = vld [vmem:[#allocation2 + $0x90] sm:$0xff]  ;;  %1117 = vst.msk [vmem:[#allocation2 + $0xb8] sm:$0xff] %vm1093_vm9, %v1044_v48  ;;  %1116 = vst.msk [vmem:[#allocation2 + $0xb0] sm:$0xff] %vm1093_vm9, %v1042_v1 }
 0x203   : > { %v1907_v3 = vpack.c.bf16 %v1885_v46, %v1884_v45 }
 0x205   : > { %4570 = vmatmul.mubr.msk.bf16.gmra.mxu0 %vm280_vm0, %v1907_v3  ;;  %v1233_v50 = vpop.permute.xlu1 %1232  ;;  %v1231_v52 = vpop.permute.xlu0 %1230 }
 0x206   : > { %1309 = vst.msk [vmem:[#allocation2 + $0xa8] sm:$0x7f] %vm1288_vm10, %v1233_v50 }
 0x207   : > { %1308 = vst.msk [vmem:[#allocation2 + $0xa0] sm:$0xff] %vm1286_vm11, %v1231_v52  ;;  %v4660_v52 = vld [vmem:[%s7216_s2 + $0x78] sm:$0xff]  }
 0x208   : > { %4621 = vmatprep.subr.bf16.mxu1 %v4660_v52  ;;  %4417 = vmatprep.subr.bf16.mxu0 %v4660_v52 }
 0x209   : > { %v1237_v54 = vpop.permute.xlu1 %1236  ;;  %v1235_v56 = vpop.permute.xlu0 %1234 }
 0x20a   : > { %1311 = vst.msk [vmem:[#allocation2 + $0xb8] sm:$0x7f] %vm1288_vm10, %v1237_v54  ;;  %v4661_v54 = vld [vmem:[%s7216_s2 + $0x38] sm:$0xff]  }
 0x20b   : > { %1310 = vst.msk [vmem:[#allocation2 + $0xb0] sm:$0xff] %vm1286_vm11, %v1235_v56  ;;  %4629 = vmatpush3.bf16.msra.mxu1 %v4661_v54  ;;  %4418 = vmatpush3.bf16.msra.mxu0 %v4661_v54 }
 0x20d   : > { %v1424_v57 = vpop.permute.xlu1 %1423  ;;  %v1422_v58 = vpop.permute.xlu0 %1421 }
 0x20e   : > { %1494 = vst.msk [vmem:[#allocation2 + $0xa9] sm:$0x7f] %vm1473_vm12, %v1424_v57 }
 0x20f   : > { %1493 = vst.msk [vmem:[#allocation2 + $0xa1] sm:$0xff] %vm1471_vm13, %v1422_v58  ;;  %v4662_v58 = vld [vmem:[%s7216_s2 + $0x70] sm:$0xff]  }
 0x210   : > { %4622 = vmatprep.subr.bf16.mxu1 %v4662_v58  ;;  %4419 = vmatprep.subr.bf16.mxu0 %v4662_v58 }
 0x211   : > { %v1428_v49 = vpop.permute.xlu1 %1427  ;;  %v1426_v7 = vpop.permute.xlu0 %1425 }
 0x212   : > { %1496 = vst.msk [vmem:[#allocation2 + $0xb9] sm:$0x7f] %vm1473_vm12, %v1428_v49 }
 0x213   : > { %1495 = vst.msk [vmem:[#allocation2 + $0xb1] sm:$0xff] %vm1471_vm13, %v1426_v7 }
 0x215   : > { %v1606_v59 = vpop.permute.xlu1 %1605  ;;  %v1604_v60 = vpop.permute.xlu0 %1603 }
 0x216   : > { %1675 = vst.msk [vmem:[#allocation2 + $0xa8] sm:$0xff] %vm1653_vm14, %v1606_v59  ;;  %1674 = vst.msk [vmem:[#allocation2 + $0xa0] sm:$0xff] %vm1653_vm14, %v1604_v60  ;;  %v4663_v59 = vld [vmem:[%s7216_s2 + $0x30] sm:$0xff]  }
 0x217   : > { %4630 = vmatpush3.bf16.msra.mxu1 %v4663_v59  ;;  %4420 = vmatpush3.bf16.msra.mxu0 %v4663_v59  ;;  %v4672_v59 = vld [vmem:[%s7216_s2 + $0x48] sm:$0xff]  }
 0x219   : > { %v1610_v11 = vpop.permute.xlu1 %1609  ;;  %v1608_v5 = vpop.permute.xlu0 %1607 }
 0x21a   : > { %1677 = vst.msk [vmem:[#allocation2 + $0xb8] sm:$0xff] %vm1653_vm14, %v1610_v11  ;;  %1676 = vst.msk [vmem:[#allocation2 + $0xb0] sm:$0xff] %vm1653_vm14, %v1608_v5  ;;  %v4664_v11 = vld [vmem:[%s7216_s2 + $0x68] sm:$0xff]  }
 0x21b   : > { %4623 = vmatprep.subr.bf16.mxu1 %v4664_v11  ;;  %4421 = vmatprep.subr.bf16.mxu0 %v4664_v11 }
 0x21d   : > { %v1787_v8 = vpop.permute.xlu1 %1786  ;;  %v1785_v17 = vpop.permute.xlu0 %1784 }
 0x21e   : > { %1857 = vst.msk [vmem:[#allocation2 + $0xa8] sm:$0x7f] %vm1836_vm15, %v1787_v8 }
 0x21f   : > { %1856 = vst.msk [vmem:[#allocation2 + $0xa0] sm:$0xff] %vm1834_vm1, %v1785_v17 }
 0x221   : > { %v1791_v6 = vpop.permute.xlu1 %1790  ;;  %v1789_v61 = vpop.permute.xlu0 %1788 }
 0x222   : > { %1859 = vst.msk [vmem:[#allocation2 + $0xb8] sm:$0x7f] %vm1836_vm15, %v1791_v6 }
 0x223   : > { %1858 = vst.msk [vmem:[#allocation2 + $0xb0] sm:$0xff] %vm1834_vm1, %v1789_v61 }
 0x225   : > { %v4555_v51 = vpop.f32.mrf.mxu0  ;;  %v1887_v0 = vld [vmem:[#allocation2 + $0xa8] sm:$0xff]  ;;  %v1048_v10 = vpop.permute.xlu1 %1047 }
 0x226   : > { %v2149_v9 = vmax.f32 %v4555_v51, 0.0  ;;  %v1886_v63 = vld [vmem:[#allocation2 + $0xa0] sm:$0xff]  ;;  %v1046_v20 = vpop.permute.xlu0 %1045  ;;  %1119 = vst.msk [vmem:[#allocation2 + $0xc8] sm:$0xff] %vm1093_vm9, %v1048_v10  ;;  %v4665_v51 = vld [vmem:[%s7216_s2 + $0x28] sm:$0xff]  }
 0x227   : > { %v2020_v12 = vpop.f32.mrf.mxu0  ;;  %v1908_v22 = vpack.c.bf16 %v1887_v0, %v1886_v63  ;;  %1118 = vst.msk [vmem:[#allocation2 + $0xc0] sm:$0xff] %vm1093_vm9, %v1046_v20  ;;  %4631 = vmatpush3.bf16.msra.mxu1 %v4665_v51  ;;  %4422 = vmatpush3.bf16.msra.mxu0 %v4665_v51 }
 0x228   : > { %v2188_v23 = vmul.f32 %v5744_v62, %v2149_v9  ;;  %v2147_v13 = vmax.f32 %v2020_v12, 0.0  ;;  %v4666_v12 = vld [vmem:[%s7216_s2 + $0x60] sm:$0xff]  }
 0x229   : > { %v4556_v24 = vpop.f32.mrf.mxu0  ;;  %4573 = vmatprep.mubr.msk.bf16.mxu0 %vm280_vm0, %v1908_v22  ;;  %v1889_v15 = vld [vmem:[#allocation2 + $0xb8] sm:$0xff]  ;;  %v1052_v28 = vpop.permute.xlu1 %1051  ;;  %4624 = vmatprep.subr.bf16.mxu1 %v4666_v12 }
 0x22a   : > { %v5756_v25 = vadd.f32 %v5749_v21, %v2188_v23  ;;  %v2186_v14 = vmul.f32 %v5744_v62, %v2147_v13  ;;  %v2150_v26 = vmax.f32 %v4556_v24, 0.0  ;;  %v1888_v27 = vld [vmem:[#allocation2 + $0xb0] sm:$0xff]  ;;  %v1050_v29 = vpop.permute.xlu0 %1049  ;;  %1121 = vst.msk [vmem:[#allocation2 + $0xd8] sm:$0xff] %vm1093_vm9, %v1052_v28  ;;  %4423 = vmatprep.subr.bf16.mxu0 %v4666_v12 }
 0x22b   : > { %v2023_v53 = vpop.f32.mrf.mxu0  ;;  %v1909_v16 = vpack.c.bf16 %v1889_v15, %v1888_v27  ;;  %1120 = vst.msk [vmem:[#allocation2 + $0xd0] sm:$0xff] %vm1093_vm9, %v1050_v29  ;;  %v4667_v15 = vld [vmem:[%s7216_s2 + $0x20] sm:$0xff]  }
 0x22c   : > { %v5762_v30 = vadd.f32 %v5749_v21, %v2186_v14  ;;  %v2189_v18 = vmul.f32 %v5744_v62, %v2150_v26  ;;  %v2148_v55 = vmax.f32 %v2023_v53, 0.0  ;;  %2918 = vst.msk [vmem:[#allocation3 + $0x38] sm:$0xff] %vm2259_vm2, %v5756_v25  ;;  %v5769_v31 = vrot.slane %v5756_v25, 7  ;;  %4632 = vmatpush3.bf16.msra.mxu1 %v4667_v15  ;;  %4424 = vmatpush3.bf16.msra.mxu0 %v4667_v15 }
 0x22d   : > { %4574 = vmatmul.mubr.msk.bf16.gmra.mxu0 %vm280_vm0, %v1909_v16  ;;  %v1241_v4 = vpop.permute.xlu1 %1240  ;;  %v2617_v36 = vrot.slane %v5756_v25, 1 }
 0x22e   : > { %v5772_v19 = vadd.f32 %v5749_v21, %v2189_v18  ;;  %v2187_v32 = vmul.f32 %v5744_v62, %v2148_v55  ;;  %2916 = vst.msk [vmem:[#allocation3 + $0x8] sm:$0xff] %vm2259_vm2, %v5762_v30  ;;  %v1239_v2 = vpop.permute.xlu0 %1238  ;;  %v5778_v33 = vrot.slane %v5762_v30, 7 }
 0x22f   : > { %1313 = vst.msk [vmem:[#allocation2 + $0xc8] sm:$0x7f] %vm1288_vm10, %v1241_v4 }
 0x230   : > { %1312 = vst.msk [vmem:[#allocation2 + $0xc0] sm:$0xff] %vm1286_vm11, %v1239_v2  ;;  %v5785_v34 = vadd.f32 %v5749_v21, %v2187_v32  ;;  %v5788_v35 = vrot.slane %v5772_v19, 1  ;;  %v2389_v37 = vrot.slane %v5772_v19, 7  ;;  %v4668_v32 = vld [vmem:[%s7216_s2 + $0x58] sm:$0xff]  }
 0x231   : > { %2464 = vst.msk [vmem:[#allocation3 + $0x60] sm:$0xfe] %vm2461_vm3, %v5769_v31  ;;  %2462 = vst.msk [vmem:[#allocation3 + $0x30] sm:$0xfe] %vm2461_vm3, %v5778_v33  ;;  %v1245_v38 = vpop.permute.xlu1 %1244  ;;  %4625 = vmatprep.subr.bf16.mxu1 %v4668_v32  ;;  %4425 = vmatprep.subr.bf16.mxu0 %v4668_v32 }
 0x232   : > { %2919 = vst.msk [vmem:[#allocation3 + $0x50] sm:$0xff] %vm2259_vm2, %v5772_v19  ;;  %2957 = vrot.lane.b32.xlu1 %v5788_v35, %s4697_s21  ;;  %2917 = vst.msk [vmem:[#allocation3 + $0x20] sm:$0xff] %vm2259_vm2, %v5785_v34  ;;  %v5804_v47 = vsel %vm2613_vm5, %v2617_v36, %v5788_v35  ;;  %v1243_v39 = vpop.permute.xlu0 %1242  ;;  %v5808_v40 = vsel %vm2384_vm6, %v5769_v31, %v2389_v37  ;;  %v2386_v41 = vrot.slane %v5785_v34, 7 }
 0x233   : > { %3353 = vst.msk [vmem:[#allocation3 + $0x28] sm:$0x7f] %vm3352_vm4, %v5788_v35  ;;  %2955 = vrot.lane.b32.xlu0 %v5804_v47, %s4697_s21 }
 0x234   : > { %3351 = vst.msk [vmem:[#allocation3 + $0x10] sm:$0xff] %vm2259_vm2, %v5804_v47  ;;  %2465 = vst.msk [vmem:[#allocation3 + $0x78] sm:$0xff] %vm2259_vm2, %v5808_v40  ;;  %v5821_v42 = vsel %vm2384_vm6, %v5778_v33, %v2386_v41  ;;  %v5903_v41 = vrot.slane %v5785_v34, 1 }
 0x235   : > { %1315 = vst.msk [vmem:[#allocation2 + $0xd8] sm:$0x7f] %vm1288_vm10, %v1245_v38  ;;  %v1432_v43 = vpop.permute.xlu1 %1431 }
 0x236   : > { %1314 = vst.msk [vmem:[#allocation2 + $0xd0] sm:$0xff] %vm1286_vm11, %v1243_v39  ;;  %2494 = vrot.lane.b32.xlu1 %v5785_v34, %s4697_s21  ;;  %v1430_v44 = vpop.permute.xlu0 %1429  ;;  %v4669_v39 = vld [vmem:[%s7216_s2 + $0x18] sm:$0xff]  }
 0x237   : > { %2463 = vst.msk [vmem:[#allocation3 + $0x48] sm:$0xff] %vm2259_vm2, %v5821_v42  ;;  %2492 = vrot.lane.b32.xlu0 %v5762_v30, %s4697_s21  ;;  %4633 = vmatpush3.bf16.msra.mxu1 %v4669_v39 }
 0x238   : > { %1498 = vst.msk [vmem:[#allocation2 + $0xc9] sm:$0x7f] %vm1473_vm12, %v1432_v43  ;;  %4426 = vmatpush3.bf16.msra.mxu0 %v4669_v39 }
 0x239   : > { %1497 = vst.msk [vmem:[#allocation2 + $0xc1] sm:$0xff] %vm1471_vm13, %v1430_v44  ;;  %v1436_v45 = vpop.permute.xlu1 %1435 }
 0x23a   : > { %v1434_v46 = vpop.permute.xlu0 %1433  ;;  %1500 = vst.msk [vmem:[#allocation2 + $0xd9] sm:$0x7f] %vm1473_vm12, %v1436_v45 }
 0x23b   : > { %1499 = vst.msk [vmem:[#allocation2 + $0xd1] sm:$0xff] %vm1471_vm13, %v1434_v46  ;;  %v2614_v46 = vrot.slane %v5762_v30, 1 }
 0x23d   : > { %v1614_v48 = vpop.permute.xlu1 %1613  ;;  %v5947_v58 = vsel %vm2613_vm5, %v2614_v46, %v5903_v41 }
 0x23e   : > { %v1612_v1 = vpop.permute.xlu0 %1611  ;;  %1679 = vst.msk [vmem:[#allocation2 + $0xc8] sm:$0xff] %vm1653_vm14, %v1614_v48 }
 0x23f   : > { %1678 = vst.msk [vmem:[#allocation2 + $0xc0] sm:$0xff] %vm1653_vm14, %v1612_v1  ;;  %v4670_v1 = vld [vmem:[%s7216_s2 + $0x50] sm:$0xff]  }
 0x240   : > { %4626 = vmatprep.subr.bf16.mxu1 %v4670_v1  ;;  %4427 = vmatprep.subr.bf16.mxu0 %v4670_v1 }
 0x241   : > { %v1618_v3 = vpop.permute.xlu1 %1617 }
 0x242   : > { %v1616_v50 = vpop.permute.xlu0 %1615  ;;  %1681 = vst.msk [vmem:[#allocation2 + $0xd8] sm:$0xff] %vm1653_vm14, %v1618_v3 }
 0x243   : > { %1680 = vst.msk [vmem:[#allocation2 + $0xd0] sm:$0xff] %vm1653_vm14, %v1616_v50 }
 0x245   : > { %v1795_v56 = vpop.permute.xlu1 %1794 }
 0x246   : > { %v1793_v57 = vpop.permute.xlu0 %1792  ;;  %1861 = vst.msk [vmem:[#allocation2 + $0xc8] sm:$0x7f] %vm1836_vm15, %v1795_v56 }
 0x247   : > { %1860 = vst.msk [vmem:[#allocation2 + $0xc0] sm:$0xff] %vm1834_vm1, %v1793_v57  ;;  %v4671_v57 = vld [vmem:[%s7216_s2 + $0x10] sm:$0xff]  }
 0x248   : > { %4634 = vmatpush3.bf16.msra.mxu1 %v4671_v57  ;;  %4428 = vmatpush3.bf16.msra.mxu0 %v4671_v57 }
 0x249   : > { %v1799_v49 = vpop.permute.xlu1 %1798  ;;  %4627 = vmatprep.subr.bf16.mxu1 %v4672_v59  ;;  %4429 = vmatprep.subr.bf16.mxu0 %v4672_v59 }
 0x24a   : > { %v1797_v7 = vpop.permute.xlu0 %1796  ;;  %1863 = vst.msk [vmem:[#allocation2 + $0xd8] sm:$0x7f] %vm1836_vm15, %v1799_v49 }
 0x24b   : > { %1862 = vst.msk [vmem:[#allocation2 + $0xd0] sm:$0xff] %vm1834_vm1, %v1797_v7 }
 0x24d   : > { %v4559_v60 = vpop.f32.mrf.mxu0  ;;  %v1891_v17 = vld [vmem:[#allocation2 + $0xc8] sm:$0xff]  ;;  %v1056_v6 = vpop.permute.xlu1 %1055 }
 0x24e   : > { %v2153_v5 = vmax.f32 %v4559_v60, 0.0  ;;  %v1890_v8 = vld [vmem:[#allocation2 + $0xc0] sm:$0xff]  ;;  %v1054_v61 = vpop.permute.xlu0 %1053  ;;  %1123 = vst.msk [vmem:[#allocation2 + $0xe8] sm:$0xff] %vm1093_vm9, %v1056_v6 }
 0x24f   : > { %v2036_v9 = vpop.f32.mrf.mxu0  ;;  %v1910_v63 = vpack.c.bf16 %v1891_v17, %v1890_v8  ;;  %1122 = vst.msk [vmem:[#allocation2 + $0xe0] sm:$0xff] %vm1093_vm9, %v1054_v61  ;;  %v4674_v8 = vld [vmem:[%s7216_s2 + $0x40] sm:$0xff]  }
 0x250   : > { %v2192_v0 = vmul.f32 %v5744_v62, %v2153_v5  ;;  %v2151_v10 = vmax.f32 %v2036_v9, 0.0  ;;  %v4673_v5 = vld [vmem:[%s7216_s2 + $0x8] sm:$0xff]   ;;  %v4675_v61 = vld [vmem:[%s7216_s2] sm:$0xff]  }
 0x251   : > { %v4560_v20 = vpop.f32.mrf.mxu0  ;;  %4577 = vmatprep.mubr.msk.bf16.mxu0 %vm280_vm0, %v1910_v63  ;;  %v1893_v14 = vld [vmem:[#allocation2 + $0xd8] sm:$0xff]  ;;  %v1249_v26 = vpop.permute.xlu1 %1248  ;;  %4635 = vmatpush3.bf16.msra.mxu1 %v4673_v5 }
 0x252   : > { %v5867_v22 = vadd.f32 %v5749_v21, %v2192_v0  ;;  %v2190_v23 = vmul.f32 %v5744_v62, %v2151_v10  ;;  %v2154_v13 = vmax.f32 %v4560_v20, 0.0  ;;  %v1892_v24 = vld [vmem:[#allocation2 + $0xd0] sm:$0xff]  ;;  %v1247_v27 = vpop.permute.xlu0 %1246  ;;  %1317 = vst.msk [vmem:[#allocation2 + $0xe8] sm:$0x7f] %vm1288_vm10, %v1249_v26  ;;  %4430 = vmatpush3.bf16.msra.mxu0 %v4673_v5  ;;  %4628 = vmatprep.subr.bf16.mxu1 %v4674_v8 }
 0x253   : > { %v2039_v28 = vpop.f32.mrf.mxu0  ;;  %v1911_v29 = vpack.c.bf16 %v1893_v14, %v1892_v24  ;;  %1316 = vst.msk [vmem:[#allocation2 + $0xe0] sm:$0xff] %vm1286_vm11, %v1247_v27  ;;  %4431 = vmatprep.subr.bf16.mxu0 %v4674_v8 }
 0x254   : > { %2922 = vst.msk [vmem:[#allocation3 + $0x98] sm:$0xff] %vm2259_vm2, %v5867_v22  ;;  %v5878_v53 = vadd.f32 %v5749_v21, %v2190_v23  ;;  %v2193_v16 = vmul.f32 %v5744_v62, %v2154_v13  ;;  %v2152_v18 = vmax.f32 %v2039_v28, 0.0  ;;  %v5882_v55 = vrot.slane %v5867_v22, 7 }
 0x255   : > { %4578 = vmatmul.mubr.msk.bf16.gmra.mxu0 %vm280_vm0, %v1911_v29  ;;  %v1440_v37 = vpop.permute.xlu1 %1439  ;;  %v2623_v34 = vrot.slane %v5867_v22, 1  ;;  %4636 = vmatpush3.bf16.msra.mxu1 %v4675_v61 }
 0x256   : > { %2920 = vst.msk [vmem:[#allocation3 + $0x68] sm:$0xff] %vm2259_vm2, %v5878_v53  ;;  %v5891_v4 = vadd.f32 %v5749_v21, %v2193_v16  ;;  %v2191_v2 = vmul.f32 %v5744_v62, %v2152_v18  ;;  %v5895_v36 = vrot.slane %v5878_v53, 7  ;;  %v1438_v38 = vpop.permute.xlu0 %1437  ;;  %v2620_v48 = vrot.slane %v5878_v53, 1  ;;  %4432 = vmatpush3.bf16.msra.mxu0 %v4675_v61 }
 0x257   : > { %2468 = vst.msk [vmem:[#allocation3 + $0xc0] sm:$0xfe] %vm2461_vm3, %v5882_v55 }
 0x258   : > { %1502 = vst.msk [vmem:[#allocation2 + $0xe9] sm:$0x7f] %vm1473_vm12, %v1440_v37  ;;  %v5910_v43 = vadd.f32 %v5749_v21, %v2191_v2  ;;  %3084 = vrot.lane.b32.xlu0 %v5895_v36, %s4698_s30  ;;  %v2395_v44 = vrot.slane %v5891_v4, 7  ;;  %v5917_v45 = vrot.slane %v5891_v4, 1  ;;  %vm2882_vm12 = vcmask 1048321  }
 0x259   : > { %1501 = vst.msk [vmem:[#allocation2 + $0xe1] sm:$0xff] %vm1471_vm13, %v1438_v38  ;;  %v866_v54 = vpop.permute.xlu1 %865  ;;  %vm4150_vm13 = vcmask 64512  }
 0x25a   : > { %2923 = vst.msk [vmem:[#allocation3 + $0xb0] sm:$0xff] %vm2259_vm2, %v5891_v4  ;;  %2921 = vst.msk [vmem:[#allocation3 + $0x80] sm:$0xff] %vm2259_vm2, %v5910_v43  ;;  %v2392_v3 = vrot.slane %v5910_v43, 7  ;;  %v5930_v50 = vrot.slane %v5910_v43, 1  ;;  %v5934_v52 = vsel %vm2384_vm6, %v5882_v55, %v2395_v44  ;;  %v5938_v30 = vsel %vm2613_vm5, %v2623_v34, %v5917_v45  ;;  %v864_v56 = vpop.permute.xlu0 %863 }
 0x25b   : > { %2466 = vst.msk [vmem:[#allocation3 + $0x90] sm:$0xfe] %vm2461_vm3, %v5895_v36 }
 0x25c   : > { %3357 = vst.msk [vmem:[#allocation3 + $0x88] sm:$0x7f] %vm3352_vm4, %v5917_v45  ;;  %2659 = vrot.lane.b32.xlu0 %v5947_v58, %s4698_s30  ;;  %v5959_v49 = vsel %vm2384_vm6, %v5895_v36, %v2392_v3  ;;  %v5963_v7 = vsel %vm2613_vm5, %v2620_v48, %v5930_v50  ;;  %3355 = vst.msk [vmem:[#allocation3 + $0x58] sm:$0x7f] %vm3352_vm4, %v5930_v50 }
 0x25d   : > { %2469 = vst.msk [vmem:[#allocation3 + $0xd8] sm:$0xff] %vm2259_vm2, %v5934_v52  ;;  %3356 = vst.msk [vmem:[#allocation3 + $0x70] sm:$0xff] %vm2259_vm2, %v5938_v30  ;;  %3086 = vrot.lane.b32.xlu1 %v5959_v49, %s4698_s30  ;;  %v1622_v60 = vpop.permute.xlu1 %1621 }
 0x25e   : > { %932 = vst.msk [vmem:[#allocation2 + $0xf9] sm:$0x7f] %vm901_vm7, %v866_v54  ;;  %v1620_v11 = vpop.permute.xlu0 %1619  ;;  %vm2582_vm7 = vcmask 523520  }
 0x25f   : > { %931 = vst.msk [vmem:[#allocation2 + $0xf1] sm:$0xff] %vm899_vm8, %v864_v56  ;;  %vm3170_vm8 = vcmask 785921  }
 0x260   : > { %2467 = vst.msk [vmem:[#allocation3 + $0xa8] sm:$0xff] %vm2259_vm2, %v5959_v49  ;;  %3354 = vst.msk [vmem:[#allocation3 + $0x40] sm:$0xff] %vm2259_vm2, %v5963_v7  ;;  %3205 = vrot.lane.b32.xlu0 %v5878_v53, %s4699_s16 }
 0x261   : > { %1683 = vst.msk [vmem:[#allocation2 + $0xe8] sm:$0xff] %vm1653_vm14, %v1622_v60  ;;  %1682 = vst.msk [vmem:[#allocation2 + $0xe0] sm:$0xff] %vm1653_vm14, %v1620_v11  ;;  %2661 = vrot.lane.b32.xlu1 %v5903_v41, %s4698_s30  ;;  %v1060_v17 = vpop.permute.xlu1 %1059 }
 0x262   : > { %v1058_v6 = vpop.permute.xlu0 %1057  ;;  %1125 = vst.msk [vmem:[#allocation2 + $0xf8] sm:$0xff] %vm1093_vm9, %v1060_v17 }
 0x263   : > { %1124 = vst.msk [vmem:[#allocation2 + $0xf0] sm:$0xff] %vm1093_vm9, %v1058_v6  ;;  %vm2749_vm9 = vcmask 785920  }
 0x264   : > { %2790 = vrot.lane.b32.xlu0 %v5769_v31, %s4699_s16 }
 0x265   : > { %3207 = vrot.lane.b32.xlu1 %v5910_v43, %s4699_s16  ;;  %v1803_v51 = vpop.permute.xlu1 %1802 }
 0x266   : > { %v1801_v9 = vpop.permute.xlu0 %1800  ;;  %1865 = vst.msk [vmem:[#allocation2 + $0xe8] sm:$0x7f] %vm1836_vm15, %v1803_v51 }
 0x267   : > { %1864 = vst.msk [vmem:[#allocation2 + $0xe0] sm:$0xff] %vm1834_vm1, %v1801_v9 }
 0x268   : > { %2959 = vrot.lane.b32.xlu0 %v5963_v7, %s4697_s21 }
 0x269   : > { %2792 = vrot.lane.b32.xlu1 %v5808_v40, %s4699_s16  ;;  %v1253_v63 = vpop.permute.xlu1 %1252 }
 0x26a   : > { %v1251_v0 = vpop.permute.xlu0 %1250  ;;  %1319 = vst.msk [vmem:[#allocation2 + $0xf8] sm:$0x7f] %vm1288_vm10, %v1253_v63  ;;  %vm2884_vm10 = vcmask 1048320  }
 0x26b   : > { %1318 = vst.msk [vmem:[#allocation2 + $0xf0] sm:$0xff] %vm1286_vm11, %v1251_v0  ;;  %vm2751_vm11 = vcmask 784896  }
 0x26c   : > { %2496 = vrot.lane.b32.xlu0 %v5756_v25, %s4697_s21 }
 0x26d   : > { %2961 = vrot.lane.b32.xlu1 %v5930_v50, %s4697_s21  ;;  %v1895_v20 = vld [vmem:[#allocation2 + $0xe8] sm:$0xff] }
 0x26e   : > { %v1894_v10 = vld [vmem:[#allocation2 + $0xe0] sm:$0xff] }
 0x26f   : > { %v1912_v12 = vpack.c.bf16 %v1895_v20, %v1894_v10 }
 0x270   : > { %3088 = vrot.lane.b32.xlu0 %v5882_v55, %s4698_s30 }
 0x271   : > { %2498 = vrot.lane.b32.xlu1 %v5772_v19, %s4697_s21  ;;  %4581 = vmatprep.mubr.msk.bf16.mxu0 %vm280_vm0, %v1912_v12  ;;  %v1897_v13 = vld [vmem:[#allocation2 + $0xf8] sm:$0xff] }
 0x272   : > { %v1896_v23 = vld [vmem:[#allocation2 + $0xf0] sm:$0xff] }
 0x273   : > { %v1913_v24 = vpack.c.bf16 %v1897_v13, %v1896_v23 }
 0x274   : > { %2663 = vrot.lane.b32.xlu0 %v5804_v47, %s4698_s30 }
 0x275   : > { %3090 = vrot.lane.b32.xlu1 %v5934_v52, %s4698_s30  ;;  %v4563_v14 = vpop.f32.mrf.mxu0  ;;  %4582 = vmatmul.mubr.msk.bf16.gmra.mxu0 %vm280_vm0, %v1913_v24  ;;  %vm3048_vm0 = vcmask 522496  }
 0x276   : > { %v2157_v26 = vmax.f32 %v4563_v14, 0.0 }
 0x277   : > { %v2052_v27 = vpop.f32.mrf.mxu0 }
 0x278   : > { %v2196_v15 = vmul.f32 %v5744_v62, %v2157_v26  ;;  %v2155_v28 = vmax.f32 %v2052_v27, 0.0  ;;  %3209 = vrot.lane.b32.xlu0 %v5867_v22, %s4699_s16 }
 0x279   : > { %2665 = vrot.lane.b32.xlu1 %v5788_v35, %s4698_s30  ;;  %v4564_v29 = vpop.f32.mrf.mxu0 }
 0x27a   : > { %v6025_v47 = vadd.f32 %v5749_v21, %v2196_v15  ;;  %v2194_v16 = vmul.f32 %v5744_v62, %v2155_v28  ;;  %v2158_v18 = vmax.f32 %v4564_v29, 0.0 }
 0x27b   : > { %v2055_v32 = vpop.f32.mrf.mxu0 }
 0x27c   : > { %2926 = vst.msk [vmem:[#allocation3 + $0xf8] sm:$0xff] %vm2259_vm2, %v6025_v47  ;;  %v6031_v2 = vadd.f32 %v5749_v21, %v2194_v16  ;;  %v2197_v37 = vmul.f32 %v5744_v62, %v2158_v18  ;;  %v2156_v38 = vmax.f32 %v2055_v32, 0.0  ;;  %2794 = vrot.lane.b32.xlu0 %v5895_v36, %s4699_s16  ;;  %v6037_v35 = vrot.slane %v6025_v47, 7 }
 0x27d   : > { %3211 = vrot.lane.b32.xlu1 %v5891_v4, %s4699_s16  ;;  %v2629_v48 = vrot.slane %v6025_v47, 1 }
 0x27e   : > { %2924 = vst.msk [vmem:[#allocation3 + $0xc8] sm:$0xff] %vm2259_vm2, %v6031_v2  ;;  %v6044_v39 = vadd.f32 %v5749_v21, %v2197_v37  ;;  %v2195_v44 = vmul.f32 %v5744_v62, %v2156_v38  ;;  %v6048_v34 = vrot.slane %v6031_v2, 7  ;;  %v2626_v3 = vrot.slane %v6031_v2, 1 }
 0x27f   : > { %2472 = vst.msk [vmem:[#allocation3 + $0x120] sm:$0xfe] %vm2461_vm3, %v6037_v35 }
 0x280   : > { %2927 = vst.msk [vmem:[#allocation3 + $0x110] sm:$0xff] %vm2259_vm2, %v6044_v39  ;;  %v6055_v36 = vadd.f32 %v5749_v21, %v2195_v44  ;;  %2963 = vrot.lane.b32.xlu0 %v5938_v30, %s4697_s21  ;;  %v2401_v46 = vrot.slane %v6044_v39, 7  ;;  %v6064_v1 = vrot.slane %v6044_v39, 1 }
 0x281   : > { %2470 = vst.msk [vmem:[#allocation3 + $0xf0] sm:$0xfe] %vm2461_vm3, %v6048_v34  ;;  %2796 = vrot.lane.b32.xlu1 %v5959_v49, %s4699_s16 }
 0x282   : > { %2925 = vst.msk [vmem:[#allocation3 + $0xe0] sm:$0xff] %vm2259_vm2, %v6055_v36  ;;  %v2398_v54 = vrot.slane %v6055_v36, 7  ;;  %v6073_v56 = vrot.slane %v6055_v36, 1  ;;  %v6077_v57 = vsel %vm2384_vm6, %v6037_v35, %v2401_v46  ;;  %v6081_v59 = vsel %vm2613_vm5, %v2629_v48, %v6064_v1 }
 0x283   : > { %3361 = vst.msk [vmem:[#allocation3 + $0xe8] sm:$0x7f] %vm3352_vm4, %v6064_v1 }
 0x284   : > { %2473 = vst.msk [vmem:[#allocation3 + $0x138] sm:$0xff] %vm2259_vm2, %v6077_v57  ;;  %3360 = vst.msk [vmem:[#allocation3 + $0xd0] sm:$0xff] %vm2259_vm2, %v6081_v59  ;;  %2500 = vrot.lane.b32.xlu0 %v5878_v53, %s4697_s21  ;;  %v6093_v49 = vsel %vm2384_vm6, %v6048_v34, %v2398_v54  ;;  %v6097_v60 = vsel %vm2613_vm5, %v2626_v3, %v6073_v56 }
 0x285   : > { %3359 = vst.msk [vmem:[#allocation3 + $0xb8] sm:$0x7f] %vm3352_vm4, %v6073_v56  ;;  %2965 = vrot.lane.b32.xlu1 %v5917_v45, %s4697_s21 }
 0x286   : > { %2471 = vst.msk [vmem:[#allocation3 + $0x108] sm:$0xff] %vm2259_vm2, %v6093_v49  ;;  %3358 = vst.msk [vmem:[#allocation3 + $0xa0] sm:$0xff] %vm2259_vm2, %v6097_v60 }
 0x288   : > { %3092 = vrot.lane.b32.xlu0 %v6048_v34, %s4698_s30 }
 0x289   : > { %2502 = vrot.lane.b32.xlu1 %v5910_v43, %s4697_s21 }
 0x28c   : > { %2667 = vrot.lane.b32.xlu0 %v5963_v7, %s4698_s30 }
 0x28d   : > { %3094 = vrot.lane.b32.xlu1 %v6093_v49, %s4698_s30 }
 0x290   : > { %3213 = vrot.lane.b32.xlu0 %v6031_v2, %s4699_s16 }
 0x291   : > { %2669 = vrot.lane.b32.xlu1 %v5930_v50, %s4698_s30 }
 0x294   : > { %2798 = vrot.lane.b32.xlu0 %v5882_v55, %s4699_s16 }
 0x295   : > { %3215 = vrot.lane.b32.xlu1 %v6055_v36, %s4699_s16 }
 0x298   : > { %2967 = vrot.lane.b32.xlu0 %v6097_v60, %s4697_s21 }
 0x299   : > { %2800 = vrot.lane.b32.xlu1 %v5934_v52, %s4699_s16 }
 0x29c   : > { %2504 = vrot.lane.b32.xlu0 %v5867_v22, %s4697_s21 }
 0x29d   : > { %2969 = vrot.lane.b32.xlu1 %v6073_v56, %s4697_s21  ;;  %v4567_v53 = vpop.f32.mrf.mxu0 }
 0x29e   : > { %v2161_v43 = vmax.f32 %v4567_v53, 0.0 }
 0x29f   : > { %v2068_v50 = vpop.f32.mrf.mxu0 }
 0x2a0   : > { %v2200_v55 = vmul.f32 %v5744_v62, %v2161_v43  ;;  %3096 = vrot.lane.b32.xlu0 %v6037_v35, %s4698_s30  ;;  %v2159_v7 = vmax.f32 %v2068_v50, 0.0 }
 0x2a1   : > { %2506 = vrot.lane.b32.xlu1 %v5891_v4, %s4697_s21  ;;  %v4568_v11 = vpop.f32.mrf.mxu0 }
 0x2a2   : > { %v6137_v52 = vadd.f32 %v5749_v21, %v2200_v55  ;;  %v2198_v22 = vmul.f32 %v5744_v62, %v2159_v7  ;;  %v2162_v5 = vmax.f32 %v4568_v11, 0.0 }
 0x2a3   : > { %v2071_v8 = vpop.f32.mrf.mxu0 }
 0x2a4   : > { %2930 = vst.msk [vmem:[#allocation3 + $0x158] sm:$0xff] %vm2259_vm2, %v6137_v52  ;;  %v6143_v17 = vadd.f32 %v5749_v21, %v2198_v22  ;;  %v2201_v6 = vmul.f32 %v5744_v62, %v2162_v5  ;;  %v2958_v61 = vpop.permute.xlu1 %2957  ;;  %2671 = vrot.lane.b32.xlu0 %v5938_v30, %s4698_s30  ;;  %v2160_v4 = vmax.f32 %v2071_v8, 0.0  ;;  %v6149_v51 = vrot.slane %v6137_v52, 7 }
 0x2a5   : > { %3051 = vst.msk [vmem:[#allocation3 + $0x50] sm:$0x7f] %vm3048_vm0, %v2958_v61  ;;  %v2956_v9 = vpop.permute.xlu0 %2955  ;;  %3098 = vrot.lane.b32.xlu1 %v6077_v57, %s4698_s30  ;;  %v2635_v10 = vrot.slane %v6137_v52, 1 }
 0x2a6   : > { %2928 = vst.msk [vmem:[#allocation3 + $0x128] sm:$0xff] %vm2259_vm2, %v6143_v17  ;;  %v6157_v63 = vadd.f32 %v5749_v21, %v2201_v6  ;;  %v2199_v0 = vmul.f32 %v5744_v62, %v2160_v4  ;;  %v6162_v30 = vrot.slane %v6143_v17, 7  ;;  %v2632_v23 = vrot.slane %v6143_v17, 1 }
 0x2a7   : > { %3050 = vst.msk [vmem:[#allocation3 + $0x38] sm:$0xff] %vm2582_vm7, %v2956_v9 }
 0x2a8   : > { %2476 = vst.msk [vmem:[#allocation3 + $0x180] sm:$0xfe] %vm2461_vm3, %v6149_v51  ;;  %v6170_v20 = vadd.f32 %v5749_v21, %v2199_v0  ;;  %v2495_v12 = vpop.permute.xlu1 %2494  ;;  %3217 = vrot.lane.b32.xlu0 %v6025_v47, %s4699_s16  ;;  %2474 = vst.msk [vmem:[#allocation3 + $0x150] sm:$0xfe] %vm2461_vm3, %v6162_v30  ;;  %v2407_v13 = vrot.slane %v6157_v63, 7  ;;  %v6179_v24 = vrot.slane %v6157_v63, 1 }
 0x2a9   : > { %2931 = vst.msk [vmem:[#allocation3 + $0x170] sm:$0xff] %vm2259_vm2, %v6157_v63  ;;  %v2493_v14 = vpop.permute.xlu0 %2492  ;;  %2673 = vrot.lane.b32.xlu1 %v5917_v45, %s4698_s30 }
 0x2aa   : > { %2584 = vst.msk [vmem:[#allocation3 + $0x48] sm:$0xff] %vm2582_vm7, %v2495_v12  ;;  %2583 = vst.msk [vmem:[#allocation3 + $0x30] sm:$0xff] %vm2582_vm7, %v2493_v14  ;;  %v2404_v26 = vrot.slane %v6170_v20, 7  ;;  %v6189_v27 = vrot.slane %v6170_v20, 1  ;;  %v6193_v15 = vsel %vm2384_vm6, %v6149_v51, %v2407_v13  ;;  %v6197_v28 = vsel %vm2613_vm5, %v2635_v10, %v6179_v24 }
 0x2ab   : > { %2929 = vst.msk [vmem:[#allocation3 + $0x140] sm:$0xff] %vm2259_vm2, %v6170_v20  ;;  %2477 = vst.msk [vmem:[#allocation3 + $0x198] sm:$0xff] %vm2259_vm2, %v6193_v15 }
 0x2ac   : > { %3365 = vst.msk [vmem:[#allocation3 + $0x148] sm:$0x7f] %vm3352_vm4, %v6179_v24  ;;  %2802 = vrot.lane.b32.xlu0 %v6048_v34, %s4699_s16  ;;  %v6209_v45 = vsel %vm2384_vm6, %v6162_v30, %v2404_v26  ;;  %v6213_v29 = vsel %vm2613_vm5, %v2632_v23, %v6189_v27  ;;  %3363 = vst.msk [vmem:[#allocation3 + $0x118] sm:$0x7f] %vm3352_vm4, %v6189_v27 }
 0x2ad   : > { %3364 = vst.msk [vmem:[#allocation3 + $0x130] sm:$0xff] %vm2259_vm2, %v6197_v28  ;;  %3219 = vrot.lane.b32.xlu1 %v6044_v39, %s4699_s16  ;;  %2475 = vst.msk [vmem:[#allocation3 + $0x168] sm:$0xff] %vm2259_vm2, %v6209_v45 }
 0x2ae   : > { %3362 = vst.msk [vmem:[#allocation3 + $0x100] sm:$0xff] %vm2259_vm2, %v6213_v29 }
 0x2b0   : > { %2971 = vrot.lane.b32.xlu0 %v6081_v59, %s4697_s21 }
 0x2b1   : > { %2804 = vrot.lane.b32.xlu1 %v6093_v49, %s4699_s16 }
 0x2b4   : > { %2508 = vrot.lane.b32.xlu0 %v6031_v2, %s4697_s21 }
 0x2b5   : > { %2973 = vrot.lane.b32.xlu1 %v6064_v1, %s4697_s21 }
 0x2b8   : > { %3100 = vrot.lane.b32.xlu0 %v6162_v30, %s4698_s30 }
 0x2b9   : > { %2510 = vrot.lane.b32.xlu1 %v6055_v36, %s4697_s21 }
 0x2bc   : > { %2675 = vrot.lane.b32.xlu0 %v6097_v60, %s4698_s30 }
 0x2bd   : > { %3102 = vrot.lane.b32.xlu1 %v6209_v45, %s4698_s30 }
 0x2c0   : > { %3221 = vrot.lane.b32.xlu0 %v6143_v17, %s4699_s16 }
 0x2c1   : > { %2677 = vrot.lane.b32.xlu1 %v6073_v56, %s4698_s30 }
 0x2c4   : > { %2806 = vrot.lane.b32.xlu0 %v6037_v35, %s4699_s16 }
 0x2c5   : > { %3223 = vrot.lane.b32.xlu1 %v6170_v20, %s4699_s16  ;;  %v4571_v16 = vpop.f32.mrf.mxu0 }
 0x2c6   : > { %v2165_v18 = vmax.f32 %v4571_v16, 0.0 }
 0x2c7   : > { %v2084_v32 = vpop.f32.mrf.mxu0 }
 0x2c8   : > { %2975 = vrot.lane.b32.xlu0 %v6213_v29, %s4697_s21  ;;  %v2204_v2 = vmul.f32 %v5744_v62, %v2165_v18  ;;  %v2163_v37 = vmax.f32 %v2084_v32, 0.0 }
 0x2c9   : > { %2808 = vrot.lane.b32.xlu1 %v6077_v57, %s4699_s16  ;;  %v4572_v38 = vpop.f32.mrf.mxu0 }
 0x2ca   : > { %v3085_v44 = vpop.permute.xlu0 %3084  ;;  %v6253_v35 = vadd.f32 %v5749_v21, %v2204_v2  ;;  %v2202_v34 = vmul.f32 %v5744_v62, %v2163_v37  ;;  %v2166_v36 = vmax.f32 %v4572_v38, 0.0 }
 0x2cb   : > { %3173 = vst.msk [vmem:[#allocation3 + $0x38] sm:$0xfe] %vm3170_vm8, %v3085_v44  ;;  %v2087_v46 = vpop.f32.mrf.mxu0 }
 0x2cc   : > { %2512 = vrot.lane.b32.xlu0 %v6025_v47, %s4697_s21  ;;  %2934 = vst.msk [vmem:[#allocation3 + $0x1b8] sm:$0xff] %vm2259_vm2, %v6253_v35  ;;  %v6262_v48 = vadd.f32 %v5749_v21, %v2202_v34  ;;  %v2205_v3 = vmul.f32 %v5744_v62, %v2166_v36  ;;  %v2164_v54 = vmax.f32 %v2087_v46, 0.0  ;;  %v6266_v56 = vrot.slane %v6253_v35, 7 }
 0x2cd   : > { %2977 = vrot.lane.b32.xlu1 %v6189_v27, %s4697_s21  ;;  %v2641_v53 = vrot.slane %v6253_v35, 1 }
 0x2ce   : > { %v2660_v57 = vpop.permute.xlu0 %2659  ;;  %2932 = vst.msk [vmem:[#allocation3 + $0x188] sm:$0xff] %vm2259_vm2, %v6262_v48  ;;  %v6273_v47 = vadd.f32 %v5749_v21, %v2205_v3  ;;  %v2203_v49 = vmul.f32 %v5744_v62, %v2164_v54  ;;  %v6277_v60 = vrot.slane %v6262_v48, 7  ;;  %v2638_v55 = vrot.slane %v6262_v48, 1 }
 0x2cf   : > { %2480 = vst.msk [vmem:[#allocation3 + $0x1e0] sm:$0xfe] %vm2461_vm3, %v6266_v56  ;;  %v3087_v43 = vpop.permute.xlu1 %3086 }
 0x2d0   : > { %2750 = vst.msk [vmem:[#allocation3 + $0x30] sm:$0xff] %vm2749_vm9, %v2660_v57  ;;  %3174 = vst.msk [vmem:[#allocation3 + $0x50] sm:$0xff] %vm2749_vm9, %v3087_v43  ;;  %3104 = vrot.lane.b32.xlu0 %v6149_v51, %s4698_s30  ;;  %v6289_v50 = vadd.f32 %v5749_v21, %v2203_v49  ;;  %v2413_v7 = vrot.slane %v6273_v47, 7  ;;  %v6296_v11 = vrot.slane %v6273_v47, 1 }
 0x2d1   : > { %2935 = vst.msk [vmem:[#allocation3 + $0x1d0] sm:$0xff] %vm2259_vm2, %v6273_v47  ;;  %2514 = vrot.lane.b32.xlu1 %v6044_v39, %s4697_s21 }
 0x2d2   : > { %2478 = vst.msk [vmem:[#allocation3 + $0x1b0] sm:$0xfe] %vm2461_vm3, %v6277_v60  ;;  %v3206_v22 = vpop.permute.xlu0 %3205  ;;  %v2410_v5 = vrot.slane %v6289_v50, 7  ;;  %v6304_v8 = vrot.slane %v6289_v50, 1  ;;  %v6308_v6 = vsel %vm2384_vm6, %v6266_v56, %v2413_v7  ;;  %v6312_v61 = vsel %vm2613_vm5, %v2641_v53, %v6296_v11 }
 0x2d3   : > { %2933 = vst.msk [vmem:[#allocation3 + $0x1a0] sm:$0xff] %vm2259_vm2, %v6289_v50  ;;  %v2662_v39 = vpop.permute.xlu1 %2661  ;;  %2481 = vst.msk [vmem:[#allocation3 + $0x1f8] sm:$0xff] %vm2259_vm2, %v6308_v6 }
 0x2d4   : > { %3369 = vst.msk [vmem:[#allocation3 + $0x1a8] sm:$0x7f] %vm3352_vm4, %v6296_v11  ;;  %2679 = vrot.lane.b32.xlu0 %v6081_v59, %s4698_s30  ;;  %v6326_v4 = vsel %vm2384_vm6, %v6277_v60, %v2410_v5  ;;  %v6330_v9 = vsel %vm2613_vm5, %v2638_v55, %v6304_v8  ;;  %3367 = vst.msk [vmem:[#allocation3 + $0x178] sm:$0x7f] %vm3352_vm4, %v6304_v8 }
 0x2d5   : > { %3293 = vst.msk [vmem:[#allocation3 + $0x38] sm:$0xff] %vm2884_vm10, %v3206_v22  ;;  %3106 = vrot.lane.b32.xlu1 %v6193_v15, %s4698_s30 }
 0x2d6   : > { %3368 = vst.msk [vmem:[#allocation3 + $0x190] sm:$0xff] %vm2259_vm2, %v6312_v61  ;;  %2479 = vst.msk [vmem:[#allocation3 + $0x1c8] sm:$0xff] %vm2259_vm2, %v6326_v4  ;;  %v2791_v59 = vpop.permute.xlu0 %2790 }
 0x2d7   : > { %2752 = vst.msk [vmem:[#allocation3 + $0x48] sm:$0x7f] %vm2751_vm11, %v2662_v39  ;;  %v3208_v0 = vpop.permute.xlu1 %3207 }
 0x2d8   : > { %3366 = vst.msk [vmem:[#allocation3 + $0x160] sm:$0xff] %vm2259_vm2, %v6330_v9  ;;  %3225 = vrot.lane.b32.xlu0 %v6137_v52, %s4699_s16 }
 0x2d9   : > { %2886 = vst.msk [vmem:[#allocation3 + $0x30] sm:$0xfe] %vm2882_vm12, %v2791_v59  ;;  %2681 = vrot.lane.b32.xlu1 %v6064_v1, %s4698_s30 }
 0x2da   : > { %3294 = vst.msk [vmem:[#allocation3 + $0x50] sm:$0xff] %vm2884_vm10, %v3208_v0  ;;  %v2960_v10 = vpop.permute.xlu0 %2959  ;;  %v6410_v0 = vld [vmem:[%s7217_s3] ss:$0 sm:$0xff] }
 0x2db   : > { %3052 = vst.msk [vmem:[#allocation3 + $0x68] sm:$0xff] %vm2582_vm7, %v2960_v10  ;;  %v2793_v12 = vpop.permute.xlu1 %2792 }
 0x2dc   : > { %2887 = vst.msk [vmem:[#allocation3 + $0x48] sm:$0xff] %vm2884_vm10, %v2793_v12  ;;  %2810 = vrot.lane.b32.xlu0 %v6162_v30, %s4699_s16  ;;  %v3389_v14 = vld [vmem:[#allocation3 + $0x38] sm:$0xff] }
 0x2dd   : > { %3227 = vrot.lane.b32.xlu1 %v6157_v63, %s4699_s16 }
 0x2de   : > { %v2497_v23 = vpop.permute.xlu0 %2496 }
 0x2df   : > { %2585 = vst.msk [vmem:[#allocation3 + $0x60] sm:$0xff] %vm2582_vm7, %v2497_v23  ;;  %v2962_v13 = vpop.permute.xlu1 %2961 }
 0x2e0   : > { %3053 = vst.msk [vmem:[#allocation3 + $0x80] sm:$0x7f] %vm3048_vm0, %v2962_v13  ;;  %2979 = vrot.lane.b32.xlu0 %v6197_v28, %s4697_s21  ;;  %v3388_v18 = vld [vmem:[#allocation3 + $0x30] sm:$0xff] }
 0x2e1   : > { %v3392_v26 = vld [vmem:[#allocation3 + $0x50] sm:$0xff]  ;;  %2812 = vrot.lane.b32.xlu1 %v6209_v45, %s4699_s16 }
 0x2e2   : > { %v3482_v1 = vpack.c.bf16 %v3392_v26, %v3389_v14  ;;  %v3089_v16 = vpop.permute.xlu0 %3088  ;;  %v6429_v26 = vld [vmem:[%s7218_s4] ss:$0 sm:$0xff] }
 0x2e3   : > { %3175 = vst.msk [vmem:[#allocation3 + $0x68] sm:$0xfe] %vm3170_vm8, %v3089_v16  ;;  %v2499_v30 = vpop.permute.xlu1 %2498  ;;  %v3391_v32 = vld [vmem:[#allocation3 + $0x48] sm:$0xff] }
 0x2e4   : > { %3758 = vmatprep.mubr.bf16.mxu1 %v3482_v1  ;;  %2586 = vst.msk [vmem:[#allocation3 + $0x78] sm:$0xff] %vm2582_vm7, %v2499_v30  ;;  %2516 = vrot.lane.b32.xlu0 %v6143_v17, %s4697_s21  ;;  %v3481_v2 = vpack.c.bf16 %v3391_v32, %v3388_v18 }
 0x2e5   : > { %2981 = vrot.lane.b32.xlu1 %v6179_v24, %s4697_s21 }
 0x2e6   : > { %v2664_v37 = vpop.permute.xlu0 %2663  ;;  %3759 = vmatmul.mubr.bf16.vlgmr.msra.gmra.mxu1 %v3481_v2 }
 0x2e7   : > { %2753 = vst.msk [vmem:[#allocation3 + $0x60] sm:$0xff] %vm2749_vm9, %v2664_v37  ;;  %v3091_v45 = vpop.permute.xlu1 %3090 }
 0x2e8   : > { %3176 = vst.msk [vmem:[#allocation3 + $0x80] sm:$0xff] %vm2749_vm9, %v3091_v45  ;;  %3108 = vrot.lane.b32.xlu0 %v6277_v60, %s4698_s30 }
 0x2e9   : > { %2518 = vrot.lane.b32.xlu1 %v6170_v20, %s4697_s21 }
 0x2ea   : > { %v3210_v38 = vpop.permute.xlu0 %3209 }
 0x2eb   : > { %3295 = vst.msk [vmem:[#allocation3 + $0x68] sm:$0xff] %vm2884_vm10, %v3210_v38  ;;  %v2666_v17 = vpop.permute.xlu1 %2665 }
 0x2ec   : > { %2754 = vst.msk [vmem:[#allocation3 + $0x78] sm:$0x7f] %vm2751_vm11, %v2666_v17  ;;  %2683 = vrot.lane.b32.xlu0 %v6213_v29, %s4698_s30 }
 0x2ed   : > { %3110 = vrot.lane.b32.xlu1 %v6326_v4, %s4698_s30  ;;  %v4575_v44 = vpop.f32.mrf.mxu0 }
 0x2ee   : > { %v2795_v34 = vpop.permute.xlu0 %2794  ;;  %v2169_v36 = vmax.f32 %v4575_v44, 0.0 }
 0x2ef   : > { %2888 = vst.msk [vmem:[#allocation3 + $0x60] sm:$0xfe] %vm2882_vm12, %v2795_v34  ;;  %v3212_v46 = vpop.permute.xlu1 %3211  ;;  %v2100_v3 = vpop.f32.mrf.mxu0 }
 0x2f0   : > { %3296 = vst.msk [vmem:[#allocation3 + $0x80] sm:$0xff] %vm2884_vm10, %v3212_v46  ;;  %2951 = vrot.lane.b32.xlu0 %v5947_v58, %s4697_s21  ;;  %v2208_v20 = vmul.f32 %v5744_v62, %v2169_v36  ;;  %v2167_v54 = vmax.f32 %v2100_v3, 0.0 }
 0x2f1   : > { %2685 = vrot.lane.b32.xlu1 %v6189_v27, %s4698_s30  ;;  %v4576_v29 = vpop.f32.mrf.mxu0 }
 0x2f2   : > { %v2964_v57 = vpop.permute.xlu0 %2963  ;;  %v6384_v49 = vadd.f32 %v5749_v21, %v2208_v20  ;;  %v2206_v53 = vmul.f32 %v5744_v62, %v2167_v54  ;;  %v2170_v43 = vmax.f32 %v4576_v29, 0.0  ;;  %v6497_v20 = vld [vmem:[%s7216_s2 + $0x88] sm:$0xff]  }
 0x2f3   : > { %3054 = vst.msk [vmem:[#allocation3 + $0x98] sm:$0xff] %vm2582_vm7, %v2964_v57  ;;  %v2797_v55 = vpop.permute.xlu1 %2796  ;;  %v2103_v7 = vpop.f32.mrf.mxu0  ;;  %4585 = vmatprep.subr.bf16.mxu0 %v6497_v20 }
 0x2f4   : > { %2889 = vst.msk [vmem:[#allocation3 + $0x78] sm:$0xff] %vm2884_vm10, %v2797_v55  ;;  %3229 = vrot.lane.b32.xlu0 %v6262_v48, %s4699_s16  ;;  %v6394_v58 = vadd.f32 %v5749_v21, %v2206_v53  ;;  %v2209_v27 = vmul.f32 %v5744_v62, %v2170_v43  ;;  %v2168_v22 = vmax.f32 %v2103_v7, 0.0  ;;  %v6398_v5 = vrot.slane %v6384_v49, 7 }
 0x2f5   : > { %2938 = vst.msk [vmem:[#allocation3 + $0x218] sm:$0xff] %vm2259_vm2, %v6384_v49  ;;  %2953 = vrot.lane.b32.xlu1 %v5903_v41, %s4697_s21  ;;  %v2647_v41 = vrot.slane %v6384_v49, 1 }
 0x2f6   : > { %v2501_v39 = vpop.permute.xlu0 %2500  ;;  %2936 = vst.msk [vmem:[#allocation3 + $0x1e8] sm:$0xff] %vm2259_vm2, %v6394_v58  ;;  %v6405_v59 = vadd.f32 %v5749_v21, %v2209_v27  ;;  %v2207_v62 = vmul.f32 %v6410_v0, %v2168_v22  ;;  %v6414_v10 = vrot.slane %v6394_v58, 7  ;;  %v3395_v21 = vld [vmem:[#allocation3 + $0x68] sm:$0xff]  ;;  %v2644_v13 = vrot.slane %v6394_v58, 1  ;;  %v3394_v38 = vld [vmem:[#allocation3 + $0x60] sm:$0xff] }
 0x2f7   : > { %2484 = vst.msk [vmem:[#allocation3 + $0x240] sm:$0xfe] %vm2461_vm3, %v6398_v5  ;;  %v2966_v12 = vpop.permute.xlu1 %2965  ;;  %v3398_v23 = vld [vmem:[#allocation3 + $0x80] sm:$0xff] }
 0x2f8   : > { %2587 = vst.msk [vmem:[#allocation3 + $0x90] sm:$0xff] %vm2582_vm7, %v2501_v39  ;;  %2814 = vrot.lane.b32.xlu0 %v6149_v51, %s4699_s16  ;;  %v3485_v14 = vpack.c.bf16 %v3398_v23, %v3395_v21  ;;  %v6432_v1 = vadd.f32 %v6429_v26, %v2207_v62  ;;  %v2419_v16 = vrot.slane %v6405_v59, 7  ;;  %v6438_v30 = vrot.slane %v6405_v59, 1 }
 0x2f9   : > { %3055 = vst.msk [vmem:[#allocation3 + $0xb0] sm:$0x7f] %vm3048_vm0, %v2966_v12  ;;  %3231 = vrot.lane.b32.xlu1 %v6289_v50, %s4699_s16 }
 0x2fa   : > { %2939 = vst.msk [vmem:[#allocation3 + $0x230] sm:$0xff] %vm2259_vm2, %v6405_v59  ;;  %3766 = vmatprep.mubr.bf16.mxu1 %v3485_v14  ;;  %v3093_v51 = vpop.permute.xlu0 %3092  ;;  %2937 = vst.msk [vmem:[#allocation3 + $0x200] sm:$0xff] %vm2259_vm2, %v6432_v1  ;;  %v2416_v18 = vrot.slane %v6432_v1, 7  ;;  %v6446_v32 = vrot.slane %v6432_v1, 1  ;;  %v6450_v2 = vsel %vm2384_vm6, %v6398_v5, %v2419_v16  ;;  %v6454_v37 = vsel %vm2613_vm5, %v2647_v41, %v6438_v30 }
 0x2fb   : > { %2482 = vst.msk [vmem:[#allocation3 + $0x210] sm:$0xfe] %vm2461_vm3, %v6414_v10  ;;  %v2503_v45 = vpop.permute.xlu1 %2502  ;;  %v3397_v17 = vld [vmem:[#allocation3 + $0x78] sm:$0xff] }
 0x2fc   : > { %3373 = vst.msk [vmem:[#allocation3 + $0x208] sm:$0x7f] %vm3352_vm4, %v6438_v30  ;;  %3080 = vrot.lane.b32.xlu0 %v5769_v31, %s4698_s30  ;;  %v3484_v44 = vpack.c.bf16 %v3397_v17, %v3394_v38  ;;  %v6468_v34 = vsel %vm2384_vm6, %v6414_v10, %v2416_v18  ;;  %v6472_v36 = vsel %vm2613_vm5, %v2644_v13, %v6446_v32  ;;  %3371 = vst.msk [vmem:[#allocation3 + $0x1d8] sm:$0x7f] %vm3352_vm4, %v6446_v32 }
 0x2fd   : > { %3177 = vst.msk [vmem:[#allocation3 + $0x98] sm:$0xfe] %vm3170_vm8, %v3093_v51  ;;  %2816 = vrot.lane.b32.xlu1 %v6193_v15, %s4699_s16 }
 0x2fe   : > { %2485 = vst.msk [vmem:[#allocation3 + $0x258] sm:$0xff] %vm2259_vm2, %v6450_v2  ;;  %3372 = vst.msk [vmem:[#allocation3 + $0x1f0] sm:$0xff] %vm2259_vm2, %v6454_v37  ;;  %3767 = vmatmul.mubr.bf16.gmra.mxu1 %v3484_v44  ;;  %v2668_v31 = vpop.permute.xlu0 %2667 }
 0x2ff   : > { %2588 = vst.msk [vmem:[#allocation3 + $0xa8] sm:$0xff] %vm2582_vm7, %v2503_v45  ;;  %v3095_v46 = vpop.permute.xlu1 %3094 }
 0x300   : > { %2483 = vst.msk [vmem:[#allocation3 + $0x228] sm:$0xff] %vm2259_vm2, %v6468_v34  ;;  %3370 = vst.msk [vmem:[#allocation3 + $0x1c0] sm:$0xff] %vm2259_vm2, %v6472_v36  ;;  %3201 = vrot.lane.b32.xlu0 %v5756_v25, %s4699_s16 }
 0x301   : > { %2755 = vst.msk [vmem:[#allocation3 + $0x90] sm:$0xff] %vm2749_vm9, %v2668_v31  ;;  %3178 = vst.msk [vmem:[#allocation3 + $0xb0] sm:$0xff] %vm2749_vm9, %v3095_v46  ;;  %3082 = vrot.lane.b32.xlu1 %v5808_v40, %s4698_s30 }
 0x302   : > { %v3214_v15 = vpop.permute.xlu0 %3213 }
 0x303   : > { %3297 = vst.msk [vmem:[#allocation3 + $0x98] sm:$0xff] %vm2884_vm10, %v3214_v15  ;;  %v2670_v3 = vpop.permute.xlu1 %2669 }
 0x304   : > { %2756 = vst.msk [vmem:[#allocation3 + $0xa8] sm:$0x7f] %vm2751_vm11, %v2670_v3  ;;  %2786 = vrot.lane.b32.xlu0 %v5778_v33, %s4699_s16 }
 0x305   : > { %3203 = vrot.lane.b32.xlu1 %v5772_v19, %s4699_s16 }
 0x306   : > { %v2799_v25 = vpop.permute.xlu0 %2798 }
 0x307   : > { %2890 = vst.msk [vmem:[#allocation3 + $0x90] sm:$0xfe] %vm2882_vm12, %v2799_v25  ;;  %v3216_v40 = vpop.permute.xlu1 %3215 }
 0x308   : > { %3298 = vst.msk [vmem:[#allocation3 + $0xb0] sm:$0xff] %vm2884_vm10, %v3216_v40  ;;  %2983 = vrot.lane.b32.xlu0 %v6330_v9, %s4697_s21 }
 0x309   : > { %2788 = vrot.lane.b32.xlu1 %v5821_v42, %s4699_s16 }
 0x30a   : > { %v2968_v19 = vpop.permute.xlu0 %2967  ;;  %v3401_v57 = vld [vmem:[#allocation3 + $0x98] sm:$0xff] }
 0x30b   : > { %3056 = vst.msk [vmem:[#allocation3 + $0xc8] sm:$0xff] %vm2582_vm7, %v2968_v19  ;;  %v2801_v33 = vpop.permute.xlu1 %2800 }
 0x30c   : > { %2891 = vst.msk [vmem:[#allocation3 + $0xa8] sm:$0xff] %vm2884_vm10, %v2801_v33  ;;  %2520 = vrot.lane.b32.xlu0 %v6137_v52, %s4697_s21 }
 0x30d   : > { %2985 = vrot.lane.b32.xlu1 %v6304_v8, %s4697_s21 }
 0x30e   : > { %v2505_v54 = vpop.permute.xlu0 %2504  ;;  %v3400_v55 = vld [vmem:[#allocation3 + $0x90] sm:$0xff] }
 0x30f   : > { %2589 = vst.msk [vmem:[#allocation3 + $0xc0] sm:$0xff] %vm2582_vm7, %v2505_v54  ;;  %v2970_v29 = vpop.permute.xlu1 %2969  ;;  %v3404_v53 = vld [vmem:[#allocation3 + $0xb0] sm:$0xff] }
 0x310   : > { %3057 = vst.msk [vmem:[#allocation3 + $0xe0] sm:$0x7f] %vm3048_vm0, %v2970_v29  ;;  %3112 = vrot.lane.b32.xlu0 %v6266_v56, %s4698_s30  ;;  %v3488_v42 = vpack.c.bf16 %v3404_v53, %v3401_v57 }
 0x311   : > { %2522 = vrot.lane.b32.xlu1 %v6157_v63, %s4697_s21 }
 0x312   : > { %v3097_v43 = vpop.permute.xlu0 %3096  ;;  %3774 = vmatprep.mubr.bf16.mxu1 %v3488_v42 }
 0x313   : > { %3179 = vst.msk [vmem:[#allocation3 + $0xc8] sm:$0xfe] %vm3170_vm8, %v3097_v43  ;;  %v2507_v52 = vpop.permute.xlu1 %2506  ;;  %v3403_v7 = vld [vmem:[#allocation3 + $0xa8] sm:$0xff] }
 0x314   : > { %2590 = vst.msk [vmem:[#allocation3 + $0xd8] sm:$0xff] %vm2582_vm7, %v2507_v52  ;;  %2687 = vrot.lane.b32.xlu0 %v6197_v28, %s4698_s30  ;;  %v3487_v27 = vpack.c.bf16 %v3403_v7, %v3400_v55 }
 0x315   : > { %3114 = vrot.lane.b32.xlu1 %v6308_v6, %s4698_s30  ;;  %v4579_v22 = vpop.f32.mrf.mxu0 }
 0x316   : > { %v2672_v39 = vpop.permute.xlu0 %2671  ;;  %3775 = vmatmul.mubr.bf16.gmra.mxu1 %v3487_v27  ;;  %v2173_v63 = vmax.f32 %v4579_v22, 0.0 }
 0x317   : > { %2757 = vst.msk [vmem:[#allocation3 + $0xc0] sm:$0xff] %vm2749_vm9, %v2672_v39  ;;  %v3099_v62 = vpop.permute.xlu1 %3098  ;;  %v2116_v41 = vpop.f32.mrf.mxu0 }
 0x318   : > { %3180 = vst.msk [vmem:[#allocation3 + $0xe0] sm:$0xff] %vm2749_vm9, %v3099_v62  ;;  %3233 = vrot.lane.b32.xlu0 %v6253_v35, %s4699_s16  ;;  %v2212_v12 = vmul.f32 %v6410_v0, %v2173_v63  ;;  %v2171_v28 = vmax.f32 %v2116_v41, 0.0 }
 0x319   : > { %2689 = vrot.lane.b32.xlu1 %v6179_v24, %s4698_s30  ;;  %v4580_v21 = vpop.f32.mrf.mxu0 }
 0x31a   : > { %v3218_v23 = vpop.permute.xlu0 %3217  ;;  %v6532_v13 = vadd.f32 %v6429_v26, %v2212_v12  ;;  %v2210_v14 = vmul.f32 %v6410_v0, %v2171_v28  ;;  %v2174_v16 = vmax.f32 %v4580_v21, 0.0 }
 0x31b   : > { %3299 = vst.msk [vmem:[#allocation3 + $0xc8] sm:$0xff] %vm2884_vm10, %v3218_v23  ;;  %v2674_v51 = vpop.permute.xlu1 %2673  ;;  %v2119_v18 = vpop.f32.mrf.mxu0 }
 0x31c   : > { %2758 = vst.msk [vmem:[#allocation3 + $0xd8] sm:$0x7f] %vm2751_vm11, %v2674_v51  ;;  %2818 = vrot.lane.b32.xlu0 %v6277_v60, %s4699_s16  ;;  %v6542_v24 = vadd.f32 %v6429_v26, %v2210_v14  ;;  %v2213_v45 = vmul.f32 %v6410_v0, %v2174_v16  ;;  %v2172_v38 = vmax.f32 %v2119_v18, 0.0  ;;  %v6546_v17 = vrot.slane %v6532_v13, 7 }
 0x31d   : > { %2942 = vst.msk [vmem:[#allocation3 + $0x278] sm:$0xff] %vm2259_vm2, %v6532_v13  ;;  %3235 = vrot.lane.b32.xlu1 %v6273_v47, %s4699_s16  ;;  %v2653_v15 = vrot.slane %v6532_v13, 1 }
 0x31e   : > { %v2803_v44 = vpop.permute.xlu0 %2802  ;;  %2940 = vst.msk [vmem:[#allocation3 + $0x248] sm:$0xff] %vm2259_vm2, %v6542_v24  ;;  %v6553_v60 = vadd.f32 %v6429_v26, %v2213_v45  ;;  %v2211_v31 = vmul.f32 %v6410_v0, %v2172_v38  ;;  %v6557_v46 = vrot.slane %v6542_v24, 7  ;;  %v2650_v40 = vrot.slane %v6542_v24, 1 }
 0x31f   : > { %2488 = vst.msk [vmem:[#allocation3 + $0x2a0] sm:$0xfe] %vm2461_vm3, %v6546_v17  ;;  %v3220_v3 = vpop.permute.xlu1 %3219 }
 0x320   : > { %2892 = vst.msk [vmem:[#allocation3 + $0xc0] sm:$0xfe] %vm2882_vm12, %v2803_v44  ;;  %2987 = vrot.lane.b32.xlu0 %v6312_v61, %s4697_s21  ;;  %v6569_v25 = vadd.f32 %v6429_v26, %v2211_v31  ;;  %v2425_v19 = vrot.slane %v6553_v60, 7  ;;  %v6576_v33 = vrot.slane %v6553_v60, 1 }
 0x321   : > { %3300 = vst.msk [vmem:[#allocation3 + $0xe0] sm:$0xff] %vm2884_vm10, %v3220_v3  ;;  %2820 = vrot.lane.b32.xlu1 %v6326_v4, %s4699_s16 }
 0x322   : > { %2943 = vst.msk [vmem:[#allocation3 + $0x290] sm:$0xff] %vm2259_vm2, %v6553_v60  ;;  %v2972_v54 = vpop.permute.xlu0 %2971  ;;  %2941 = vst.msk [vmem:[#allocation3 + $0x260] sm:$0xff] %vm2259_vm2, %v6569_v25  ;;  %v2422_v29 = vrot.slane %v6569_v25, 7  ;;  %v6584_v57 = vrot.slane %v6569_v25, 1  ;;  %v6588_v53 = vsel %vm2384_vm6, %v6546_v17, %v2425_v19  ;;  %v6592_v42 = vsel %vm2613_vm5, %v2653_v15, %v6576_v33  ;;  %v3407_v7 = vld [vmem:[#allocation3 + $0xc8] sm:$0xff] }
 0x323   : > { %2486 = vst.msk [vmem:[#allocation3 + $0x270] sm:$0xfe] %vm2461_vm3, %v6557_v46  ;;  %v2805_v4 = vpop.permute.xlu1 %2804 }
 0x324   : > { %3377 = vst.msk [vmem:[#allocation3 + $0x268] sm:$0x7f] %vm3352_vm4, %v6576_v33  ;;  %2524 = vrot.lane.b32.xlu0 %v6262_v48, %s4697_s21  ;;  %v6606_v43 = vsel %vm2384_vm6, %v6557_v46, %v2422_v29  ;;  %v6610_v52 = vsel %vm2613_vm5, %v2650_v40, %v6584_v57  ;;  %3375 = vst.msk [vmem:[#allocation3 + $0x238] sm:$0x7f] %vm3352_vm4, %v6584_v57 }
 0x325   : > { %3058 = vst.msk [vmem:[#allocation3 + $0xf8] sm:$0xff] %vm2582_vm7, %v2972_v54  ;;  %2989 = vrot.lane.b32.xlu1 %v6296_v11, %s4697_s21 }
 0x326   : > { %2489 = vst.msk [vmem:[#allocation3 + $0x2b8] sm:$0xff] %vm2259_vm2, %v6588_v53  ;;  %3376 = vst.msk [vmem:[#allocation3 + $0x250] sm:$0xff] %vm2259_vm2, %v6592_v42  ;;  %v2509_v48 = vpop.permute.xlu0 %2508 }
 0x327   : > { %2893 = vst.msk [vmem:[#allocation3 + $0xd8] sm:$0xff] %vm2884_vm10, %v2805_v4  ;;  %v2974_v55 = vpop.permute.xlu1 %2973  ;;  %v3406_v62 = vld [vmem:[#allocation3 + $0xc0] sm:$0xff] }
 0x328   : > { %2487 = vst.msk [vmem:[#allocation3 + $0x288] sm:$0xff] %vm2259_vm2, %v6606_v43  ;;  %3374 = vst.msk [vmem:[#allocation3 + $0x220] sm:$0xff] %vm2259_vm2, %v6610_v52  ;;  %v3410_v27 = vld [vmem:[#allocation3 + $0xe0] sm:$0xff]  ;;  %3116 = vrot.lane.b32.xlu0 %v6414_v10, %s4698_s30 }
 0x329   : > { %2591 = vst.msk [vmem:[#allocation3 + $0xf0] sm:$0xff] %vm2582_vm7, %v2509_v48  ;;  %v3491_v22 = vpack.c.bf16 %v3410_v27, %v3407_v7  ;;  %2526 = vrot.lane.b32.xlu1 %v6289_v50, %s4697_s21 }
 0x32a   : > { %3059 = vst.msk [vmem:[#allocation3 + $0x110] sm:$0x7f] %vm3048_vm0, %v2974_v55  ;;  %v3101_v39 = vpop.permute.xlu0 %3100 }
 0x32b   : > { %3782 = vmatprep.mubr.bf16.mxu1 %v3491_v22  ;;  %3181 = vst.msk [vmem:[#allocation3 + $0xf8] sm:$0xfe] %vm3170_vm8, %v3101_v39  ;;  %v2511_v63 = vpop.permute.xlu1 %2510 }
 0x32c   : > { %2592 = vst.msk [vmem:[#allocation3 + $0x108] sm:$0xff] %vm2582_vm7, %v2511_v63  ;;  %2691 = vrot.lane.b32.xlu0 %v6330_v9, %s4698_s30 }
 0x32d   : > { %3118 = vrot.lane.b32.xlu1 %v6468_v34, %s4698_s30 }
 0x32e   : > { %v3409_v41 = vld [vmem:[#allocation3 + $0xd8] sm:$0xff]  ;;  %v2676_v28 = vpop.permute.xlu0 %2675 }
 0x32f   : > { %v3490_v12 = vpack.c.bf16 %v3409_v41, %v3406_v62  ;;  %2759 = vst.msk [vmem:[#allocation3 + $0xf0] sm:$0xff] %vm2749_vm9, %v2676_v28  ;;  %v3103_v50 = vpop.permute.xlu1 %3102 }
 0x330   : > { %3182 = vst.msk [vmem:[#allocation3 + $0x110] sm:$0xff] %vm2749_vm9, %v3103_v50  ;;  %3237 = vrot.lane.b32.xlu0 %v6394_v58, %s4699_s16 }
 0x331   : > { %3783 = vmatmul.mubr.bf16.gmra.mxu1 %v3490_v12  ;;  %2693 = vrot.lane.b32.xlu1 %v6304_v8, %s4698_s30 }
 0x332   : > { %v3222_v21 = vpop.permute.xlu0 %3221 }
 0x333   : > { %3301 = vst.msk [vmem:[#allocation3 + $0xf8] sm:$0xff] %vm2884_vm10, %v3222_v21  ;;  %v2678_v9 = vpop.permute.xlu1 %2677 }
 0x334   : > { %2760 = vst.msk [vmem:[#allocation3 + $0x108] sm:$0x7f] %vm2751_vm11, %v2678_v9  ;;  %2822 = vrot.lane.b32.xlu0 %v6266_v56, %s4699_s16 }
 0x335   : > { %3239 = vrot.lane.b32.xlu1 %v6432_v1, %s4699_s16  ;;  %v4583_v23 = vpop.f32.mrf.mxu0 }
 0x336   : > { %v2807_v14 = vpop.permute.xlu0 %2806  ;;  %v2177_v16 = vmax.f32 %v4583_v23, 0.0 }
 0x337   : > { %2894 = vst.msk [vmem:[#allocation3 + $0xf0] sm:$0xfe] %vm2882_vm12, %v2807_v14  ;;  %v3224_v51 = vpop.permute.xlu1 %3223  ;;  %v2132_v18 = vpop.f32.mrf.mxu0 }
 0x338   : > { %3302 = vst.msk [vmem:[#allocation3 + $0x110] sm:$0xff] %vm2884_vm10, %v3224_v51  ;;  %2991 = vrot.lane.b32.xlu0 %v6472_v36, %s4697_s21  ;;  %v2216_v8 = vmul.f32 %v6410_v0, %v2177_v16  ;;  %v2175_v45 = vmax.f32 %v2132_v18, 0.0 }
 0x339   : > { %2824 = vrot.lane.b32.xlu1 %v6308_v6, %s4699_s16  ;;  %v4584_v56 = vpop.f32.mrf.mxu0 }
 0x33a   : > { %v2976_v38 = vpop.permute.xlu0 %2975  ;;  %v6652_v44 = vadd.f32 %v6429_v26, %v2216_v8  ;;  %v2214_v31 = vmul.f32 %v6410_v0, %v2175_v45  ;;  %v2178_v15 = vmax.f32 %v4584_v56, 0.0  ;;  %v3413_v27 = vld [vmem:[#allocation3 + $0xf8] sm:$0xff] }
 0x33b   : > { %3060 = vst.msk [vmem:[#allocation3 + $0x128] sm:$0xff] %vm2582_vm7, %v2976_v38  ;;  %v2809_v3 = vpop.permute.xlu1 %2808  ;;  %v2135_v40 = vpop.f32.mrf.mxu0 }
 0x33c   : > { %2895 = vst.msk [vmem:[#allocation3 + $0x108] sm:$0xff] %vm2884_vm10, %v2809_v3  ;;  %2528 = vrot.lane.b32.xlu0 %v6253_v35, %s4697_s21  ;;  %v6662_v6 = vadd.f32 %v6429_v26, %v2214_v31  ;;  %v2217_v19 = vmul.f32 %v6410_v0, %v2178_v15  ;;  %v2176_v54 = vmax.f32 %v2135_v40, 0.0  ;;  %v2948_v55 = vrot.slane %v6652_v44, 1 }
 0x33d   : > { %2946 = vst.msk [vmem:[#allocation3 + $0x2d8] sm:$0xff] %vm2259_vm2, %v6652_v44  ;;  %2993 = vrot.lane.b32.xlu1 %v6446_v32, %s4697_s21 }
 0x33e   : > { %v2513_v29 = vpop.permute.xlu0 %2512  ;;  %2944 = vst.msk [vmem:[#allocation3 + $0x2a8] sm:$0xff] %vm2259_vm2, %v6662_v6  ;;  %v6670_v4 = vadd.f32 %v6429_v26, %v2217_v19  ;;  %v2215_v35 = vmul.f32 %v6410_v0, %v2176_v54  ;;  %v6674_v48 = vrot.slane %v6662_v6, 7  ;;  %v2656_v63 = vrot.slane %v6662_v6, 1  ;;  %v3412_v50 = vld [vmem:[#allocation3 + $0xf0] sm:$0xff] }
 0x33f   : > { %2593 = vst.msk [vmem:[#allocation3 + $0x120] sm:$0xff] %vm2582_vm7, %v2513_v29  ;;  %v2978_v7 = vpop.permute.xlu1 %2977  ;;  %v3416_v22 = vld [vmem:[#allocation3 + $0x110] sm:$0xff] }
 0x340   : > { %3061 = vst.msk [vmem:[#allocation3 + $0x140] sm:$0x7f] %vm3048_vm0, %v2978_v7  ;;  %3120 = vrot.lane.b32.xlu0 %v6398_v5, %s4698_s30  ;;  %v3494_v39 = vpack.c.bf16 %v3416_v22, %v3413_v27  ;;  %v6684_v0 = vadd.f32 %v6429_v26, %v2215_v35  ;;  %v6690_v62 = vrot.slane %v6670_v4, 1 }
 0x341   : > { %2947 = vst.msk [vmem:[#allocation3 + $0x2f0] sm:$0xff] %vm2259_vm2, %v6670_v4  ;;  %2530 = vrot.lane.b32.xlu1 %v6273_v47, %s4697_s21 }
 0x342   : > { %2490 = vst.msk [vmem:[#allocation3 + $0x2d0] sm:$0xfe] %vm2461_vm3, %v6674_v48  ;;  %v3105_v41 = vpop.permute.xlu0 %3104  ;;  %3790 = vmatprep.mubr.bf16.mxu1 %v3494_v39  ;;  %v2428_v12 = vrot.slane %v6684_v0, 7  ;;  %v6698_v26 = vrot.slane %v6684_v0, 1  ;;  %v6702_v28 = vsel %vm2613_vm5, %v2948_v55, %v6690_v62 }
 0x343   : > { %2945 = vst.msk [vmem:[#allocation3 + $0x2c0] sm:$0xff] %vm2259_vm2, %v6684_v0  ;;  %v2515_v47 = vpop.permute.xlu1 %2514  ;;  %v3415_v21 = vld [vmem:[#allocation3 + $0x108] sm:$0xff]  ;;  %3380 = vst.msk [vmem:[#allocation3 + $0x2b0] sm:$0xff] %vm2259_vm2, %v6702_v28 }
 0x344   : > { %3381 = vst.msk [vmem:[#allocation3 + $0x2c8] sm:$0x7f] %vm3352_vm4, %v6690_v62  ;;  %2695 = vrot.lane.b32.xlu0 %v6312_v61, %s4698_s30  ;;  %v3493_v9 = vpack.c.bf16 %v3415_v21, %v3412_v50  ;;  %v6714_v23 = vsel %vm2384_vm6, %v6674_v48, %v2428_v12  ;;  %v6718_v14 = vsel %vm2613_vm5, %v2656_v63, %v6698_v26  ;;  %3379 = vst.msk [vmem:[#allocation3 + $0x298] sm:$0x7f] %vm3352_vm4, %v6698_v26 }
 0x345   : > { %3183 = vst.msk [vmem:[#allocation3 + $0x128] sm:$0xfe] %vm3170_vm8, %v3105_v41  ;;  %3122 = vrot.lane.b32.xlu1 %v6450_v2, %s4698_s30 }
 0x346   : > { %2594 = vst.msk [vmem:[#allocation3 + $0x138] sm:$0xff] %vm2582_vm7, %v2515_v47  ;;  %v2680_v61 = vpop.permute.xlu0 %2679  ;;  %3791 = vmatmul.mubr.bf16.gmra.mxu1 %v3493_v9 }
 0x347   : > { %2491 = vst.msk [vmem:[#allocation3 + $0x2e8] sm:$0xff] %vm2259_vm2, %v6714_v23  ;;  %3378 = vst.msk [vmem:[#allocation3 + $0x280] sm:$0xff] %vm2259_vm2, %v6718_v14  ;;  %v3107_v16 = vpop.permute.xlu1 %3106 }
 0x348   : > { %2761 = vst.msk [vmem:[#allocation3 + $0x120] sm:$0xff] %vm2749_vm9, %v2680_v61  ;;  %3184 = vst.msk [vmem:[#allocation3 + $0x140] sm:$0xff] %vm2749_vm9, %v3107_v16  ;;  %3241 = vrot.lane.b32.xlu0 %v6384_v49, %s4699_s16 }
 0x349   : > { %2697 = vrot.lane.b32.xlu1 %v6296_v11, %s4698_s30 }
 0x34a   : > { %v3226_v51 = vpop.permute.xlu0 %3225 }
 0x34b   : > { %3303 = vst.msk [vmem:[#allocation3 + $0x128] sm:$0xff] %vm2884_vm10, %v3226_v51  ;;  %v2682_v18 = vpop.permute.xlu1 %2681 }
 0x34c   : > { %2762 = vst.msk [vmem:[#allocation3 + $0x138] sm:$0x7f] %vm2751_vm11, %v2682_v18  ;;  %2826 = vrot.lane.b32.xlu0 %v6414_v10, %s4699_s16 }
 0x34d   : > { %3243 = vrot.lane.b32.xlu1 %v6405_v59, %s4699_s16 }
 0x34e   : > { %v2811_v8 = vpop.permute.xlu0 %2810 }
 0x34f   : > { %2896 = vst.msk [vmem:[#allocation3 + $0x120] sm:$0xfe] %vm2882_vm12, %v2811_v8  ;;  %v3228_v45 = vpop.permute.xlu1 %3227 }
 0x350   : > { %3304 = vst.msk [vmem:[#allocation3 + $0x140] sm:$0xff] %vm2884_vm10, %v3228_v45  ;;  %2995 = vrot.lane.b32.xlu0 %v6454_v37, %s4697_s21  ;;  %v3387_v45 = vld [vmem:[#allocation3 + $0x28] sm:$0xff] }
 0x351   : > { %2828 = vrot.lane.b32.xlu1 %v6468_v34, %s4699_s16 }
 0x352   : > { %v2980_v11 = vpop.permute.xlu0 %2979  ;;  %v3419_v31 = vld [vmem:[#allocation3 + $0x128] sm:$0xff] }
 0x353   : > { %3062 = vst.msk [vmem:[#allocation3 + $0x158] sm:$0xff] %vm2582_vm7, %v2980_v11  ;;  %v2813_v56 = vpop.permute.xlu1 %2812 }
 0x354   : > { %2897 = vst.msk [vmem:[#allocation3 + $0x138] sm:$0xff] %vm2884_vm10, %v2813_v56  ;;  %2532 = vrot.lane.b32.xlu0 %v6394_v58, %s4697_s21 }
 0x355   : > { %2997 = vrot.lane.b32.xlu1 %v6438_v30, %s4697_s21 }
 0x356   : > { %v2517_v10 = vpop.permute.xlu0 %2516  ;;  %v3418_v40 = vld [vmem:[#allocation3 + $0x120] sm:$0xff] }
 0x357   : > { %2595 = vst.msk [vmem:[#allocation3 + $0x150] sm:$0xff] %vm2582_vm7, %v2517_v10  ;;  %v2982_v38 = vpop.permute.xlu1 %2981  ;;  %v3422_v15 = vld [vmem:[#allocation3 + $0x140] sm:$0xff] }
 0x358   : > { %3063 = vst.msk [vmem:[#allocation3 + $0x170] sm:$0x7f] %vm3048_vm0, %v2982_v38  ;;  %3124 = vrot.lane.b32.xlu0 %v6557_v46, %s4698_s30  ;;  %v3497_v34 = vpack.c.bf16 %v3422_v15, %v3419_v31  ;;  %v4677_v31 = vld [vmem:[%s7216_s2 + $0x80] sm:$0xff]  }
 0x359   : > { %2534 = vrot.lane.b32.xlu1 %v6432_v1, %s4697_s21 }
 0x35a   : > { %3798 = vmatprep.mubr.bf16.mxu1 %v3497_v34  ;;  %v3109_v58 = vpop.permute.xlu0 %3108 }
 0x35b   : > { %3185 = vst.msk [vmem:[#allocation3 + $0x158] sm:$0xfe] %vm3170_vm8, %v3109_v58  ;;  %v2519_v3 = vpop.permute.xlu1 %2518  ;;  %v3421_v19 = vld [vmem:[#allocation3 + $0x138] sm:$0xff] }
 0x35c   : > { %2596 = vst.msk [vmem:[#allocation3 + $0x168] sm:$0xff] %vm2582_vm7, %v2519_v3  ;;  %2699 = vrot.lane.b32.xlu0 %v6472_v36, %s4698_s30  ;;  %v3496_v54 = vpack.c.bf16 %v3421_v19, %v3418_v40  ;;  %v3393_v58 = vld [vmem:[#allocation3 + $0x58] sm:$0xff]  ;;  %v3396_v40 = vld [vmem:[#allocation3 + $0x70] sm:$0xff]  ;;  %v3399_v19 = vld [vmem:[#allocation3 + $0x88] sm:$0xff] }
 0x35d   : > { %3126 = vrot.lane.b32.xlu1 %v6606_v43, %s4698_s30 }
 0x35e   : > { %3799 = vmatmul.mubr.bf16.gmra.mxu1 %v3496_v54  ;;  %v2684_v29 = vpop.permute.xlu0 %2683 }
 0x35f   : > { %2763 = vst.msk [vmem:[#allocation3 + $0x150] sm:$0xff] %vm2749_vm9, %v2684_v29  ;;  %v3111_v1 = vpop.permute.xlu1 %3110  ;;  %v3486_v29 = vpack.c.bf16 %v3399_v19, %v3396_v40 }
 0x360   : > { %3186 = vst.msk [vmem:[#allocation3 + $0x170] sm:$0xff] %vm2749_vm9, %v3111_v1  ;;  %3245 = vrot.lane.b32.xlu0 %v6542_v24, %s4699_s16 }
 0x361   : > { %2701 = vrot.lane.b32.xlu1 %v6446_v32, %s4698_s30 }
 0x362   : > { %v2952_v35 = vpop.permute.xlu0 %2951 }
 0x363   : > { %3047 = vst.msk [vmem:[#allocation3 + $0x8] sm:$0xff] %vm2582_vm7, %v2952_v35  ;;  %v2686_v36 = vpop.permute.xlu1 %2685  ;;  %v3405_v35 = vld [vmem:[#allocation3 + $0xb8] sm:$0xff] }
 0x364   : > { %2764 = vst.msk [vmem:[#allocation3 + $0x168] sm:$0x7f] %vm2751_vm11, %v2686_v36  ;;  %2830 = vrot.lane.b32.xlu0 %v6398_v5, %s4699_s16 }
 0x365   : > { %3247 = vrot.lane.b32.xlu1 %v6569_v25, %s4699_s16 }
 0x366   : > { %v3230_v55 = vpop.permute.xlu0 %3229 }
 0x367   : > { %3305 = vst.msk [vmem:[#allocation3 + $0x158] sm:$0xff] %vm2884_vm10, %v3230_v55  ;;  %v2954_v7 = vpop.permute.xlu1 %2953  ;;  %v3408_v55 = vld [vmem:[#allocation3 + $0xd0] sm:$0xff] }
 0x368   : > { %3049 = vst.msk [vmem:[#allocation3 + $0x20] sm:$0x7f] %vm3048_vm0, %v2954_v7  ;;  %2999 = vrot.lane.b32.xlu0 %v6610_v52, %s4697_s21  ;;  %v3411_v7 = vld [vmem:[#allocation3 + $0xe8] sm:$0xff] }
 0x369   : > { %2832 = vrot.lane.b32.xlu1 %v6450_v2, %s4699_s16 }
 0x36a   : > { %v2815_v32 = vpop.permute.xlu0 %2814 }
 0x36b   : > { %2898 = vst.msk [vmem:[#allocation3 + $0x150] sm:$0xfe] %vm2882_vm12, %v2815_v32  ;;  %v3232_v27 = vpop.permute.xlu1 %3231 }
 0x36c   : > { %3306 = vst.msk [vmem:[#allocation3 + $0x170] sm:$0xff] %vm2884_vm10, %v3232_v27  ;;  %2536 = vrot.lane.b32.xlu0 %v6384_v49, %s4697_s21 }
 0x36d   : > { %3001 = vrot.lane.b32.xlu1 %v6584_v57, %s4697_s21 }
 0x36e   : > { %v3081_v5 = vpop.permute.xlu0 %3080  ;;  %v3425_v49 = vld [vmem:[#allocation3 + $0x158] sm:$0xff] }
 0x36f   : > { %3171 = vst.msk [vmem:[#allocation3 + $0x8] sm:$0xfe] %vm3170_vm8, %v3081_v5  ;;  %v2817_v22 = vpop.permute.xlu1 %2816  ;;  %v3492_v5 = vpack.c.bf16 %v3411_v7, %v3408_v55 }
 0x370   : > { %2899 = vst.msk [vmem:[#allocation3 + $0x168] sm:$0xff] %vm2884_vm10, %v2817_v22  ;;  %3128 = vrot.lane.b32.xlu0 %v6546_v17, %s4698_s30 }
 0x371   : > { %2538 = vrot.lane.b32.xlu1 %v6405_v59, %s4697_s21 }
 0x372   : > { %v3202_v2 = vpop.permute.xlu0 %3201  ;;  %v3424_v47 = vld [vmem:[#allocation3 + $0x150] sm:$0xff] }
 0x373   : > { %3291 = vst.msk [vmem:[#allocation3 + $0x8] sm:$0xff] %vm2884_vm10, %v3202_v2  ;;  %v3083_v39 = vpop.permute.xlu1 %3082  ;;  %v3428_v63 = vld [vmem:[#allocation3 + $0x170] sm:$0xff] }
 0x374   : > { %3172 = vst.msk [vmem:[#allocation3 + $0x20] sm:$0xff] %vm2749_vm9, %v3083_v39  ;;  %2703 = vrot.lane.b32.xlu0 %v6454_v37, %s4698_s30  ;;  %v3500_v41 = vpack.c.bf16 %v3428_v63, %v3425_v49  ;;  %v3414_v49 = vld [vmem:[#allocation3 + $0x100] sm:$0xff]  ;;  %v3417_v63 = vld [vmem:[#allocation3 + $0x118] sm:$0xff] }
 0x375   : > { %3130 = vrot.lane.b32.xlu1 %v6588_v53, %s4698_s30 }
 0x376   : > { %v2787_v12 = vpop.permute.xlu0 %2786  ;;  %3806 = vmatprep.mubr.bf16.mxu1 %v3500_v41 }
 0x377   : > { %2883 = vst.msk [vmem:[#allocation3] sm:$0xfe] %vm2882_vm12, %v2787_v12  ;;  %v3204_v59 = vpop.permute.xlu1 %3203  ;;  %v3427_v50 = vld [vmem:[#allocation3 + $0x168] sm:$0xff]  ;;  %v3420_v12 = vld [vmem:[#allocation3 + $0x130] sm:$0xff] }
 0x378   : > { %3292 = vst.msk [vmem:[#allocation3 + $0x20] sm:$0xff] %vm2884_vm10, %v3204_v59  ;;  %3249 = vrot.lane.b32.xlu0 %v6532_v13, %s4699_s16  ;;  %v3499_v21 = vpack.c.bf16 %v3427_v50, %v3424_v47  ;;  %v3423_v59 = vld [vmem:[#allocation3 + $0x148] sm:$0xff] }
 0x379   : > { %2705 = vrot.lane.b32.xlu1 %v6438_v30, %s4698_s30 }
 0x37a   : > { %v2984_v37 = vpop.permute.xlu0 %2983  ;;  %3807 = vmatmul.mubr.bf16.gmra.mxu1 %v3499_v21  ;;  %v3383_v51 = vld [vmem:[#allocation3 + $0x8] sm:$0xff] }
 0x37b   : > { %3064 = vst.msk [vmem:[#allocation3 + $0x188] sm:$0xff] %vm2582_vm7, %v2984_v37  ;;  %v2789_v9 = vpop.permute.xlu1 %2788 }
 0x37c   : > { %2885 = vst.msk [vmem:[#allocation3 + $0x18] sm:$0xff] %vm2884_vm10, %v2789_v9  ;;  %2834 = vrot.lane.b32.xlu0 %v6557_v46, %s4699_s16  ;;  %v3384_v46 = vld [vmem:[#allocation3 + $0x10] sm:$0xff]  ;;  %v3495_v9 = vpack.c.bf16 %v3417_v63, %v3414_v49  ;;  %v3477_v49 = vld [vmem:[#allocation3 + $0x2f8] sm:$0xff] }
 0x37d   : > { %3251 = vrot.lane.b32.xlu1 %v6553_v60, %s4699_s16 }
 0x37e   : > { %v2521_v61 = vpop.permute.xlu0 %2520  ;;  %v3382_v56 = vld [vmem:[#allocation3] sm:$0xff] }
 0x37f   : > { %2597 = vst.msk [vmem:[#allocation3 + $0x180] sm:$0xff] %vm2582_vm7, %v2521_v61  ;;  %v2986_v16 = vpop.permute.xlu1 %2985  ;;  %v3386_v18 = vld [vmem:[#allocation3 + $0x20] sm:$0xff] }
 0x380   : > { %3065 = vst.msk [vmem:[#allocation3 + $0x1a0] sm:$0x7f] %vm3048_vm0, %v2986_v16  ;;  %3003 = vrot.lane.b32.xlu0 %v6592_v42, %s4697_s21  ;;  %v3479_v30 = vpack.c.bf16 %v3386_v18, %v3383_v51  ;;  %v6871_v16 = vrot.slane %v6652_v44, 7  ;;  %v3426_v18 = vld [vmem:[#allocation3 + $0x160] sm:$0xff] }
 0x381   : > { %2836 = vrot.lane.b32.xlu1 %v6606_v43, %s4699_s16  ;;  %v3480_v43 = vpack.c.bf16 %v3387_v45, %v3384_v46  ;;  %v3432_v46 = vld [vmem:[#allocation3 + $0x190] sm:$0xff]  ;;  %v3435_v45 = vld [vmem:[#allocation3 + $0x1a8] sm:$0xff] }
 0x382   : > { %v3113_v8 = vpop.permute.xlu0 %3112  ;;  %3750 = vmatprep.mubr.bf16.mxu0 %v3479_v30  ;;  %v3429_v30 = vld [vmem:[#allocation3 + $0x178] sm:$0xff] }
 0x383   : > { %3187 = vst.msk [vmem:[#allocation3 + $0x188] sm:$0xfe] %vm3170_vm8, %v3113_v8  ;;  %v2523_v11 = vpop.permute.xlu1 %2522  ;;  %v3385_v10 = vld [vmem:[#allocation3 + $0x18] sm:$0xff] }
 0x384   : > { %2598 = vst.msk [vmem:[#allocation3 + $0x198] sm:$0xff] %vm2582_vm7, %v2523_v11  ;;  %2540 = vrot.lane.b32.xlu0 %v6542_v24, %s4697_s21  ;;  %v3478_v38 = vpack.c.bf16 %v3385_v10, %v3382_v56  ;;  %v3390_v24 = vld [vmem:[#allocation3 + $0x40] sm:$0xff]  ;;  %v3501_v10 = vpack.c.bf16 %v3429_v30, %v3426_v18 }
 0x385   : > { %3005 = vrot.lane.b32.xlu1 %v6576_v33, %s4697_s21  ;;  %v3483_v54 = vpack.c.bf16 %v3393_v58, %v3390_v24  ;;  %v3447_v24 = vld [vmem:[#allocation3 + $0x208] sm:$0xff] }
 0x386   : > { %v2688_v15 = vpop.permute.xlu0 %2687  ;;  %3751 = vmatmul.mubr.bf16.vlgmr.msra.gmra.mxu0 %v3478_v38 }
 0x387   : > { %2765 = vst.msk [vmem:[#allocation3 + $0x180] sm:$0xff] %vm2749_vm9, %v2688_v15  ;;  %4586 = vmatpush3.bf16.msra.mxu0 %v6497_v20  ;;  %4589 = vmatprep.mubr.msk.bf16.mxu0 %vm2259_vm2, %v3480_v43  ;;  %v3115_v34 = vpop.permute.xlu1 %3114  ;;  %v3441_v43 = vld [vmem:[#allocation3 + $0x1d8] sm:$0xff] }
 0x388   : > { %3188 = vst.msk [vmem:[#allocation3 + $0x1a0] sm:$0xff] %vm2749_vm9, %v3115_v34  ;;  %3132 = vrot.lane.b32.xlu0 %v6674_v48, %s4698_s30  ;;  %4587 = vmatprep.subr.bf16.mxu0 %v4677_v31  ;;  %v3444_v34 = vld [vmem:[#allocation3 + $0x1f0] sm:$0xff] }
 0x389   : > { %2542 = vrot.lane.b32.xlu1 %v6569_v25, %s4697_s21 }
 0x38a   : > { %v3234_v3 = vpop.permute.xlu0 %3233 }
 0x38b   : > { %3307 = vst.msk [vmem:[#allocation3 + $0x188] sm:$0xff] %vm2884_vm10, %v3234_v3  ;;  %4588 = vmatpush3.bf16.msra.mxu0 %v4677_v31  ;;  %v2690_v20 = vpop.permute.xlu1 %2689 }
 0x38c   : > { %2766 = vst.msk [vmem:[#allocation3 + $0x198] sm:$0x7f] %vm2751_vm11, %v2690_v20  ;;  %2707 = vrot.lane.b32.xlu0 %v6610_v52, %s4698_s30  ;;  %v3402_v52 = vld [vmem:[#allocation3 + $0xa0] sm:$0xff] }
 0x38d   : > { %3134 = vrot.lane.b32.xlu1 %v6714_v23, %s4698_s30  ;;  %v3489_v27 = vpack.c.bf16 %v3405_v35, %v3402_v52 }
 0x38e   : > { %v2819_v25 = vpop.permute.xlu0 %2818  ;;  %4590 = vmatmul.mubr.msk.bf16.vlgmr.msra.gmra.mxu0 %vm2259_vm2, %v3483_v54  ;;  %v3453_v54 = vld [vmem:[#allocation3 + $0x238] sm:$0xff] }
 0x38f   : > { %2900 = vst.msk [vmem:[#allocation3 + $0x180] sm:$0xfe] %vm2882_vm12, %v2819_v25  ;;  %4593 = vmatprep.mubr.msk.bf16.mxu0 %vm2259_vm2, %v3486_v29  ;;  %v3236_v1 = vpop.permute.xlu1 %3235  ;;  %v3456_v25 = vld [vmem:[#allocation3 + $0x250] sm:$0xff] }
 0x390   : > { %3308 = vst.msk [vmem:[#allocation3 + $0x1a0] sm:$0xff] %vm2884_vm10, %v3236_v1  ;;  %3253 = vrot.lane.b32.xlu0 %v6662_v6, %s4699_s16  ;;  %v3459_v1 = vld [vmem:[#allocation3 + $0x268] sm:$0xff] }
 0x391   : > { %2709 = vrot.lane.b32.xlu1 %v6584_v57, %s4698_s30 }
 0x392   : > { %v2988_v36 = vpop.permute.xlu0 %2987  ;;  %v3431_v2 = vld [vmem:[#allocation3 + $0x188] sm:$0xff] }
 0x393   : > { %3066 = vst.msk [vmem:[#allocation3 + $0x1b8] sm:$0xff] %vm2582_vm7, %v2988_v36  ;;  %v2821_v32 = vpop.permute.xlu1 %2820 }
 0x394   : > { %2901 = vst.msk [vmem:[#allocation3 + $0x198] sm:$0xff] %vm2884_vm10, %v2821_v32  ;;  %2838 = vrot.lane.b32.xlu0 %v6546_v17, %s4699_s16 }
 0x395   : > { %3255 = vrot.lane.b32.xlu1 %v6684_v0, %s4699_s16 }
 0x396   : > { %v2525_v22 = vpop.permute.xlu0 %2524  ;;  %4594 = vmatmul.mubr.msk.bf16.gmra.mxu0 %vm2259_vm2, %v3489_v27  ;;  %v3430_v50 = vld [vmem:[#allocation3 + $0x180] sm:$0xff] }
 0x397   : > { %2599 = vst.msk [vmem:[#allocation3 + $0x1b0] sm:$0xff] %vm2582_vm7, %v2525_v22  ;;  %4597 = vmatprep.mubr.msk.bf16.mxu0 %vm2259_vm2, %v3492_v5  ;;  %v2990_v57 = vpop.permute.xlu1 %2989  ;;  %v3434_v39 = vld [vmem:[#allocation3 + $0x1a0] sm:$0xff]  ;;  %v3468_v5 = vld [vmem:[#allocation3 + $0x2b0] sm:$0xff]  ;;  %v3471_v22 = vld [vmem:[#allocation3 + $0x2c8] sm:$0xff] }
 0x398   : > { %3067 = vst.msk [vmem:[#allocation3 + $0x1d0] sm:$0x7f] %vm3048_vm0, %v2990_v57  ;;  %3007 = vrot.lane.b32.xlu0 %v6718_v14, %s4697_s21  ;;  %v3503_v17 = vpack.c.bf16 %v3434_v39, %v3431_v2 }
 0x399   : > { %2840 = vrot.lane.b32.xlu1 %v6588_v53, %s4699_s16  ;;  %v3498_v53 = vpack.c.bf16 %v3423_v59, %v3420_v12 }
 0x39a   : > { %3814 = vmatprep.mubr.bf16.mxu1 %v3503_v17  ;;  %v3117_v41 = vpop.permute.xlu0 %3116  ;;  %v3474_v17 = vld [vmem:[#allocation3 + $0x2e0] sm:$0xff] }
 0x39b   : > { %3189 = vst.msk [vmem:[#allocation3 + $0x1b8] sm:$0xfe] %vm3170_vm8, %v3117_v41  ;;  %v2527_v47 = vpop.permute.xlu1 %2526  ;;  %v3433_v21 = vld [vmem:[#allocation3 + $0x198] sm:$0xff]  ;;  %v3525_v41 = vpack.c.bf16 %v3477_v49, %v3474_v17 }
 0x39c   : > { %2600 = vst.msk [vmem:[#allocation3 + $0x1c8] sm:$0xff] %vm2582_vm7, %v2527_v47  ;;  %2544 = vrot.lane.b32.xlu0 %v6532_v13, %s4697_s21  ;;  %v3502_v37 = vpack.c.bf16 %v3433_v21, %v3430_v50  ;;  %v2784_v13 = vrot.slane %v6670_v4, 7 }
 0x39d   : > { %3009 = vrot.lane.b32.xlu1 %v6698_v26, %s4697_s21 }
 0x39e   : > { %3815 = vmatmul.mubr.bf16.gmra.mxu1 %v3502_v37  ;;  %4598 = vmatmul.mubr.msk.bf16.gmra.mxu0 %vm2259_vm2, %v3495_v9  ;;  %v2692_v61 = vpop.permute.xlu0 %2691  ;;  %v6887_v56 = vsel %vm2384_vm6, %v6871_v16, %v2784_v13 }
 0x39f   : > { %2767 = vst.msk [vmem:[#allocation3 + $0x1b0] sm:$0xff] %vm2749_vm9, %v2692_v61  ;;  %4601 = vmatprep.mubr.msk.bf16.mxu0 %vm2259_vm2, %v3498_v53  ;;  %v3119_v51 = vpop.permute.xlu1 %3118 }
 0x3a0   : > { %3190 = vst.msk [vmem:[#allocation3 + $0x1d0] sm:$0xff] %vm2749_vm9, %v3119_v51  ;;  %3136 = vrot.lane.b32.xlu0 %v6871_v16, %s4698_s30 }
 0x3a1   : > { %2546 = vrot.lane.b32.xlu1 %v6553_v60, %s4697_s21  ;;  %v3504_v60 = vpack.c.bf16 %v3435_v45, %v3432_v46 }
 0x3a2   : > { %v3238_v8 = vpop.permute.xlu0 %3237 }
 0x3a3   : > { %3309 = vst.msk [vmem:[#allocation3 + $0x1b8] sm:$0xff] %vm2884_vm10, %v3238_v8  ;;  %v2694_v11 = vpop.permute.xlu1 %2693 }
 0x3a4   : > { %2768 = vst.msk [vmem:[#allocation3 + $0x1c8] sm:$0x7f] %vm2751_vm11, %v2694_v11  ;;  %2711 = vrot.lane.b32.xlu0 %v6592_v42, %s4698_s30  ;;  %v3438_v42 = vld [vmem:[#allocation3 + $0x1c0] sm:$0xff] }
 0x3a5   : > { %3138 = vrot.lane.b32.xlu1 %v6887_v56, %s4698_s30  ;;  %v3507_v3 = vpack.c.bf16 %v3441_v43, %v3438_v42 }
 0x3a6   : > { %4602 = vmatmul.mubr.msk.bf16.gmra.mxu0 %vm2259_vm2, %v3501_v10  ;;  %v2823_v38 = vpop.permute.xlu0 %2822 }
 0x3a7   : > { %2902 = vst.msk [vmem:[#allocation3 + $0x1b0] sm:$0xfe] %vm2882_vm12, %v2823_v38  ;;  %4605 = vmatprep.mubr.msk.bf16.mxu0 %vm2259_vm2, %v3504_v60  ;;  %v3240_v31 = vpop.permute.xlu1 %3239 }
 0x3a8   : > { %3310 = vst.msk [vmem:[#allocation3 + $0x1d0] sm:$0xff] %vm2884_vm10, %v3240_v31  ;;  %3257 = vrot.lane.b32.xlu0 %v6652_v44, %s4699_s16  ;;  %v3510_v44 = vpack.c.bf16 %v3447_v24, %v3444_v34 }
 0x3a9   : > { %2713 = vrot.lane.b32.xlu1 %v6576_v33, %s4698_s30 }
 0x3aa   : > { %v2992_v15 = vpop.permute.xlu0 %2991  ;;  %v3437_v19 = vld [vmem:[#allocation3 + $0x1b8] sm:$0xff] }
 0x3ab   : > { %3068 = vst.msk [vmem:[#allocation3 + $0x1e8] sm:$0xff] %vm2582_vm7, %v2992_v15  ;;  %v2825_v58 = vpop.permute.xlu1 %2824 }
 0x3ac   : > { %2903 = vst.msk [vmem:[#allocation3 + $0x1c8] sm:$0xff] %vm2884_vm10, %v2825_v58  ;;  %2842 = vrot.lane.b32.xlu0 %v6674_v48, %s4699_s16 }
 0x3ad   : > { %3259 = vrot.lane.b32.xlu1 %v6670_v4, %s4699_s16  ;;  %v3450_v4 = vld [vmem:[#allocation3 + $0x220] sm:$0xff] }
 0x3ae   : > { %v2529_v40 = vpop.permute.xlu0 %2528  ;;  %4606 = vmatmul.mubr.msk.bf16.gmra.mxu0 %vm2259_vm2, %v3507_v3  ;;  %v3436_v35 = vld [vmem:[#allocation3 + $0x1b0] sm:$0xff]  ;;  %v3513_v55 = vpack.c.bf16 %v3453_v54, %v3450_v4 }
 0x3af   : > { %2601 = vst.msk [vmem:[#allocation3 + $0x1e0] sm:$0xff] %vm2582_vm7, %v2529_v40  ;;  %4609 = vmatprep.mubr.msk.bf16.mxu0 %vm2259_vm2, %v3510_v44  ;;  %v2994_v33 = vpop.permute.xlu1 %2993  ;;  %v3440_v20 = vld [vmem:[#allocation3 + $0x1d0] sm:$0xff] }
 0x3b0   : > { %3069 = vst.msk [vmem:[#allocation3 + $0x200] sm:$0x7f] %vm3048_vm0, %v2994_v33  ;;  %2548 = vrot.lane.b32.xlu0 %v6662_v6, %s4697_s21  ;;  %v3506_v48 = vpack.c.bf16 %v3440_v20, %v3437_v19 }
 0x3b1   : > { %2844 = vrot.lane.b32.xlu1 %v6714_v23, %s4699_s16  ;;  %v3516_v23 = vpack.c.bf16 %v3459_v1, %v3456_v25 }
 0x3b2   : > { %v3121_v29 = vpop.permute.xlu0 %3120  ;;  %3822 = vmatprep.mubr.bf16.mxu1 %v3506_v48 }
 0x3b3   : > { %3191 = vst.msk [vmem:[#allocation3 + $0x1e8] sm:$0xfe] %vm3170_vm8, %v3121_v29  ;;  %v2531_v52 = vpop.permute.xlu1 %2530  ;;  %v3439_v36 = vld [vmem:[#allocation3 + $0x1c8] sm:$0xff] }
 0x3b4   : > { %2602 = vst.msk [vmem:[#allocation3 + $0x1f8] sm:$0xff] %vm2582_vm7, %v2531_v52  ;;  %2715 = vrot.lane.b32.xlu0 %v6718_v14, %s4698_s30  ;;  %v3505_v6 = vpack.c.bf16 %v3439_v36, %v3436_v35  ;;  %v3462_v14 = vld [vmem:[#allocation3 + $0x280] sm:$0xff] }
 0x3b5   : > { %2550 = vrot.lane.b32.xlu1 %v6684_v0, %s4697_s21  ;;  %v3465_v0 = vld [vmem:[#allocation3 + $0x298] sm:$0xff] }
 0x3b6   : > { %v2696_v7 = vpop.permute.xlu0 %2695  ;;  %3823 = vmatmul.mubr.bf16.gmra.mxu1 %v3505_v6  ;;  %4610 = vmatmul.mubr.msk.bf16.gmra.mxu0 %vm2259_vm2, %v3513_v55  ;;  %v3519_v2 = vpack.c.bf16 %v3465_v0, %v3462_v14 }
 0x3b7   : > { %2769 = vst.msk [vmem:[#allocation3 + $0x1e0] sm:$0xff] %vm2749_vm9, %v2696_v7  ;;  %v3123_v32 = vpop.permute.xlu1 %3122  ;;  %4613 = vmatprep.mubr.msk.bf16.mxu0 %vm2259_vm2, %v3516_v23 }
 0x3b8   : > { %3192 = vst.msk [vmem:[#allocation3 + $0x200] sm:$0xff] %vm2749_vm9, %v3123_v32  ;;  %3011 = vrot.lane.b32.xlu0 %v6702_v28, %s4697_s21  ;;  %v3522_v28 = vpack.c.bf16 %v3471_v22, %v3468_v5  ;;  %v6972_v32 = vpop.f32.mrf.mxu1 }
 0x3b9   : > { %2717 = vrot.lane.b32.xlu1 %v6698_v26, %s4698_s30 }
 0x3ba   : > { %v3242_v27 = vpop.permute.xlu0 %3241 }
 0x3bb   : > { %3311 = vst.msk [vmem:[#allocation3 + $0x1e8] sm:$0xff] %vm2884_vm10, %v3242_v27  ;;  %v2698_v57 = vpop.permute.xlu1 %2697  ;;  %v6976_v27 = vpop.f32.mrf.mxu1 }
 0x3bc   : > { %2770 = vst.msk [vmem:[#allocation3 + $0x1f8] sm:$0x7f] %vm2751_vm11, %v2698_v57  ;;  %2846 = vrot.lane.b32.xlu0 %v6871_v16, %s4699_s16 }
 0x3bd   : > { %3013 = vrot.lane.b32.xlu1 %v6690_v62, %s4697_s21  ;;  %v6980_v57 = vpop.f32.mrf.mxu1 }
 0x3be   : > { %v2827_v39 = vpop.permute.xlu0 %2826  ;;  %4614 = vmatmul.mubr.msk.bf16.gmra.mxu0 %vm2259_vm2, %v3519_v2 }
 0x3bf   : > { %2904 = vst.msk [vmem:[#allocation3 + $0x1e0] sm:$0xfe] %vm2882_vm12, %v2827_v39  ;;  %v3244_v26 = vpop.permute.xlu1 %3243  ;;  %4617 = vmatprep.mubr.msk.bf16.mxu0 %vm2259_vm2, %v3522_v28  ;;  %v6984_v39 = vpop.f32.mrf.mxu1 }
 0x3c0   : > { %3312 = vst.msk [vmem:[#allocation3 + $0x200] sm:$0xff] %vm2884_vm10, %v3244_v26 }
 0x3c1   : > { %2848 = vrot.lane.b32.xlu1 %v6887_v56, %s4699_s16 }
 0x3c2   : > { %v2996_v63 = vpop.permute.xlu0 %2995  ;;  %v3443_v47 = vld [vmem:[#allocation3 + $0x1e8] sm:$0xff] }
 0x3c3   : > { %3070 = vst.msk [vmem:[#allocation3 + $0x218] sm:$0xff] %vm2582_vm7, %v2996_v63  ;;  %v2829_v62 = vpop.permute.xlu1 %2828 }
 0x3c4   : > { %2905 = vst.msk [vmem:[#allocation3 + $0x1f8] sm:$0xff] %vm2884_vm10, %v2829_v62 }
 0x3c6   : > { %v2533_v12 = vpop.permute.xlu0 %2532  ;;  %4618 = vmatmul.mubr.msk.bf16.gmra.mxu0 %vm2259_vm2, %v3525_v41  ;;  %v3442_v53 = vld [vmem:[#allocation3 + $0x1e0] sm:$0xff]  ;;  %v6987_v41 = vpop.f32.mrf.mxu1 }
 0x3c7   : > { %2603 = vst.msk [vmem:[#allocation3 + $0x210] sm:$0xff] %vm2582_vm7, %v2533_v12  ;;  %v2998_v59 = vpop.permute.xlu1 %2997  ;;  %v3446_v50 = vld [vmem:[#allocation3 + $0x200] sm:$0xff] }
 0x3c8   : > { %3071 = vst.msk [vmem:[#allocation3 + $0x230] sm:$0x7f] %vm3048_vm0, %v2998_v59  ;;  %v3509_v21 = vpack.c.bf16 %v3446_v50, %v3443_v47 }
 0x3ca   : > { %3830 = vmatprep.mubr.bf16.mxu1 %v3509_v21  ;;  %v3125_v37 = vpop.permute.xlu0 %3124  ;;  %v6991_v21 = vpop.f32.mrf.mxu1 }
 0x3cb   : > { %3193 = vst.msk [vmem:[#allocation3 + $0x218] sm:$0xfe] %vm3170_vm8, %v3125_v37  ;;  %v2535_v9 = vpop.permute.xlu1 %2534  ;;  %v3445_v61 = vld [vmem:[#allocation3 + $0x1f8] sm:$0xff] }
 0x3cc   : > { %2604 = vst.msk [vmem:[#allocation3 + $0x228] sm:$0xff] %vm2582_vm7, %v2535_v9  ;;  %v3508_v16 = vpack.c.bf16 %v3445_v61, %v3442_v53  ;;  %v6995_v61 = vpop.f32.mrf.mxu1 }
 0x3ce   : > { %3831 = vmatmul.mubr.bf16.gmra.mxu1 %v3508_v16  ;;  %v2700_v51 = vpop.permute.xlu0 %2699 }
 0x3cf   : > { %2771 = vst.msk [vmem:[#allocation3 + $0x210] sm:$0xff] %vm2749_vm9, %v2700_v51  ;;  %v3127_v13 = vpop.permute.xlu1 %3126 }
 0x3d0   : > { %3194 = vst.msk [vmem:[#allocation3 + $0x230] sm:$0xff] %vm2749_vm9, %v3127_v13  ;;  %v6999_v13 = vpop.f32.mrf.mxu1 }
 0x3d2   : > { %v3246_v18 = vpop.permute.xlu0 %3245 }
 0x3d3   : > { %3313 = vst.msk [vmem:[#allocation3 + $0x218] sm:$0xff] %vm2884_vm10, %v3246_v18  ;;  %v2702_v30 = vpop.permute.xlu1 %2701 }
 0x3d4   : > { %2772 = vst.msk [vmem:[#allocation3 + $0x228] sm:$0x7f] %vm2751_vm11, %v2702_v30 }
 0x3d6   : > { %v2831_v8 = vpop.permute.xlu0 %2830  ;;  %v7002_v18 = vpop.f32.mrf.mxu1 }
 0x3d7   : > { %2906 = vst.msk [vmem:[#allocation3 + $0x210] sm:$0xfe] %vm2882_vm12, %v2831_v8  ;;  %v3248_v46 = vpop.permute.xlu1 %3247 }
 0x3d8   : > { %3314 = vst.msk [vmem:[#allocation3 + $0x230] sm:$0xff] %vm2884_vm10, %v3248_v46  ;;  %v7006_v46 = vpop.f32.mrf.mxu1 }
 0x3da   : > { %v3000_v45 = vpop.permute.xlu0 %2999  ;;  %v3449_v60 = vld [vmem:[#allocation3 + $0x218] sm:$0xff] }
 0x3db   : > { %3072 = vst.msk [vmem:[#allocation3 + $0x248] sm:$0xff] %vm2582_vm7, %v3000_v45  ;;  %v2833_v11 = vpop.permute.xlu1 %2832 }
 0x3dc   : > { %2907 = vst.msk [vmem:[#allocation3 + $0x228] sm:$0xff] %vm2884_vm10, %v2833_v11 }
 0x3de   : > { %v2537_v56 = vpop.permute.xlu0 %2536  ;;  %v3448_v15 = vld [vmem:[#allocation3 + $0x210] sm:$0xff] }
 0x3df   : > { %2605 = vst.msk [vmem:[#allocation3 + $0x240] sm:$0xff] %vm2582_vm7, %v2537_v56  ;;  %v3002_v10 = vpop.permute.xlu1 %3001  ;;  %v3452_v38 = vld [vmem:[#allocation3 + $0x230] sm:$0xff]  ;;  %v7010_v56 = vpop.f32.mrf.mxu1 }
 0x3e0   : > { %3073 = vst.msk [vmem:[#allocation3 + $0x260] sm:$0x7f] %vm3048_vm0, %v3002_v10  ;;  %v3512_v31 = vpack.c.bf16 %v3452_v38, %v3449_v60 }
 0x3e2   : > { %v3129_v42 = vpop.permute.xlu0 %3128  ;;  %3838 = vmatprep.mubr.bf16.mxu1 %v3512_v31 }
 0x3e3   : > { %3195 = vst.msk [vmem:[#allocation3 + $0x248] sm:$0xfe] %vm3170_vm8, %v3129_v42  ;;  %v2539_v43 = vpop.permute.xlu1 %2538  ;;  %v3451_v34 = vld [vmem:[#allocation3 + $0x228] sm:$0xff] }
 0x3e4   : > { %2606 = vst.msk [vmem:[#allocation3 + $0x258] sm:$0xff] %vm2582_vm7, %v2539_v43  ;;  %v3511_v24 = vpack.c.bf16 %v3451_v34, %v3448_v15  ;;  %v7014_v43 = vpop.f32.mrf.mxu1 }
 0x3e6   : > { %v2704_v58 = vpop.permute.xlu0 %2703  ;;  %3839 = vmatmul.mubr.bf16.gmra.mxu1 %v3511_v24 }
 0x3e7   : > { %2773 = vst.msk [vmem:[#allocation3 + $0x240] sm:$0xff] %vm2749_vm9, %v2704_v58  ;;  %v3131_v3 = vpop.permute.xlu1 %3130 }
 0x3e8   : > { %3196 = vst.msk [vmem:[#allocation3 + $0x260] sm:$0xff] %vm2749_vm9, %v3131_v3 }
 0x3ea   : > { %v3250_v44 = vpop.permute.xlu0 %3249 }
 0x3eb   : > { %3315 = vst.msk [vmem:[#allocation3 + $0x248] sm:$0xff] %vm2884_vm10, %v3250_v44  ;;  %v2706_v40 = vpop.permute.xlu1 %2705 }
 0x3ec   : > { %2774 = vst.msk [vmem:[#allocation3 + $0x258] sm:$0x7f] %vm2751_vm11, %v2706_v40 }
 0x3ee   : > { %v2835_v33 = vpop.permute.xlu0 %2834 }
 0x3ef   : > { %2908 = vst.msk [vmem:[#allocation3 + $0x240] sm:$0xfe] %vm2882_vm12, %v2835_v33  ;;  %v3252_v19 = vpop.permute.xlu1 %3251 }
 0x3f0   : > { %3316 = vst.msk [vmem:[#allocation3 + $0x260] sm:$0xff] %vm2884_vm10, %v3252_v19 }
 0x3f1   : > { %v7017_v3 = vpop.f32.mrf.mxu1 }
 0x3f2   : > { %v3004_v20 = vpop.permute.xlu0 %3003  ;;  %v3455_v29 = vld [vmem:[#allocation3 + $0x248] sm:$0xff] }
 0x3f3   : > { %3074 = vst.msk [vmem:[#allocation3 + $0x278] sm:$0xff] %vm2582_vm7, %v3004_v20  ;;  %v2837_v48 = vpop.permute.xlu1 %2836  ;;  %v7021_v19 = vpop.f32.mrf.mxu1 }
 0x3f4   : > { %2909 = vst.msk [vmem:[#allocation3 + $0x258] sm:$0xff] %vm2884_vm10, %v2837_v48 }
 0x3f5   : > { %v7024_v48 = vpop.f32.mrf.mxu1 }
 0x3f6   : > { %v2541_v4 = vpop.permute.xlu0 %2540  ;;  %v3454_v36 = vld [vmem:[#allocation3 + $0x240] sm:$0xff] }
 0x3f7   : > { %2607 = vst.msk [vmem:[#allocation3 + $0x270] sm:$0xff] %vm2582_vm7, %v2541_v4  ;;  %v3006_v54 = vpop.permute.xlu1 %3005  ;;  %v3458_v25 = vld [vmem:[#allocation3 + $0x260] sm:$0xff] }
 0x3f8   : > { %3075 = vst.msk [vmem:[#allocation3 + $0x290] sm:$0x7f] %vm3048_vm0, %v3006_v54  ;;  %v3515_v1 = vpack.c.bf16 %v3458_v25, %v3455_v29  ;;  %v7027_v29 = vpop.f32.mrf.mxu1 }
 0x3fa   : > { %3846 = vmatprep.mubr.bf16.mxu1 %v3515_v1  ;;  %v3133_v52 = vpop.permute.xlu0 %3132 }
 0x3fb   : > { %3197 = vst.msk [vmem:[#allocation3 + $0x278] sm:$0xfe] %vm3170_vm8, %v3133_v52  ;;  %v2543_v35 = vpop.permute.xlu1 %2542  ;;  %v3457_v6 = vld [vmem:[#allocation3 + $0x258] sm:$0xff] }
 0x3fc   : > { %2608 = vst.msk [vmem:[#allocation3 + $0x288] sm:$0xff] %vm2582_vm7, %v2543_v35  ;;  %v3514_v55 = vpack.c.bf16 %v3457_v6, %v3454_v36 }
 0x3fe   : > { %3847 = vmatmul.mubr.bf16.gmra.mxu1 %v3514_v55  ;;  %v2708_v23 = vpop.permute.xlu0 %2707 }
 0x3ff   : > { %2775 = vst.msk [vmem:[#allocation3 + $0x270] sm:$0xff] %vm2749_vm9, %v2708_v23  ;;  %v3135_v7 = vpop.permute.xlu1 %3134 }
 0x400   : > { %3198 = vst.msk [vmem:[#allocation3 + $0x290] sm:$0xff] %vm2749_vm9, %v3135_v7 }
 0x402   : > { %v3254_v14 = vpop.permute.xlu0 %3253 }
 0x403   : > { %3317 = vst.msk [vmem:[#allocation3 + $0x278] sm:$0xff] %vm2884_vm10, %v3254_v14  ;;  %v2710_v0 = vpop.permute.xlu1 %2709 }
 0x404   : > { %2776 = vst.msk [vmem:[#allocation3 + $0x288] sm:$0x7f] %vm2751_vm11, %v2710_v0 }
 0x406   : > { %v2839_v5 = vpop.permute.xlu0 %2838  ;;  %v7029_v1 = vpop.f32.mrf.mxu1 }
 0x407   : > { %2910 = vst.msk [vmem:[#allocation3 + $0x270] sm:$0xfe] %vm2882_vm12, %v2839_v5  ;;  %v3256_v22 = vpop.permute.xlu1 %3255 }
 0x408   : > { %3318 = vst.msk [vmem:[#allocation3 + $0x290] sm:$0xff] %vm2884_vm10, %v3256_v22  ;;  %v4464_v6 = vpop.f32.mrf.mxu1 }
 0x40a   : > { %v3008_v2 = vpop.permute.xlu0 %3007  ;;  %v3461_v49 = vld [vmem:[#allocation3 + $0x278] sm:$0xff]  ;;  %v7031_v55 = vpop.f32.mrf.mxu1 }
 0x40b   : > { %3076 = vst.msk [vmem:[#allocation3 + $0x2a8] sm:$0xff] %vm2582_vm7, %v3008_v2  ;;  %v2841_v28 = vpop.permute.xlu1 %2840 }
 0x40c   : > { %2911 = vst.msk [vmem:[#allocation3 + $0x288] sm:$0xff] %vm2884_vm10, %v2841_v28  ;;  %v7033_v23 = vpop.f32.mrf.mxu1  ;;  %v4441_v28 = vadd.f32 %v6976_v27, %v6972_v32  ;;  %v7053_v32 = vld [vmem:[%s7220_s6] ss:$0 sm:$0xff] }
 0x40e   : > { %v2545_v26 = vpop.permute.xlu0 %2544  ;;  %v3460_v47 = vld [vmem:[#allocation3 + $0x270] sm:$0xff] }
 0x40f   : > { %2609 = vst.msk [vmem:[#allocation3 + $0x2a0] sm:$0xff] %vm2582_vm7, %v2545_v26  ;;  %v3010_v17 = vpop.permute.xlu1 %3009  ;;  %v3464_v63 = vld [vmem:[#allocation3 + $0x290] sm:$0xff] }
 0x410   : > { %3077 = vst.msk [vmem:[#allocation3 + $0x2c0] sm:$0x7f] %vm3048_vm0, %v3010_v17  ;;  %v3518_v62 = vpack.c.bf16 %v3464_v63, %v3461_v49 }
 0x412   : > { %v3137_v12 = vpop.permute.xlu0 %3136  ;;  %3854 = vmatprep.mubr.bf16.mxu1 %v3518_v62  ;;  %v7046_v62 = vld [vmem:[%s7219_s5] ss:$0 sm:$0xff] }
 0x413   : > { %3199 = vst.msk [vmem:[#allocation3 + $0x2a8] sm:$0xfe] %vm3170_vm8, %v3137_v12  ;;  %v2547_v59 = vpop.permute.xlu1 %2546  ;;  %v3463_v50 = vld [vmem:[#allocation3 + $0x288] sm:$0xff] }
 0x414   : > { %2610 = vst.msk [vmem:[#allocation3 + $0x2b8] sm:$0xff] %vm2582_vm7, %v2547_v59  ;;  %v3517_v37 = vpack.c.bf16 %v3463_v50, %v3460_v47  ;;  %v4444_v59 = vadd.f32 %v6984_v39, %v6980_v57 }
 0x416   : > { %v2712_v9 = vpop.permute.xlu0 %2711  ;;  %3855 = vmatmul.mubr.bf16.gmra.mxu1 %v3517_v37 }
 0x417   : > { %2777 = vst.msk [vmem:[#allocation3 + $0x2a0] sm:$0xff] %vm2749_vm9, %v2712_v9  ;;  %v3139_v53 = vpop.permute.xlu1 %3138 }
 0x418   : > { %3200 = vst.msk [vmem:[#allocation3 + $0x2c0] sm:$0xff] %vm2749_vm9, %v3139_v53 }
 0x41a   : > { %v3258_v16 = vpop.permute.xlu0 %3257 }
 0x41b   : > { %3319 = vst.msk [vmem:[#allocation3 + $0x2a8] sm:$0xff] %vm2884_vm10, %v3258_v16  ;;  %v2714_v51 = vpop.permute.xlu1 %2713 }
 0x41c   : > { %2778 = vst.msk [vmem:[#allocation3 + $0x2b8] sm:$0x7f] %vm2751_vm11, %v2714_v51  ;;  %v4453_v51 = vadd.f32 %v7006_v46, %v7002_v18  ;;  %v4447_v18 = vadd.f32 %v6991_v21, %v6987_v41 }
 0x41e   : > { %v2843_v30 = vpop.permute.xlu0 %2842  ;;  %v7035_v14 = vpop.f32.mrf.mxu1 }
 0x41f   : > { %2912 = vst.msk [vmem:[#allocation3 + $0x2a0] sm:$0xfe] %vm2882_vm12, %v2843_v30  ;;  %v3260_v8 = vpop.permute.xlu1 %3259 }
 0x420   : > { %3320 = vst.msk [vmem:[#allocation3 + $0x2c0] sm:$0xff] %vm2884_vm10, %v3260_v8  ;;  %v7037_v22 = vpop.f32.mrf.mxu1 }
 0x422   : > { %v2549_v45 = vpop.permute.xlu0 %2548  ;;  %v3467_v38 = vld [vmem:[#allocation3 + $0x2a8] sm:$0xff]  ;;  %v7041_v63 = vpop.f32.mrf.mxu1 }
 0x423   : > { %2611 = vst.msk [vmem:[#allocation3 + $0x2d0] sm:$0xff] %vm2582_vm7, %v2549_v45  ;;  %v2845_v11 = vpop.permute.xlu1 %2844 }
 0x424   : > { %2913 = vst.msk [vmem:[#allocation3 + $0x2b8] sm:$0xff] %vm2884_vm10, %v2845_v11  ;;  %v7058_v30 = vpop.f32.mrf.mxu1 }
 0x426   : > { %v2716_v10 = vpop.permute.xlu0 %2715  ;;  %v3466_v24 = vld [vmem:[#allocation3 + $0x2a0] sm:$0xff] }
 0x427   : > { %2779 = vst.msk [vmem:[#allocation3 + $0x2d0] sm:$0xff] %vm2749_vm9, %v2716_v10  ;;  %v2551_v60 = vpop.permute.xlu1 %2550  ;;  %v3470_v31 = vld [vmem:[#allocation3 + $0x2c0] sm:$0xff] }
 0x428   : > { %2612 = vst.msk [vmem:[#allocation3 + $0x2e8] sm:$0xff] %vm2582_vm7, %v2551_v60  ;;  %v3521_v42 = vpack.c.bf16 %v3470_v31, %v3467_v38 }
 0x42a   : > { %v3012_v15 = vpop.permute.xlu0 %3011  ;;  %3862 = vmatprep.mubr.bf16.mxu1 %v3521_v42 }
 0x42b   : > { %3078 = vst.msk [vmem:[#allocation3 + $0x2d8] sm:$0xff] %vm2582_vm7, %v3012_v15  ;;  %v2718_v34 = vpop.permute.xlu1 %2717  ;;  %v3469_v58 = vld [vmem:[#allocation3 + $0x2b8] sm:$0xff]  ;;  %v4456_v15 = vadd.f32 %v7014_v43, %v7010_v56 }
 0x42c   : > { %2780 = vst.msk [vmem:[#allocation3 + $0x2e8] sm:$0x7f] %vm2751_vm11, %v2718_v34  ;;  %v3520_v44 = vpack.c.bf16 %v3469_v58, %v3466_v24 }
 0x42e   : > { %v2847_v40 = vpop.permute.xlu0 %2846  ;;  %3863 = vmatmul.mubr.bf16.gmra.mxu1 %v3520_v44  ;;  %v4450_v44 = vadd.f32 %v6999_v13, %v6995_v61 }
 0x42f   : > { %2914 = vst.msk [vmem:[#allocation3 + $0x2d0] sm:$0xfe] %vm2882_vm12, %v2847_v40  ;;  %v3014_v33 = vpop.permute.xlu1 %3013 }
 0x430   : > { %3079 = vst.msk [vmem:[#allocation3 + $0x2f0] sm:$0x7f] %vm3048_vm0, %v3014_v33 }
 0x432   : > { %v3473_v4 = vld [vmem:[#allocation3 + $0x2d8] sm:$0xff] }
 0x433   : > { %v2849_v20 = vpop.permute.xlu1 %2848 }
 0x434   : > { %2915 = vst.msk [vmem:[#allocation3 + $0x2e8] sm:$0xff] %vm2884_vm10, %v2849_v20 }
 0x436   : > { %v3472_v52 = vld [vmem:[#allocation3 + $0x2d0] sm:$0xff] }
 0x437   : > { %v3476_v54 = vld [vmem:[#allocation3 + $0x2f0] sm:$0xff] }
 0x438   : > { %v3524_v25 = vpack.c.bf16 %v3476_v54, %v3473_v4  ;;  %v4465_v54 = vadd.f32 %v4464_v6, %v7029_v1 }
 0x43a   : > { %3870 = vmatprep.mubr.bf16.mxu1 %v3524_v25  ;;  %v4475_v46 = vpop.f32.mrf.mxu1 }
 0x43b   : > { %v3475_v35 = vld [vmem:[#allocation3 + $0x2e8] sm:$0xff] }
 0x43c   : > { %v3523_v36 = vpack.c.bf16 %v3475_v35, %v3472_v52  ;;  %v4476_v40 = vpop.f32.mrf.mxu1 }
 0x43e   : > { %3871 = vmatmul.mubr.bf16.gmra.mxu1 %v3523_v36  ;;  %v4478_v36 = vpop.f32.mrf.mxu1 }
 0x446   : > { %v4433_v7 = vpop.f32.mrf.mxu0 }
 0x448   : > { %v4434_v0 = vpop.f32.mrf.mxu0 }
 0x449   : > { %v4435_v17 = vadd.f32 %v4434_v0, %v4433_v7 }
 0x44a   : > { %v4436_v5 = vpop.f32.mrf.mxu0 }
 0x44c   : > { %v4437_v2 = vpop.f32.mrf.mxu0 }
 0x44d   : > { %v4438_v37 = vadd.f32 %v4437_v2, %v4436_v5  ;;  %v4459_v2 = vadd.f32 %v7021_v19, %v7017_v3 }
 0x44e   : > { %v4591_v26 = vpop.f32.mrf.mxu0 }
 0x44f   : > { %v3922_v49 = vadd.f32 %v4591_v26, %v4441_v28  ;;  %v4468_v26 = vadd.f32 %v7033_v23, %v7031_v55 }
 0x450   : > { %v3913_v12 = vpop.f32.mrf.mxu0 }
 0x451   : > { %v4042_v47 = vmax.f32 %v3922_v49, 0.0  ;;  %v3914_v50 = vadd.f32 %v4435_v17, %v3913_v12 }
 0x452   : > { %v4592_v27 = vpop.f32.mrf.mxu0 }
 0x453   : > { %v4081_v9 = vmul.f32 %v7046_v62, %v4042_v47  ;;  %v4040_v53 = vmax.f32 %v3914_v50, 0.0  ;;  %v3925_v16 = vadd.f32 %v4592_v27, %v4444_v59  ;;  %v4479_v59 = vpop.f32.mrf.mxu1  ;;  %v4462_v27 = vadd.f32 %v7027_v29, %v7024_v48 }
 0x454   : > { %v3916_v57 = vpop.f32.mrf.mxu0 }
 0x455   : > { %v4120_v39 = vadd.f32 %v7053_v32, %v4081_v9  ;;  %v4079_v8 = vmul.f32 %v7046_v62, %v4040_v53  ;;  %v4043_v45 = vmax.f32 %v3925_v16, 0.0  ;;  %v3917_v11 = vadd.f32 %v4438_v37, %v3916_v57 }
 0x456   : > { %v4595_v10 = vpop.f32.mrf.mxu0  ;;  %v4477_v53 = vadd.f32 %v4476_v40, %v4475_v46 }
 0x457   : > { %4153 = vst.msk [vmem:[%s7065_s15 + $0x10] sm:$0xff] %vm4150_vm13, %v4120_v39  ;;  %v4118_v60 = vadd.f32 %v7053_v32, %v4079_v8  ;;  %v4082_v38 = vmul.f32 %v7046_v62, %v4043_v45  ;;  %v4041_v31 = vmax.f32 %v3917_v11, 0.0  ;;  %v3938_v42 = vadd.f32 %v4595_v10, %v4453_v51 }
 0x458   : > { %v3929_v34 = vpop.f32.mrf.mxu0  ;;  %v4471_v39 = vadd.f32 %v7037_v22, %v7035_v14  ;;  %v4474_v14 = vadd.f32 %v7058_v30, %v7041_v63 }
 0x459   : > { %4151 = vst.msk [vmem:[%s7065_s15] sm:$0xff] %vm4150_vm13, %v4118_v60  ;;  %v4121_v41 = vadd.f32 %v7053_v32, %v4082_v38  ;;  %v4080_v21 = vmul.f32 %v7046_v62, %v4041_v31  ;;  %v4046_v24 = vmax.f32 %v3938_v42, 0.0  ;;  %v3930_v58 = vadd.f32 %v4447_v18, %v3929_v34 }
 0x45a   : > { %v4596_v33 = vpop.f32.mrf.mxu0  ;;  %v4480_v18 = vadd.f32 %v4479_v59, %v4478_v36 }
 0x45b   : > { %4154 = vst.msk [vmem:[%s7065_s15 + $0x18] sm:$0xff] %vm4150_vm13, %v4121_v41  ;;  %v4119_v56 = vadd.f32 %v7053_v32, %v4080_v21  ;;  %v4085_v43 = vmul.f32 %v7046_v62, %v4046_v24  ;;  %v4044_v20 = vmax.f32 %v3930_v58, 0.0  ;;  %v3941_v4 = vadd.f32 %v4596_v33, %v4456_v15 }
 0x45c   : > { %v3932_v25 = vpop.f32.mrf.mxu0 }
 0x45d   : > { %4152 = vst.msk [vmem:[%s7065_s15 + $0x8] sm:$0xff] %vm4150_vm13, %v4119_v56  ;;  %v4124_v52 = vadd.f32 %v7053_v32, %v4085_v43  ;;  %v4083_v61 = vmul.f32 %v7046_v62, %v4044_v20  ;;  %v4047_v13 = vmax.f32 %v3941_v4, 0.0  ;;  %v3933_v35 = vadd.f32 %v4450_v44, %v3932_v25 }
 0x45e   : > { %v4599_v7 = vpop.f32.mrf.mxu0  ;;  %v4481_v23 = vpop.f32.mrf.mxu1 }
 0x45f   : > { %4157 = vst.msk [vmem:[%s7065_s15 + $0x30] sm:$0xff] %vm4150_vm13, %v4124_v52  ;;  %v4122_v0 = vadd.f32 %v7053_v32, %v4083_v61  ;;  %v4086_v5 = vmul.f32 %v7046_v62, %v4047_v13  ;;  %v4045_v1 = vmax.f32 %v3933_v35, 0.0  ;;  %v3954_v6 = vadd.f32 %v4599_v7, %v4465_v54 }
 0x460   : > { %v3945_v28 = vpop.f32.mrf.mxu0  ;;  %v4482_v46 = vpop.f32.mrf.mxu1 }
 0x461   : > { %4155 = vst.msk [vmem:[%s7065_s15 + $0x20] sm:$0xff] %vm4150_vm13, %v4122_v0  ;;  %v4125_v17 = vadd.f32 %v7053_v32, %v4086_v5  ;;  %v4084_v49 = vmul.f32 %v7046_v62, %v4045_v1  ;;  %v4050_v12 = vmax.f32 %v3954_v6, 0.0  ;;  %v3946_v47 = vadd.f32 %v4459_v2, %v3945_v28 }
 0x462   : > { %v4600_v50 = vpop.f32.mrf.mxu0  ;;  %v4484_v58 = vpop.f32.mrf.mxu1  ;;  %v4483_v43 = vadd.f32 %v4482_v46, %v4481_v23 }
 0x463   : > { %4158 = vst.msk [vmem:[%s7065_s15 + $0x38] sm:$0xff] %vm4150_vm13, %v4125_v17  ;;  %v4123_v3 = vadd.f32 %v7053_v32, %v4084_v49  ;;  %v4089_v19 = vmul.f32 %v7046_v62, %v4050_v12  ;;  %v3957_v55 = vadd.f32 %v4600_v50, %v4468_v26  ;;  %v4048_v37 = vmax.f32 %v3946_v47, 0.0 }
 0x464   : > { %v3948_v9 = vpop.f32.mrf.mxu0  ;;  %v4485_v25 = vpop.f32.mrf.mxu1 }
 0x465   : > { %4156 = vst.msk [vmem:[%s7065_s15 + $0x28] sm:$0xff] %vm4150_vm13, %v4123_v3  ;;  %v4128_v16 = vadd.f32 %v7053_v32, %v4089_v19  ;;  %v4051_v51 = vmax.f32 %v3957_v55, 0.0  ;;  %v3949_v57 = vadd.f32 %v4462_v27, %v3948_v9  ;;  %v4087_v48 = vmul.f32 %v7046_v62, %v4048_v37 }
 0x466   : > { %v4603_v29 = vpop.f32.mrf.mxu0  ;;  %v4486_v7 = vadd.f32 %v4485_v25, %v4484_v58 }
 0x467   : > { %4161 = vst.msk [vmem:[%s7065_s15 + $0x50] sm:$0xff] %vm4150_vm13, %v4128_v16  ;;  %v4090_v8 = vmul.f32 %v7046_v62, %v4051_v51  ;;  %v4049_v45 = vmax.f32 %v3949_v57, 0.0  ;;  %v3970_v11 = vadd.f32 %v4603_v29, %v4477_v53  ;;  %v4126_v10 = vadd.f32 %v7053_v32, %v4087_v48 }
 0x468   : > { %v3961_v60 = vpop.f32.mrf.mxu0 }
 0x469   : > { %v4129_v38 = vadd.f32 %v7053_v32, %v4090_v8  ;;  %v4088_v31 = vmul.f32 %v7046_v62, %v4049_v45  ;;  %v4054_v42 = vmax.f32 %v3970_v11, 0.0  ;;  %v3962_v15 = vadd.f32 %v4471_v39, %v3961_v60  ;;  %4159 = vst.msk [vmem:[%s7065_s15 + $0x40] sm:$0xff] %vm4150_vm13, %v4126_v10 }
 0x46a   : > { %v4604_v22 = vpop.f32.mrf.mxu0 }
 0x46b   : > { %4162 = vst.msk [vmem:[%s7065_s15 + $0x58] sm:$0xff] %vm4150_vm13, %v4129_v38  ;;  %v4127_v34 = vadd.f32 %v7053_v32, %v4088_v31  ;;  %v4093_v41 = vmul.f32 %v7046_v62, %v4054_v42  ;;  %v4052_v21 = vmax.f32 %v3962_v15, 0.0  ;;  %v3973_v24 = vadd.f32 %v4604_v22, %v4480_v18 }
 0x46c   : > { %v3964_v44 = vpop.f32.mrf.mxu0 }
 0x46d   : > { %4160 = vst.msk [vmem:[%s7065_s15 + $0x48] sm:$0xff] %vm4150_vm13, %v4127_v34  ;;  %v4132_v40 = vadd.f32 %v7053_v32, %v4093_v41  ;;  %v4091_v63 = vmul.f32 %v7046_v62, %v4052_v21  ;;  %v4055_v30 = vmax.f32 %v3973_v24, 0.0  ;;  %v3965_v33 = vadd.f32 %v4474_v14, %v3964_v44 }
 0x46e   : > { %v4607_v56 = vpop.f32.mrf.mxu0 }
 0x46f   : > { %4165 = vst.msk [vmem:[%s7065_s15 + $0x70] sm:$0xff] %vm4150_vm13, %v4132_v40  ;;  %v4130_v20 = vadd.f32 %v7053_v32, %v4091_v63  ;;  %v4094_v4 = vmul.f32 %v7046_v62, %v4055_v30  ;;  %v4053_v54 = vmax.f32 %v3965_v33, 0.0 }
 0x470   : > { %v3977_v52 = vpop.f32.mrf.mxu0 }
 0x471   : > { %4163 = vst.msk [vmem:[%s7065_s15 + $0x60] sm:$0xff] %vm4150_vm13, %v4130_v20  ;;  %v4133_v61 = vadd.f32 %v7053_v32, %v4094_v4  ;;  %v4092_v13 = vmul.f32 %v7046_v62, %v4053_v54  ;;  %v3978_v35 = vadd.f32 %v4483_v43, %v3977_v52 }
 0x472   : > { %v4608_v36 = vpop.f32.mrf.mxu0 }
 0x473   : > { %4166 = vst.msk [vmem:[%s7065_s15 + $0x78] sm:$0xff] %vm4150_vm13, %v4133_v61  ;;  %v4131_v0 = vadd.f32 %v7053_v32, %v4092_v13  ;;  %v4056_v5 = vmax.f32 %v3978_v35, 0.0 }
 0x474   : > { %v3980_v1 = vpop.f32.mrf.mxu0 }
 0x475   : > { %4164 = vst.msk [vmem:[%s7065_s15 + $0x68] sm:$0xff] %vm4150_vm13, %v4131_v0  ;;  %v4095_v6 = vmul.f32 %v7046_v62, %v4056_v5  ;;  %v3981_v2 = vadd.f32 %v4486_v7, %v3980_v1 }
 0x476   : > { %v4487_v28 = vpop.f32.mrf.mxu1  ;;  %v4611_v57 = vpop.f32.mrf.mxu0 }
 0x477   : > { %v4134_v26 = vadd.f32 %v7053_v32, %v4095_v6  ;;  %v4057_v17 = vmax.f32 %v3981_v2, 0.0 }
 0x478   : > { %v4488_v49 = vpop.f32.mrf.mxu1  ;;  %v3993_v48 = vpop.f32.mrf.mxu0 }
 0x479   : > { %4167 = vst.msk [vmem:[%s7065_s15 + $0x80] sm:$0xff] %vm4150_vm13, %v4134_v26  ;;  %v4096_v12 = vmul.f32 %v7046_v62, %v4057_v17  ;;  %v4489_v59 = vadd.f32 %v4488_v49, %v4487_v28 }
 0x47a   : > { %v4490_v47 = vpop.f32.mrf.mxu1  ;;  %v4612_v45 = vpop.f32.mrf.mxu0 }
 0x47b   : > { %v4135_v50 = vadd.f32 %v7053_v32, %v4096_v12  ;;  %v3986_v27 = vadd.f32 %v4607_v56, %v4489_v59 }
 0x47c   : > { %v4491_v3 = vpop.f32.mrf.mxu1  ;;  %v3996_v38 = vpop.f32.mrf.mxu0 }
 0x47d   : > { %4168 = vst.msk [vmem:[%s7065_s15 + $0x88] sm:$0xff] %vm4150_vm13, %v4135_v50  ;;  %v4058_v19 = vmax.f32 %v3986_v27, 0.0  ;;  %v4492_v55 = vadd.f32 %v4491_v3, %v4490_v47 }
 0x47e   : > { %v4615_v25 = vpop.f32.mrf.mxu0 }
 0x47f   : > { %v4097_v23 = vmul.f32 %v7046_v62, %v4058_v19  ;;  %v3989_v37 = vadd.f32 %v4608_v36, %v4492_v55 }
 0x480   : > { %v4009_v52 = vpop.f32.mrf.mxu0 }
 0x481   : > { %v4136_v9 = vadd.f32 %v7053_v32, %v4097_v23  ;;  %v4059_v53 = vmax.f32 %v3989_v37, 0.0 }
 0x482   : > { %v4616_v36 = vpop.f32.mrf.mxu0 }
 0x483   : > { %4169 = vst.msk [vmem:[%s7065_s15 + $0x90] sm:$0xff] %vm4150_vm13, %v4136_v9  ;;  %v4098_v16 = vmul.f32 %v7046_v62, %v4059_v53 }
 0x484   : > { %v4012_v2 = vpop.f32.mrf.mxu0 }
 0x485   : > { %v4137_v51 = vadd.f32 %v7053_v32, %v4098_v16 }
 0x487   : > { %4170 = vst.msk [vmem:[%s7065_s15 + $0x98] sm:$0xff] %vm4150_vm13, %v4137_v51 }
 0x48e   : > { %v4493_v29 = vpop.f32.mrf.mxu1 }
 0x490   : > { %v4494_v39 = vpop.f32.mrf.mxu1 }
 0x491   : > { %v4495_v8 = vadd.f32 %v4494_v39, %v4493_v29  ;;  %v4619_v29 = vpop.f32.mrf.mxu0 }
 0x492   : > { %v4496_v11 = vpop.f32.mrf.mxu1 }
 0x493   : > { %v3994_v18 = vadd.f32 %v4495_v8, %v3993_v48  ;;  %v4025_v39 = vpop.f32.mrf.mxu0 }
 0x494   : > { %v4497_v46 = vpop.f32.mrf.mxu1 }
 0x495   : > { %v4060_v10 = vmax.f32 %v3994_v18, 0.0  ;;  %v4498_v60 = vadd.f32 %v4497_v46, %v4496_v11  ;;  %v4620_v11 = vpop.f32.mrf.mxu0 }
 0x497   : > { %v4099_v31 = vmul.f32 %v7046_v62, %v4060_v10  ;;  %v3997_v42 = vadd.f32 %v4498_v60, %v3996_v38  ;;  %v4028_v38 = vpop.f32.mrf.mxu0 }
 0x499   : > { %v4138_v15 = vadd.f32 %v7053_v32, %v4099_v31  ;;  %v4061_v14 = vmax.f32 %v3997_v42, 0.0 }
 0x49b   : > { %4171 = vst.msk [vmem:[%s7065_s15 + $0xa0] sm:$0xff] %vm4150_vm13, %v4138_v15  ;;  %v4100_v22 = vmul.f32 %v7046_v62, %v4061_v14 }
 0x49d   : > { %v4139_v34 = vadd.f32 %v7053_v32, %v4100_v22 }
 0x49f   : > { %4172 = vst.msk [vmem:[%s7065_s15 + $0xa8] sm:$0xff] %vm4150_vm13, %v4139_v34 }
 0x4a6   : > { %v4499_v41 = vpop.f32.mrf.mxu1 }
 0x4a8   : > { %v4500_v21 = vpop.f32.mrf.mxu1 }
 0x4a9   : > { %v4501_v24 = vadd.f32 %v4500_v21, %v4499_v41 }
 0x4aa   : > { %v4502_v58 = vpop.f32.mrf.mxu1 }
 0x4ab   : > { %v4002_v44 = vadd.f32 %v4611_v57, %v4501_v24 }
 0x4ac   : > { %v4503_v40 = vpop.f32.mrf.mxu1 }
 0x4ad   : > { %v4062_v63 = vmax.f32 %v4002_v44, 0.0  ;;  %v4504_v30 = vadd.f32 %v4503_v40, %v4502_v58 }
 0x4af   : > { %v4101_v33 = vmul.f32 %v7046_v62, %v4062_v63  ;;  %v4005_v56 = vadd.f32 %v4612_v45, %v4504_v30 }
 0x4b1   : > { %v4140_v43 = vadd.f32 %v7053_v32, %v4101_v33  ;;  %v4063_v20 = vmax.f32 %v4005_v56, 0.0 }
 0x4b3   : > { %4173 = vst.msk [vmem:[%s7065_s15 + $0xb0] sm:$0xff] %vm4150_vm13, %v4140_v43  ;;  %v4102_v4 = vmul.f32 %v7046_v62, %v4063_v20 }
 0x4b5   : > { %v4141_v54 = vadd.f32 %v7053_v32, %v4102_v4 }
 0x4b7   : > { %4174 = vst.msk [vmem:[%s7065_s15 + $0xb8] sm:$0xff] %vm4150_vm13, %v4141_v54 }
 0x4be   : > { %v4505_v61 = vpop.f32.mrf.mxu1 }
 0x4c0   : > { %v4506_v13 = vpop.f32.mrf.mxu1 }
 0x4c1   : > { %v4507_v35 = vadd.f32 %v4506_v13, %v4505_v61 }
 0x4c2   : > { %v4508_v7 = vpop.f32.mrf.mxu1 }
 0x4c3   : > { %v4010_v0 = vadd.f32 %v4507_v35, %v4009_v52 }
 0x4c4   : > { %v4509_v5 = vpop.f32.mrf.mxu1 }
 0x4c5   : > { %v4064_v1 = vmax.f32 %v4010_v0, 0.0  ;;  %v4510_v6 = vadd.f32 %v4509_v5, %v4508_v7 }
 0x4c7   : > { %v4103_v28 = vmul.f32 %v7046_v62, %v4064_v1  ;;  %v4013_v26 = vadd.f32 %v4510_v6, %v4012_v2 }
 0x4c9   : > { %v4142_v17 = vadd.f32 %v7053_v32, %v4103_v28  ;;  %v4065_v49 = vmax.f32 %v4013_v26, 0.0 }
 0x4cb   : > { %4175 = vst.msk [vmem:[%s7065_s15 + $0xc0] sm:$0xff] %vm4150_vm13, %v4142_v17  ;;  %v4104_v12 = vmul.f32 %v7046_v62, %v4065_v49 }
 0x4cd   : > { %v4143_v59 = vadd.f32 %v7053_v32, %v4104_v12 }
 0x4cf   : > { %4176 = vst.msk [vmem:[%s7065_s15 + $0xc8] sm:$0xff] %vm4150_vm13, %v4143_v59 }
 0x4d6   : > { %v4511_v47 = vpop.f32.mrf.mxu1 }
 0x4d8   : > { %v4512_v50 = vpop.f32.mrf.mxu1 }
 0x4d9   : > { %v4513_v27 = vadd.f32 %v4512_v50, %v4511_v47 }
 0x4da   : > { %v4514_v3 = vpop.f32.mrf.mxu1 }
 0x4db   : > { %v4018_v19 = vadd.f32 %v4615_v25, %v4513_v27 }
 0x4dc   : > { %v4515_v55 = vpop.f32.mrf.mxu1 }
 0x4dd   : > { %v4066_v23 = vmax.f32 %v4018_v19, 0.0  ;;  %v4516_v37 = vadd.f32 %v4515_v55, %v4514_v3 }
 0x4df   : > { %v4105_v9 = vmul.f32 %v7046_v62, %v4066_v23  ;;  %v4021_v53 = vadd.f32 %v4616_v36, %v4516_v37 }
 0x4e1   : > { %v4144_v16 = vadd.f32 %v7053_v32, %v4105_v9  ;;  %v4067_v51 = vmax.f32 %v4021_v53, 0.0 }
 0x4e3   : > { %4177 = vst.msk [vmem:[%s7065_s15 + $0xd0] sm:$0xff] %vm4150_vm13, %v4144_v16  ;;  %v4106_v57 = vmul.f32 %v7046_v62, %v4067_v51 }
 0x4e5   : > { %v4145_v48 = vadd.f32 %v7053_v32, %v4106_v57 }
 0x4e7   : > { %4178 = vst.msk [vmem:[%s7065_s15 + $0xd8] sm:$0xff] %vm4150_vm13, %v4145_v48 }
 0x4ee   : > { %v4517_v8 = vpop.f32.mrf.mxu1 }
 0x4f0   : > { %v4518_v45 = vpop.f32.mrf.mxu1 }
 0x4f1   : > { %v4519_v18 = vadd.f32 %v4518_v45, %v4517_v8 }
 0x4f2   : > { %v4520_v46 = vpop.f32.mrf.mxu1 }
 0x4f3   : > { %v4026_v10 = vadd.f32 %v4519_v18, %v4025_v39 }
 0x4f4   : > { %v4521_v60 = vpop.f32.mrf.mxu1 }
 0x4f5   : > { %v4068_v31 = vmax.f32 %v4026_v10, 0.0  ;;  %v4522_v42 = vadd.f32 %v4521_v60, %v4520_v46 }
 0x4f7   : > { %v4107_v15 = vmul.f32 %v7046_v62, %v4068_v31  ;;  %v4029_v14 = vadd.f32 %v4522_v42, %v4028_v38 }
 0x4f9   : > { %v4146_v22 = vadd.f32 %v7053_v32, %v4107_v15  ;;  %v4069_v34 = vmax.f32 %v4029_v14, 0.0 }
 0x4fb   : > { %4179 = vst.msk [vmem:[%s7065_s15 + $0xe0] sm:$0xff] %vm4150_vm13, %v4146_v22  ;;  %v4108_v41 = vmul.f32 %v7046_v62, %v4069_v34 }
 0x4fd   : > { %v4147_v21 = vadd.f32 %v7053_v32, %v4108_v41 }
 0x4fe   : > { %v4523_v24 = vpop.f32.mrf.mxu1 }
 0x4ff   : > { %4180 = vst.msk [vmem:[%s7065_s15 + $0xe8] sm:$0xff] %vm4150_vm13, %v4147_v21 }
 0x500   : > { %v4524_v58 = vpop.f32.mrf.mxu1 }
 0x501   : > { %v4525_v44 = vadd.f32 %v4524_v58, %v4523_v24 }
 0x502   : > { %v4526_v40 = vpop.f32.mrf.mxu1 }
 0x503   : > { %v4034_v63 = vadd.f32 %v4619_v29, %v4525_v44 }
 0x504   : > { %v4527_v30 = vpop.f32.mrf.mxu1 }
 0x505   : > { %v4070_v33 = vmax.f32 %v4034_v63, 0.0  ;;  %v4528_v56 = vadd.f32 %v4527_v30, %v4526_v40 }
 0x507   : > { %v4109_v43 = vmul.f32 %v7046_v62, %v4070_v33  ;;  %v4037_v20 = vadd.f32 %v4620_v11, %v4528_v56 }
 0x509   : > { %v4148_v4 = vadd.f32 %v7053_v32, %v4109_v43  ;;  %v4071_v54 = vmax.f32 %v4037_v20, 0.0 }
 0x50b   : > { %4181 = vst.msk [vmem:[%s7065_s15 + $0xf0] sm:$0xff] %vm4150_vm13, %v4148_v4  ;;  %v4110_v25 = vmul.f32 %v7046_v62, %v4071_v54 }
 0x50d   : > { %v4149_v52 = vadd.f32 %v7053_v32, %v4110_v25 }
 0x50f   : > { %4182 = vst.msk [vmem:[%s7065_s15 + $0xf8] sm:$0xff] %vm4150_vm13, %v4149_v52 }
 0x510 PF: > { %s17_s24 = sadd.s32 1, %s4687_s24  }
 0x511   : > { %p14_p4 = scmp.ge.s32.totalorder %s17_s24, 4  }
 0x513   :  { %16 = sbr.rel (!%p14_p4) target bundleno = 1 (0x1), region = 81 }

</bundles_post_ra>
